<compile_context>
chip_gen: v5e
topology: v5e:2x2
jax: 0.10.0
libtpu: 0.0.40
codegen_flags: <defaults>
</compile_context>

<pallas_src>
import functools

import jax
import jax.numpy as jnp
from jax.experimental import pallas as pl
from jax.experimental.pallas import tpu as pltpu

_LANE = 128
_VMEM_LIMIT_BYTES = 48 * 1024 * 1024  # < 64 MiB (v7x physical), > 16 MiB (v5e scoped default)
_ROW_TILE = 512                       # target rows per grid step for the 1x1 stages


def _round_up(x, m):
    return ((x + m - 1) // m) * m


# ---------------------------------------------------------------------------
# Stage a: Tx1x1 conv. Grid (N, T, tap); tap is the reduction axis, taps are
# selected purely through the input BlockSpec index_map (no im2col matrix).
# ---------------------------------------------------------------------------
def _stage_a_kernel(x_ref, w_ref, y_ref, psum_ref, psq_ref, acc_ref, *, tk):
    k = pl.program_id(2)

    @pl.when(k == 0)
    def _():
        acc_ref[...] = jnp.zeros_like(acc_ref)

    hw = acc_ref.shape[0]
    cin = x_ref.shape[-1]
    xm = x_ref[0].reshape(hw, cin)                       # bf16 (H*W, Cin)
    acc_ref[...] += jnp.dot(xm, w_ref[0], preferred_element_type=jnp.float32)

    @pl.when(k == tk - 1)
    def _():
        acc = acc_ref[...]
        ha, wa = y_ref.shape[1], y_ref.shape[2]
        y_ref[0] = acc.reshape(ha, wa, acc.shape[-1]).astype(y_ref.dtype)
        psum_ref[0] = jnp.sum(acc, axis=0, keepdims=True)
        psq_ref[0] = jnp.sum(acc * acc, axis=0, keepdims=True)


def _stage_a(xp, w, *, n, ta, tp, tk):
    # xp: (N*Tp, Ha, Wa, Cin) bf16 (T zero-padded);  w: (tk, Cin, C1pad) bf16
    _, ha, wa, cin = xp.shape
    c1 = w.shape[-1]
    nt = n * ta
    kernel = functools.partial(_stage_a_kernel, tk=tk)
    return pl.pallas_call(
        kernel,
        out_shape=(
            jax.ShapeDtypeStruct((nt, ha, wa, c1), jnp.bfloat16),
            jax.ShapeDtypeStruct((nt, 1, c1), jnp.float32),
            jax.ShapeDtypeStruct((nt, 1, c1), jnp.float32),
        ),
        grid_spec=pltpu.PrefetchScalarGridSpec(
            num_scalar_prefetch=0,
            grid=(n, ta, tk),
            in_specs=[
                pl.BlockSpec((1, ha, wa, cin),
                             lambda i, t, k: (i * tp + t + k, 0, 0, 0)),
                pl.BlockSpec((1, cin, c1), lambda i, t, k: (k, 0, 0)),
            ],
            out_specs=(
                pl.BlockSpec((1, ha, wa, c1), lambda i, t, k: (i * ta + t, 0, 0, 0)),
                pl.BlockSpec((1, 1, c1), lambda i, t, k: (i * ta + t, 0, 0)),
                pl.BlockSpec((1, 1, c1), lambda i, t, k: (i * ta + t, 0, 0)),
            ),
            scratch_shapes=[pltpu.VMEM((ha * wa, c1), jnp.float32)],
        ),
        compiler_params=pltpu.CompilerParams(
            dimension_semantics=("parallel", "parallel", "arbitrary"),
            vmem_limit_bytes=_VMEM_LIMIT_BYTES,
        ),
    )(xp, w)


# ---------------------------------------------------------------------------
# Stage b: fused (BN_a + ReLU) + 1x3x3 conv.  One spatial frame per grid step;
# the BN'd frame is written into the interior of a zeroed VMEM scratch, so the
# conv's zero-padding border is exact, and the 9 taps are in-kernel slices.
# ---------------------------------------------------------------------------
def _stage_b_kernel(y_ref, scale_ref, bias_ref, w_ref, o_ref, psum_ref, psq_ref,
                    zpad_ref, *, stride, dilation, ho, wo):
    c1 = y_ref.shape[-1]
    ha, wa = y_ref.shape[1], y_ref.shape[2]
    d = dilation

    zpad_ref[...] = jnp.zeros_like(zpad_ref)
    y = y_ref[0].astype(jnp.float32)
    z = jnp.maximum(y * scale_ref[0] + bias_ref[0], 0.0)       # fused BN_a + ReLU
    zpad_ref[d:d + ha, d:d + wa, :] = z.astype(zpad_ref.dtype)

    acc = jnp.zeros((ho * wo, c1), jnp.float32)
    tap = 0
    for kh in range(3):
        for kw in range(3):
            h0 = kh * d
            w0 = kw * d
            if stride == 1:
                win = zpad_ref[h0:h0 + ho, w0:w0 + wo, :]
            else:
                win = zpad_ref[pl.ds(h0, ho, stride), pl.ds(w0, wo, stride), :]
            xm = win.reshape(ho * wo, c1).astype(jnp.bfloat16)
            acc = acc + jnp.dot(xm, w_ref[tap], preferred_element_type=jnp.float32)
            tap += 1

    o_ref[0] = acc.astype(o_ref.dtype)
    psum_ref[0] = jnp.sum(acc, axis=0, keepdims=True)
    psq_ref[0] = jnp.sum(acc * acc, axis=0, keepdims=True)


def _stage_b(y_a, scale_a, bias_a, w, *, stride, dilation):
    nt, ha, wa, c1 = y_a.shape
    d = dilation
    ho = (ha - 1) // stride + 1
    wo = (wa - 1) // stride + 1
    hp, wp = ha + 2 * d, wa + 2 * d
    kernel = functools.partial(_stage_b_kernel, stride=stride, dilation=dilation,
                               ho=ho, wo=wo)
    outs = pl.pallas_call(
        kernel,
        out_shape=(
            jax.ShapeDtypeStruct((nt, ho * wo, c1), jnp.bfloat16),
            jax.ShapeDtypeStruct((nt, 1, c1), jnp.float32),
            jax.ShapeDtypeStruct((nt, 1, c1), jnp.float32),
        ),
        grid_spec=pltpu.PrefetchScalarGridSpec(
            num_scalar_prefetch=0,
            grid=(nt,),
            in_specs=[
                pl.BlockSpec((1, ha, wa, c1), lambda i: (i, 0, 0, 0)),
                pl.BlockSpec((1, c1), lambda i: (0, 0)),
                pl.BlockSpec((1, c1), lambda i: (0, 0)),
                pl.BlockSpec((9, c1, c1), lambda i: (0, 0, 0)),
            ],
            out_specs=(
                pl.BlockSpec((1, ho * wo, c1), lambda i: (i, 0, 0)),
                pl.BlockSpec((1, 1, c1), lambda i: (i, 0, 0)),
                pl.BlockSpec((1, 1, c1), lambda i: (i, 0, 0)),
            ),
            scratch_shapes=[pltpu.VMEM((hp, wp, c1), jnp.bfloat16)],
        ),
        compiler_params=pltpu.CompilerParams(
            dimension_semantics=("parallel",),
            vmem_limit_bytes=_VMEM_LIMIT_BYTES,
        ),
    )(y_a, scale_a, bias_a, w)
    return outs, (ho, wo)


# ---------------------------------------------------------------------------
# Stage c: fused (BN_b + ReLU) + 1x1x1 conv over ~_ROW_TILE rows per step.
# Partial frames at the grid edge are masked out of the batch statistics.
# ---------------------------------------------------------------------------
def _stage_c_kernel(yb_ref, scale_ref, bias_ref, w_ref, yc_ref, psum_ref, psq_ref,
                    *, nt):
    i = pl.program_id(0)
    f, r, c1 = yb_ref.shape
    c2 = yc_ref.shape[-1]

    y = yb_ref[...].astype(jnp.float32)
    z = jnp.maximum(y * scale_ref[0] + bias_ref[0], 0.0)       # fused BN_b + ReLU
    frame = jax.lax.broadcasted_iota(jnp.int32, (f, 1, 1), 0) + i * f
    z = jnp.where(frame < nt, z, 0.0)                          # mask OOB frames
    zm = z.reshape(f * r, c1).astype(jnp.bfloat16)

    acc = jnp.dot(zm, w_ref[...], preferred_element_type=jnp.float32)
    yc_ref[...] = acc.reshape(f, r, c2).astype(yc_ref.dtype)
    psum_ref[0] = jnp.sum(acc, axis=0, keepdims=True)
    psq_ref[0] = jnp.sum(acc * acc, axis=0, keepdims=True)


def _stage_c(y_b, scale_b, bias_b, w, *, tm=_ROW_TILE):
    nt, r, c1 = y_b.shape
    c2 = w.shape[-1]
    f = max(1, min(tm // max(r, 1), nt))
    g = -(-nt // f)
    kernel = functools.partial(_stage_c_kernel, nt=nt)
    return pl.pallas_call(
        kernel,
        out_shape=(
            jax.ShapeDtypeStruct((nt, r, c2), jnp.bfloat16),
            jax.ShapeDtypeStruct((g, 1, c2), jnp.float32),
            jax.ShapeDtypeStruct((g, 1, c2), jnp.float32),
        ),
        grid_spec=pltpu.PrefetchScalarGridSpec(
            num_scalar_prefetch=0,
            grid=(g,),
            in_specs=[
                pl.BlockSpec((f, r, c1), lambda i: (i, 0, 0)),
                pl.BlockSpec((1, c1), lambda i: (0, 0)),
                pl.BlockSpec((1, c1), lambda i: (0, 0)),
                pl.BlockSpec((c1, c2), lambda i: (0, 0)),
            ],
            out_specs=(
                pl.BlockSpec((f, r, c2), lambda i: (i, 0, 0)),
                pl.BlockSpec((1, 1, c2), lambda i: (i, 0, 0)),
                pl.BlockSpec((1, 1, c2), lambda i: (i, 0, 0)),
            ),
        ),
        compiler_params=pltpu.CompilerParams(
            dimension_semantics=("parallel",),
            vmem_limit_bytes=_VMEM_LIMIT_BYTES,
        ),
    )(y_b, scale_b, bias_b, w)


# ---------------------------------------------------------------------------
# Final standalone BN for stage c (no ReLU), single FMA per element.
# ---------------------------------------------------------------------------
def _final_bn_kernel(yc_ref, scale_ref, bias_ref, o_ref):
    y = yc_ref[...].astype(jnp.float32)
    o_ref[...] = y * scale_ref[0] + bias_ref[0]


def _final_bn(y_c, scale_c, bias_c, *, tm=_ROW_TILE):
    nt, r, c2 = y_c.shape
    f = max(1, min(tm // max(r, 1), nt))
    g = -(-nt // f)
    return pl.pallas_call(
        _final_bn_kernel,
        out_shape=jax.ShapeDtypeStruct((nt, r, c2), jnp.float32),
        grid_spec=pltpu.PrefetchScalarGridSpec(
            num_scalar_prefetch=0,
            grid=(g,),
            in_specs=[
                pl.BlockSpec((f, r, c2), lambda i: (i, 0, 0)),
                pl.BlockSpec((1, c2), lambda i: (0, 0)),
                pl.BlockSpec((1, c2), lambda i: (0, 0)),
            ],
            out_specs=pl.BlockSpec((f, r, c2), lambda i: (i, 0, 0)),
        ),
        compiler_params=pltpu.CompilerParams(
            dimension_semantics=("parallel",),
            vmem_limit_bytes=_VMEM_LIMIT_BYTES,
        ),
    )(y_c, scale_c, bias_c)


# ---------------------------------------------------------------------------
# Tiny JAX glue: fold per-chunk partial sums into per-channel scale/bias.
# ---------------------------------------------------------------------------
def _bn_scale_bias(psum, psq, gamma, beta, count, eps):
    c = psum.shape[-1]
    s = jnp.sum(psum.reshape(-1, c), axis=0)
    q = jnp.sum(psq.reshape(-1, c), axis=0)
    mean = s / count
    var = jnp.maximum(q / count - mean * mean, 0.0)   # clamp: f32 cancellation guard
    scale = gamma * jax.lax.rsqrt(var + eps)
    bias = beta - mean * scale
    return scale.reshape(1, c), bias.reshape(1, c)


# ---------------------------------------------------------------------------
# Forward pass
# ---------------------------------------------------------------------------
def bottleneck_transform(x, params, *, temp_kernel_size, stride, dim_inner, dim_out,
                         num_groups=1, stride_1x1=False, dilation=1, eps=1e-5):
    """Forward pass of BottleneckTransform. x: (N, C_in, T, H, W) float32."""
    assert num_groups == 1  # TODO(synk): grouped 1x3x3 conv (ResNeXt) not implemented.
    n, cin, t, h, w_sp = x.shape
    str1x1, str3x3 = (stride, 1) if stride_1x1 else (1, stride)
    tk = temp_kernel_size
    pad_t = tk // 2
    c1 = _round_up(dim_inner, _LANE)
    c2 = _round_up(dim_out, _LANE)

    # layout: NCTHW -> channels-last once; stays channels-last across all stages.
    xt = jnp.transpose(x, (0, 2, 3, 4, 1)).astype(jnp.bfloat16)        # (N,T,H,W,Cin)
    xt = xt[:, :, ::str1x1, ::str1x1, :]
    ha, wa = xt.shape[2], xt.shape[3]
    tp = t + 2 * pad_t
    xp = jnp.pad(xt, ((0, 0), (pad_t, pad_t), (0, 0), (0, 0), (0, 0)))
    xp = xp.reshape(n * tp, ha, wa, cin)

    # weights -> channels-last matrices, zero-padded to lane multiples, bf16.
    wa_m = jnp.transpose(params["a"][:, :, :, 0, 0], (2, 1, 0))        # (tk, Cin, di)
    wa_m = jnp.pad(wa_m, ((0, 0), (0, 0), (0, c1 - dim_inner))).astype(jnp.bfloat16)
    wb_m = jnp.transpose(params["b"][:, :, 0], (2, 3, 1, 0)).reshape(9, dim_inner,
                                                                     dim_inner)
    wb_m = jnp.pad(wb_m, ((0, 0), (0, c1 - dim_inner),
                          (0, c1 - dim_inner))).astype(jnp.bfloat16)
    wc_m = jnp.transpose(params["c"][:, :, 0, 0, 0], (1, 0))           # (di, do)
    wc_m = jnp.pad(wc_m, ((0, c1 - dim_inner), (0, c2 - dim_out))).astype(jnp.bfloat16)

    g_a = jnp.pad(params["a_bn_g"], (0, c1 - dim_inner))
    b_a = jnp.pad(params["a_bn_b"], (0, c1 - dim_inner))
    g_b = jnp.pad(params["b_bn_g"], (0, c1 - dim_inner))
    b_b = jnp.pad(params["b_bn_b"], (0, c1 - dim_inner))
    g_c = jnp.pad(params["c_bn_g"], (0, c2 - dim_out))
    b_c = jnp.pad(params["c_bn_b"], (0, c2 - dim_out))

    # stage a: Tx1x1 conv (+ partial batch stats).
    y_a, psum_a, psq_a = _stage_a(xp, wa_m, n=n, ta=t, tp=tp, tk=tk)
    scale_a, bias_a = _bn_scale_bias(psum_a, psq_a, g_a, b_a,
                                     float(n * t * ha * wa), eps)

    # stage b: fused BN_a+ReLU + 1x3x3 conv (+ partial batch stats).
    (y_b, psum_b, psq_b), (ho, wo) = _stage_b(y_a, scale_a, bias_a, wb_m,
                                              stride=str3x3, dilation=dilation)
    count_b = float(n * t * ho * wo)
    scale_b, bias_b = _bn_scale_bias(psum_b, psq_b, g_b, b_b, count_b, eps)

    # stage c: fused BN_b+ReLU + 1x1x1 conv (+ partial batch stats).
    y_c, psum_c, psq_c = _stage_c(y_b, scale_b, bias_b, wc_m)
    scale_c, bias_c = _bn_scale_bias(psum_c, psq_c, g_c, b_c, count_b, eps)

    # final standalone BN (no ReLU).
    out = _final_bn(y_c, scale_c, bias_c)                              # (NT, HoWo, c2)

    out = out.reshape(n, t, ho, wo, c2)[..., :dim_out]
    return jnp.transpose(out, (0, 4, 1, 2, 3))                         # (N, do, T, Ho, Wo)


# ---------------------------------------------------------------------------
# Deterministic parameter init (shapes from BottleneckTransform.__init__)
# ---------------------------------------------------------------------------
def init_params(key, dim_in, dim_inner, dim_out, temp_kernel_size):
    k1, k2, k3 = jax.random.split(key, 3)
    return {
        "a": 0.1 * jax.random.normal(
            k1, (dim_inner, dim_in, temp_kernel_size, 1, 1), jnp.float32),
        "a_bn_g": jnp.ones((dim_inner,), jnp.float32),
        "a_bn_b": jnp.zeros((dim_inner,), jnp.float32),
        "b": 0.1 * jax.random.normal(k2, (dim_inner, dim_inner, 1, 3, 3), jnp.float32),
        "b_bn_g": jnp.ones((dim_inner,), jnp.float32),
        "b_bn_b": jnp.zeros((dim_inner,), jnp.float32),
        "c": 0.1 * jax.random.normal(k3, (dim_out, dim_inner, 1, 1, 1), jnp.float32),
        "c_bn_g": jnp.ones((dim_out,), jnp.float32),
        "c_bn_b": jnp.zeros((dim_out,), jnp.float32),
    }


if __name__ == "__main__":
    # small config: N=2, dim_in=4, T=4, H=W=8, dim_inner=8, dim_out=16, tk=3, stride=1
    N, dim_in, T, H, W = 2, 4, 4, 8, 8
    dim_inner, dim_out = 8, 16
    temp_kernel_size, stride = 3, 1

    key = jax.random.PRNGKey(0)
    kx, kp = jax.random.split(key)
    x = jax.random.normal(kx, (N, dim_in, T, H, W), jnp.float32)
    params = init_params(kp, dim_in, dim_inner, dim_out, temp_kernel_size)

    fwd = jax.jit(functools.partial(
        bottleneck_transform,
        temp_kernel_size=temp_kernel_size, stride=stride,
        dim_inner=dim_inner, dim_out=dim_out,
        num_groups=1, stride_1x1=False, dilation=1, eps=1e-5))

    out = fwd(x, params)
    jax.block_until_ready(out)
    assert out.shape == (N, dim_out, T, H, W), out.shape
    assert bool(jnp.all(jnp.isfinite(out)))
    print("KERNEL_OK")
</pallas_src>

<mosaic_0001>
module attributes {stable_mosaic.version = 11 : i64} {
  func.func @_stage_a_kernel(%arg0: i32, %arg1: i32, %arg2: i32, %arg3: memref<1x8x8x4xbf16, #tpu.memory_space<vmem>>, %arg4: memref<1x4x128xbf16, #tpu.memory_space<vmem>>, %arg5: memref<1x8x8x128xbf16, #tpu.memory_space<vmem>>, %arg6: memref<1x1x128xf32, #tpu.memory_space<vmem>>, %arg7: memref<1x1x128xf32, #tpu.memory_space<vmem>>, %arg8: memref<64x128xf32, #tpu.memory_space<vmem>>) attributes {dimension_semantics = [#tpu.dimension_semantics<parallel>, #tpu.dimension_semantics<parallel>, #tpu.dimension_semantics<arbitrary>], iteration_bounds = array<i64: 2, 4, 3>, scalar_prefetch = 0 : i64, scratch_operands = 1 : i64, tpu.core_type = #tpu.core_type<tc>, window_params = [{transform_indices = @transform_0, window_bounds = array<i64: 1, 8, 8, 4>}, {transform_indices = @transform_1, window_bounds = array<i64: 1, 4, 128>}, {transform_indices = @transform_2, window_bounds = array<i64: 1, 8, 8, 128>}, {transform_indices = @transform_3, window_bounds = array<i64: 1, 1, 128>}, {transform_indices = @transform_4, window_bounds = array<i64: 1, 1, 128>}]} {
    %c0_i32 = arith.constant 0 : i32
    %0 = arith.cmpi eq, %arg2, %c0_i32 : i32
    %1 = arith.extui %0 : i1 to i32
    %c0_i32_0 = arith.constant 0 : i32
    %2 = arith.cmpi ne, %1, %c0_i32_0 : i32
    scf.if %2 {
      %cst_12 = arith.constant 0.000000e+00 : f32
      %15 = vector.broadcast %cst_12 : f32 to vector<64x128xf32>
      %c0_13 = arith.constant 0 : index
      %c0_14 = arith.constant 0 : index
      %16 = vector.load %arg8[%c0_13, %c0_14] : memref<64x128xf32, #tpu.memory_space<vmem>>, vector<64x128xf32>
      tpu.vector_store %arg8[%c0_13, %c0_14], %15 {strides = array<i32>} : memref<64x128xf32, #tpu.memory_space<vmem>>, vector<64x128xf32>,
    } else {
    }
    %c0 = arith.constant 0 : index
    %c0_1 = arith.constant 0 : index
    %c0_2 = arith.constant 0 : index
    %c0_3 = arith.constant 0 : index
    %3 = vector.load %arg3[%c0, %c0_1, %c0_2, %c0_3] : memref<1x8x8x4xbf16, #tpu.memory_space<vmem>>, vector<1x8x8x4xbf16>
    %4 = vector.shape_cast %3 : vector<1x8x8x4xbf16> to vector<8x8x4xbf16>
    %5 = vector.shape_cast %4 : vector<8x8x4xbf16> to vector<64x4xbf16>
    %c0_4 = arith.constant 0 : index
    %c0_5 = arith.constant 0 : index
    %6 = vector.load %arg8[%c0_4, %c0_5] : memref<64x128xf32, #tpu.memory_space<vmem>>, vector<64x128xf32>
    %c0_6 = arith.constant 0 : index
    %c0_7 = arith.constant 0 : index
    %c0_8 = arith.constant 0 : index
    %7 = vector.load %arg4[%c0_6, %c0_7, %c0_8] : memref<1x4x128xbf16, #tpu.memory_space<vmem>>, vector<1x4x128xbf16>
    %8 = vector.shape_cast %7 : vector<1x4x128xbf16> to vector<4x128xbf16>
    %cst = arith.constant dense<0.000000e+00> : vector<64x128xf32>
    %9 = tpu.matmul %5, %8, %cst {dimension_numbers = #tpu.dot_dimension_numbers<[1], [0], [0], [1], [0, 0, 1, 1], [], []>} : vector<64x4xbf16>, vector<4x128xbf16>, vector<64x128xf32> -> vector<64x128xf32>
    %10 = arith.addf %6, %9 : vector<64x128xf32>
    %c0_9 = arith.constant 0 : index
    %c0_10 = arith.constant 0 : index
    %11 = vector.load %arg8[%c0_9, %c0_10] : memref<64x128xf32, #tpu.memory_space<vmem>>, vector<64x128xf32>
    tpu.vector_store %arg8[%c0_9, %c0_10], %10 {strides = array<i32>} : memref<64x128xf32, #tpu.memory_space<vmem>>, vector<64x128xf32>,
    %c2_i32 = arith.constant 2 : i32
    %12 = arith.cmpi eq, %arg2, %c2_i32 : i32
    %13 = arith.extui %12 : i1 to i32
    %c0_i32_11 = arith.constant 0 : i32
    %14 = arith.cmpi ne, %13, %c0_i32_11 : i32
    scf.if %14 {
      %c0_12 = arith.constant 0 : index
      %c0_13 = arith.constant 0 : index
      %15 = vector.load %arg8[%c0_12, %c0_13] : memref<64x128xf32, #tpu.memory_space<vmem>>, vector<64x128xf32>
      %16 = vector.shape_cast %15 : vector<64x128xf32> to vector<8x8x128xf32>
      %17 = arith.truncf %16 : vector<8x8x128xf32> to vector<8x8x128xbf16>
      %c0_14 = arith.constant 0 : index
      %c0_15 = arith.constant 0 : index
      %c0_16 = arith.constant 0 : index
      %c0_17 = arith.constant 0 : index
      %18 = vector.load %arg5[%c0_14, %c0_15, %c0_16, %c0_17] : memref<1x8x8x128xbf16, #tpu.memory_space<vmem>>, vector<1x8x8x128xbf16>
      %19 = vector.shape_cast %18 : vector<1x8x8x128xbf16> to vector<8x8x128xbf16>
      %20 = vector.shape_cast %17 : vector<8x8x128xbf16> to vector<1x8x8x128xbf16>
      tpu.vector_store %arg5[%c0_14, %c0_15, %c0_16, %c0_17], %20 {strides = array<i32>} : memref<1x8x8x128xbf16, #tpu.memory_space<vmem>>, vector<1x8x8x128xbf16>,
      %cst_18 = arith.constant dense<0.000000e+00> : vector<128xf32>
      %21 = vector.multi_reduction <add>, %15, %cst_18 [0] : vector<64x128xf32> to vector<128xf32>
      %22 = vector.shape_cast %21 : vector<128xf32> to vector<1x128xf32>
      %c0_19 = arith.constant 0 : index
      %c0_20 = arith.constant 0 : index
      %c0_21 = arith.constant 0 : index
      %23 = vector.load %arg6[%c0_19, %c0_20, %c0_21] : memref<1x1x128xf32, #tpu.memory_space<vmem>>, vector<1x1x128xf32>
      %24 = vector.shape_cast %23 : vector<1x1x128xf32> to vector<1x128xf32>
      %25 = vector.shape_cast %22 : vector<1x128xf32> to vector<1x1x128xf32>
      tpu.vector_store %arg6[%c0_19, %c0_20, %c0_21], %25 {strides = array<i32>} : memref<1x1x128xf32, #tpu.memory_space<vmem>>, vector<1x1x128xf32>,
      %26 = arith.mulf %15, %15 : vector<64x128xf32>
      %cst_22 = arith.constant dense<0.000000e+00> : vector<128xf32>
      %27 = vector.multi_reduction <add>, %26, %cst_22 [0] : vector<64x128xf32> to vector<128xf32>
      %28 = vector.shape_cast %27 : vector<128xf32> to vector<1x128xf32>
      %c0_23 = arith.constant 0 : index
      %c0_24 = arith.constant 0 : index
      %c0_25 = arith.constant 0 : index
      %29 = vector.load %arg7[%c0_23, %c0_24, %c0_25] : memref<1x1x128xf32, #tpu.memory_space<vmem>>, vector<1x1x128xf32>
      %30 = vector.shape_cast %29 : vector<1x1x128xf32> to vector<1x128xf32>
      %31 = vector.shape_cast %28 : vector<1x128xf32> to vector<1x1x128xf32>
      tpu.vector_store %arg7[%c0_23, %c0_24, %c0_25], %31 {strides = array<i32>} : memref<1x1x128xf32, #tpu.memory_space<vmem>>, vector<1x1x128xf32>,
    } else {
    }
    return
  }
  func.func @transform_0(%arg0: i32, %arg1: i32, %arg2: i32) -> (i32, i32, i32, i32) {
    %c6_i32 = arith.constant 6 : i32
    %0 = arith.muli %arg0, %c6_i32 : i32
    %1 = arith.addi %0, %arg1 : i32
    %2 = arith.addi %1, %arg2 : i32
    %c0_i32 = arith.constant 0 : i32
    %c0_i32_0 = arith.constant 0 : i32
    %c0_i32_1 = arith.constant 0 : i32
    %c0_i32_2 = arith.constant 0 : i32
    return %2, %c0_i32, %c0_i32_0, %c0_i32_1 : i32, i32, i32, i32
  }
  func.func @transform_1(%arg0: i32, %arg1: i32, %arg2: i32) -> (i32, i32, i32) {
    %c0_i32 = arith.constant 0 : i32
    %c0_i32_0 = arith.constant 0 : i32
    %c0_i32_1 = arith.constant 0 : i32
    return %arg2, %c0_i32, %c0_i32_0 : i32, i32, i32
  }
  func.func @transform_2(%arg0: i32, %arg1: i32, %arg2: i32) -> (i32, i32, i32, i32) {
    %c4_i32 = arith.constant 4 : i32
    %0 = arith.muli %arg0, %c4_i32 : i32
    %1 = arith.addi %0, %arg1 : i32
    %c0_i32 = arith.constant 0 : i32
    %c0_i32_0 = arith.constant 0 : i32
    %c0_i32_1 = arith.constant 0 : i32
    %c0_i32_2 = arith.constant 0 : i32
    return %1, %c0_i32, %c0_i32_0, %c0_i32_1 : i32, i32, i32, i32
  }
  func.func @transform_3(%arg0: i32, %arg1: i32, %arg2: i32) -> (i32, i32, i32) {
    %c4_i32 = arith.constant 4 : i32
    %0 = arith.muli %arg0, %c4_i32 : i32
    %1 = arith.addi %0, %arg1 : i32
    %c0_i32 = arith.constant 0 : i32
    %c0_i32_0 = arith.constant 0 : i32
    %c0_i32_1 = arith.constant 0 : i32
    return %1, %c0_i32, %c0_i32_0 : i32, i32, i32
  }
  func.func @transform_4(%arg0: i32, %arg1: i32, %arg2: i32) -> (i32, i32, i32) {
    %c4_i32 = arith.constant 4 : i32
    %0 = arith.muli %arg0, %c4_i32 : i32
    %1 = arith.addi %0, %arg1 : i32
    %c0_i32 = arith.constant 0 : i32
    %c0_i32_0 = arith.constant 0 : i32
    %c0_i32_1 = arith.constant 0 : i32
    return %1, %c0_i32, %c0_i32_0 : i32, i32, i32
  }
}

module attributes {stable_mosaic.version = 11 : i64} {
  func.func @_stage_b_kernel(%arg0: i32, %arg1: memref<1x8x8x128xbf16, #tpu.memory_space<vmem>>, %arg2: memref<1x128xf32, #tpu.memory_space<vmem>>, %arg3: memref<1x128xf32, #tpu.memory_space<vmem>>, %arg4: memref<9x128x128xbf16, #tpu.memory_space<vmem>>, %arg5: memref<1x64x128xbf16, #tpu.memory_space<vmem>>, %arg6: memref<1x1x128xf32, #tpu.memory_space<vmem>>, %arg7: memref<1x1x128xf32, #tpu.memory_space<vmem>>, %arg8: memref<10x10x128xbf16, #tpu.memory_space<vmem>>) attributes {dimension_semantics = [#tpu.dimension_semantics<parallel>], iteration_bounds = array<i64: 8>, scalar_prefetch = 0 : i64, scratch_operands = 1 : i64, tpu.core_type = #tpu.core_type<tc>, window_params = [{transform_indices = @transform_0, window_bounds = array<i64: 1, 8, 8, 128>}, {pipeline_mode = #tpu.pipeline_mode<synchronous>, transform_indices = @transform_1, window_bounds = array<i64: 1, 128>}, {pipeline_mode = #tpu.pipeline_mode<synchronous>, transform_indices = @transform_2, window_bounds = array<i64: 1, 128>}, {pipeline_mode = #tpu.pipeline_mode<synchronous>, transform_indices = @transform_3, window_bounds = array<i64: 9, 128, 128>}, {transform_indices = @transform_4, window_bounds = array<i64: 1, 64, 128>}, {transform_indices = @transform_5, window_bounds = array<i64: 1, 1, 128>}, {transform_indices = @transform_6, window_bounds = array<i64: 1, 1, 128>}]} {
    %cst = arith.constant 0.000000e+00 : bf16
    %0 = vector.broadcast %cst : bf16 to vector<10x10x128xbf16>
    %c0 = arith.constant 0 : index
    %c0_0 = arith.constant 0 : index
    %c0_1 = arith.constant 0 : index
    %1 = vector.load %arg8[%c0, %c0_0, %c0_1] : memref<10x10x128xbf16, #tpu.memory_space<vmem>>, vector<10x10x128xbf16>
    tpu.vector_store %arg8[%c0, %c0_0, %c0_1], %0 {strides = array<i32>} : memref<10x10x128xbf16, #tpu.memory_space<vmem>>, vector<10x10x128xbf16>,
    %c0_2 = arith.constant 0 : index
    %c0_3 = arith.constant 0 : index
    %c0_4 = arith.constant 0 : index
    %c0_5 = arith.constant 0 : index
    %2 = vector.load %arg1[%c0_2, %c0_3, %c0_4, %c0_5] : memref<1x8x8x128xbf16, #tpu.memory_space<vmem>>, vector<1x8x8x128xbf16>
    %3 = vector.shape_cast %2 : vector<1x8x8x128xbf16> to vector<8x8x128xbf16>
    %4 = arith.extf %3 : vector<8x8x128xbf16> to vector<8x8x128xf32>
    %c0_6 = arith.constant 0 : index
    %c0_7 = arith.constant 0 : index
    %5 = vector.load %arg2[%c0_6, %c0_7] : memref<1x128xf32, #tpu.memory_space<vmem>>, vector<1x128xf32>
    %6 = vector.shape_cast %5 : vector<1x128xf32> to vector<128xf32>
    %7 = vector.shape_cast %6 : vector<128xf32> to vector<1x1x128xf32>
    %8 = vector.broadcast %7 : vector<1x1x128xf32> to vector<8x8x128xf32>
    %9 = arith.mulf %4, %8 : vector<8x8x128xf32>
    %c0_8 = arith.constant 0 : index
    %c0_9 = arith.constant 0 : index
    %10 = vector.load %arg3[%c0_8, %c0_9] : memref<1x128xf32, #tpu.memory_space<vmem>>, vector<1x128xf32>
    %11 = vector.shape_cast %10 : vector<1x128xf32> to vector<128xf32>
    %12 = vector.shape_cast %11 : vector<128xf32> to vector<1x1x128xf32>
    %13 = vector.broadcast %12 : vector<1x1x128xf32> to vector<8x8x128xf32>
    %14 = arith.addf %9, %13 : vector<8x8x128xf32>
    %cst_10 = arith.constant 0.000000e+00 : f32
    %15 = vector.broadcast %cst_10 : f32 to vector<8x8x128xf32>
    %16 = arith.maximumf %14, %15 : vector<8x8x128xf32>
    %17 = arith.truncf %16 : vector<8x8x128xf32> to vector<8x8x128xbf16>
    %c1 = arith.constant 1 : index
    %c1_11 = arith.constant 1 : index
    %c0_12 = arith.constant 0 : index
    %18 = vector.load %arg8[%c1, %c1_11, %c0_12] : memref<10x10x128xbf16, #tpu.memory_space<vmem>>, vector<8x8x128xbf16>
    tpu.vector_store %arg8[%c1, %c1_11, %c0_12], %17 {strides = array<i32>} : memref<10x10x128xbf16, #tpu.memory_space<vmem>>, vector<8x8x128xbf16>,
    %cst_13 = arith.constant 0.000000e+00 : f32
    %19 = vector.broadcast %cst_13 : f32 to vector<64x128xf32>
    %c0_14 = arith.constant 0 : index
    %c0_15 = arith.constant 0 : index
    %c0_16 = arith.constant 0 : index
    %20 = vector.load %arg8[%c0_14, %c0_15, %c0_16] : memref<10x10x128xbf16, #tpu.memory_space<vmem>>, vector<8x8x128xbf16>
    %21 = vector.shape_cast %20 : vector<8x8x128xbf16> to vector<64x128xbf16>
    %c0_17 = arith.constant 0 : index
    %c0_18 = arith.constant 0 : index
    %c0_19 = arith.constant 0 : index
    %22 = vector.load %arg4[%c0_17, %c0_18, %c0_19] : memref<9x128x128xbf16, #tpu.memory_space<vmem>>, vector<1x128x128xbf16>
    %23 = vector.shape_cast %22 : vector<1x128x128xbf16> to vector<128x128xbf16>
    %cst_20 = arith.constant dense<0.000000e+00> : vector<64x128xf32>
    %24 = tpu.matmul %21, %23, %cst_20 {dimension_numbers = #tpu.dot_dimension_numbers<[1], [0], [0], [1], [0, 0, 1, 1], [], []>} : vector<64x128xbf16>, vector<128x128xbf16>, vector<64x128xf32> -> vector<64x128xf32>
    %25 = arith.addf %19, %24 : vector<64x128xf32>
    %c0_21 = arith.constant 0 : index
    %c1_22 = arith.constant 1 : index
    %c0_23 = arith.constant 0 : index
    %26 = vector.load %arg8[%c0_21, %c1_22, %c0_23] : memref<10x10x128xbf16, #tpu.memory_space<vmem>>, vector<8x8x128xbf16>
    %27 = vector.shape_cast %26 : vector<8x8x128xbf16> to vector<64x128xbf16>
    %c1_24 = arith.constant 1 : index
    %c0_25 = arith.constant 0 : index
    %c0_26 = arith.constant 0 : index
    %28 = vector.load %arg4[%c1_24, %c0_25, %c0_26] : memref<9x128x128xbf16, #tpu.memory_space<vmem>>, vector<1x128x128xbf16>
    %29 = vector.shape_cast %28 : vector<1x128x128xbf16> to vector<128x128xbf16>
    %cst_27 = arith.constant dense<0.000000e+00> : vector<64x128xf32>
    %30 = tpu.matmul %27, %29, %cst_27 {dimension_numbers = #tpu.dot_dimension_numbers<[1], [0], [0], [1], [0, 0, 1, 1], [], []>} : vector<64x128xbf16>, vector<128x128xbf16>, vector<64x128xf32> -> vector<64x128xf32>
    %31 = arith.addf %25, %30 : vector<64x128xf32>
    %c0_28 = arith.constant 0 : index
    %c2 = arith.constant 2 : index
    %c0_29 = arith.constant 0 : index
    %32 = vector.load %arg8[%c0_28, %c2, %c0_29] : memref<10x10x128xbf16, #tpu.memory_space<vmem>>, vector<8x8x128xbf16>
    %33 = vector.shape_cast %32 : vector<8x8x128xbf16> to vector<64x128xbf16>
    %c2_30 = arith.constant 2 : index
    %c0_31 = arith.constant 0 : index
    %c0_32 = arith.constant 0 : index
    %34 = vector.load %arg4[%c2_30, %c0_31, %c0_32] : memref<9x128x128xbf16, #tpu.memory_space<vmem>>, vector<1x128x128xbf16>
    %35 = vector.shape_cast %34 : vector<1x128x128xbf16> to vector<128x128xbf16>
    %cst_33 = arith.constant dense<0.000000e+00> : vector<64x128xf32>
    %36 = tpu.matmul %33, %35, %cst_33 {dimension_numbers = #tpu.dot_dimension_numbers<[1], [0], [0], [1], [0, 0, 1, 1], [], []>} : vector<64x128xbf16>, vector<128x128xbf16>, vector<64x128xf32> -> vector<64x128xf32>
    %37 = arith.addf %31, %36 : vector<64x128xf32>
    %c1_34 = arith.constant 1 : index
    %c0_35 = arith.constant 0 : index
    %c0_36 = arith.constant 0 : index
    %38 = vector.load %arg8[%c1_34, %c0_35, %c0_36] : memref<10x10x128xbf16, #tpu.memory_space<vmem>>, vector<8x8x128xbf16>
    %39 = vector.shape_cast %38 : vector<8x8x128xbf16> to vector<64x128xbf16>
    %c3 = arith.constant 3 : index
    %c0_37 = arith.constant 0 : index
    %c0_38 = arith.constant 0 : index
    %40 = vector.load %arg4[%c3, %c0_37, %c0_38] : memref<9x128x128xbf16, #tpu.memory_space<vmem>>, vector<1x128x128xbf16>
    %41 = vector.shape_cast %40 : vector<1x128x128xbf16> to vector<128x128xbf16>
    %cst_39 = arith.constant dense<0.000000e+00> : vector<64x128xf32>
    %42 = tpu.matmul %39, %41, %cst_39 {dimension_numbers = #tpu.dot_dimension_numbers<[1], [0], [0], [1], [0, 0, 1, 1], [], []>} : vector<64x128xbf16>, vector<128x128xbf16>, vector<64x128xf32> -> vector<64x128xf32>
    %43 = arith.addf %37, %42 : vector<64x128xf32>
    %c1_40 = arith.constant 1 : index
    %c1_41 = arith.constant 1 : index
    %c0_42 = arith.constant 0 : index
    %44 = vector.load %arg8[%c1_40, %c1_41, %c0_42] : memref<10x10x128xbf16, #tpu.memory_space<vmem>>, vector<8x8x128xbf16>
    %45 = vector.shape_cast %44 : vector<8x8x128xbf16> to vector<64x128xbf16>
    %c4 = arith.constant 4 : index
    %c0_43 = arith.constant 0 : index
    %c0_44 = arith.constant 0 : index
    %46 = vector.load %arg4[%c4, %c0_43, %c0_44] : memref<9x128x128xbf16, #tpu.memory_space<vmem>>, vector<1x128x128xbf16>
    %47 = vector.shape_cast %46 : vector<1x128x128xbf16> to vector<128x128xbf16>
    %cst_45 = arith.constant dense<0.000000e+00> : vector<64x128xf32>
    %48 = tpu.matmul %45, %47, %cst_45 {dimension_numbers = #tpu.dot_dimension_numbers<[1], [0], [0], [1], [0, 0, 1, 1], [], []>} : vector<64x128xbf16>, vector<128x128xbf16>, vector<64x128xf32> -> vector<64x128xf32>
    %49 = arith.addf %43, %48 : vector<64x128xf32>
    %c1_46 = arith.constant 1 : index
    %c2_47 = arith.constant 2 : index
    %c0_48 = arith.constant 0 : index
    %50 = vector.load %arg8[%c1_46, %c2_47, %c0_48] : memref<10x10x128xbf16, #tpu.memory_space<vmem>>, vector<8x8x128xbf16>
    %51 = vector.shape_cast %50 : vector<8x8x128xbf16> to vector<64x128xbf16>
    %c5 = arith.constant 5 : index
    %c0_49 = arith.constant 0 : index
    %c0_50 = arith.constant 0 : index
    %52 = vector.load %arg4[%c5, %c0_49, %c0_50] : memref<9x128x128xbf16, #tpu.memory_space<vmem>>, vector<1x128x128xbf16>
    %53 = vector.shape_cast %52 : vector<1x128x128xbf16> to vector<128x128xbf16>
    %cst_51 = arith.constant dense<0.000000e+00> : vector<64x128xf32>
    %54 = tpu.matmul %51, %53, %cst_51 {dimension_numbers = #tpu.dot_dimension_numbers<[1], [0], [0], [1], [0, 0, 1, 1], [], []>} : vector<64x128xbf16>, vector<128x128xbf16>, vector<64x128xf32> -> vector<64x128xf32>
    %55 = arith.addf %49, %54 : vector<64x128xf32>
    %c2_52 = arith.constant 2 : index
    %c0_53 = arith.constant 0 : index
    %c0_54 = arith.constant 0 : index
    %56 = vector.load %arg8[%c2_52, %c0_53, %c0_54] : memref<10x10x128xbf16, #tpu.memory_space<vmem>>, vector<8x8x128xbf16>
    %57 = vector.shape_cast %56 : vector<8x8x128xbf16> to vector<64x128xbf16>
    %c6 = arith.constant 6 : index
    %c0_55 = arith.constant 0 : index
    %c0_56 = arith.constant 0 : index
    %58 = vector.load %arg4[%c6, %c0_55, %c0_56] : memref<9x128x128xbf16, #tpu.memory_space<vmem>>, vector<1x128x128xbf16>
    %59 = vector.shape_cast %58 : vector<1x128x128xbf16> to vector<128x128xbf16>
    %cst_57 = arith.constant dense<0.000000e+00> : vector<64x128xf32>
    %60 = tpu.matmul %57, %59, %cst_57 {dimension_numbers = #tpu.dot_dimension_numbers<[1], [0], [0], [1], [0, 0, 1, 1], [], []>} : vector<64x128xbf16>, vector<128x128xbf16>, vector<64x128xf32> -> vector<64x128xf32>
    %61 = arith.addf %55, %60 : vector<64x128xf32>
    %c2_58 = arith.constant 2 : index
    %c1_59 = arith.constant 1 : index
    %c0_60 = arith.constant 0 : index
    %62 = vector.load %arg8[%c2_58, %c1_59, %c0_60] : memref<10x10x128xbf16, #tpu.memory_space<vmem>>, vector<8x8x128xbf16>
    %63 = vector.shape_cast %62 : vector<8x8x128xbf16> to vector<64x128xbf16>
    %c7 = arith.constant 7 : index
    %c0_61 = arith.constant 0 : index
    %c0_62 = arith.constant 0 : index
    %64 = vector.load %arg4[%c7, %c0_61, %c0_62] : memref<9x128x128xbf16, #tpu.memory_space<vmem>>, vector<1x128x128xbf16>
    %65 = vector.shape_cast %64 : vector<1x128x128xbf16> to vector<128x128xbf16>
    %cst_63 = arith.constant dense<0.000000e+00> : vector<64x128xf32>
    %66 = tpu.matmul %63, %65, %cst_63 {dimension_numbers = #tpu.dot_dimension_numbers<[1], [0], [0], [1], [0, 0, 1, 1], [], []>} : vector<64x128xbf16>, vector<128x128xbf16>, vector<64x128xf32> -> vector<64x128xf32>
    %67 = arith.addf %61, %66 : vector<64x128xf32>
    %c2_64 = arith.constant 2 : index
    %c2_65 = arith.constant 2 : index
    %c0_66 = arith.constant 0 : index
    %68 = vector.load %arg8[%c2_64, %c2_65, %c0_66] : memref<10x10x128xbf16, #tpu.memory_space<vmem>>, vector<8x8x128xbf16>
    %69 = vector.shape_cast %68 : vector<8x8x128xbf16> to vector<64x128xbf16>
    %c8 = arith.constant 8 : index
    %c0_67 = arith.constant 0 : index
    %c0_68 = arith.constant 0 : index
    %70 = vector.load %arg4[%c8, %c0_67, %c0_68] : memref<9x128x128xbf16, #tpu.memory_space<vmem>>, vector<1x128x128xbf16>
    %71 = vector.shape_cast %70 : vector<1x128x128xbf16> to vector<128x128xbf16>
    %cst_69 = arith.constant dense<0.000000e+00> : vector<64x128xf32>
    %72 = tpu.matmul %69, %71, %cst_69 {dimension_numbers = #tpu.dot_dimension_numbers<[1], [0], [0], [1], [0, 0, 1, 1], [], []>} : vector<64x128xbf16>, vector<128x128xbf16>, vector<64x128xf32> -> vector<64x128xf32>
    %73 = arith.addf %67, %72 : vector<64x128xf32>
    %74 = arith.truncf %73 : vector<64x128xf32> to vector<64x128xbf16>
    %c0_70 = arith.constant 0 : index
    %c0_71 = arith.constant 0 : index
    %c0_72 = arith.constant 0 : index
    %75 = vector.load %arg5[%c0_70, %c0_71, %c0_72] : memref<1x64x128xbf16, #tpu.memory_space<vmem>>, vector<1x64x128xbf16>
    %76 = vector.shape_cast %75 : vector<1x64x128xbf16> to vector<64x128xbf16>
    %77 = vector.shape_cast %74 : vector<64x128xbf16> to vector<1x64x128xbf16>
    tpu.vector_store %arg5[%c0_70, %c0_71, %c0_72], %77 {strides = array<i32>} : memref<1x64x128xbf16, #tpu.memory_space<vmem>>, vector<1x64x128xbf16>,
    %cst_73 = arith.constant dense<0.000000e+00> : vector<128xf32>
    %78 = vector.multi_reduction <add>, %73, %cst_73 [0] : vector<64x128xf32> to vector<128xf32>
    %79 = vector.shape_cast %78 : vector<128xf32> to vector<1x128xf32>
    %c0_74 = arith.constant 0 : index
    %c0_75 = arith.constant 0 : index
    %c0_76 = arith.constant 0 : index
    %80 = vector.load %arg6[%c0_74, %c0_75, %c0_76] : memref<1x1x128xf32, #tpu.memory_space<vmem>>, vector<1x1x128xf32>
    %81 = vector.shape_cast %80 : vector<1x1x128xf32> to vector<1x128xf32>
    %82 = vector.shape_cast %79 : vector<1x128xf32> to vector<1x1x128xf32>
    tpu.vector_store %arg6[%c0_74, %c0_75, %c0_76], %82 {strides = array<i32>} : memref<1x1x128xf32, #tpu.memory_space<vmem>>, vector<1x1x128xf32>,
    %83 = arith.mulf %73, %73 : vector<64x128xf32>
    %cst_77 = arith.constant dense<0.000000e+00> : vector<128xf32>
    %84 = vector.multi_reduction <add>, %83, %cst_77 [0] : vector<64x128xf32> to vector<128xf32>
    %85 = vector.shape_cast %84 : vector<128xf32> to vector<1x128xf32>
    %c0_78 = arith.constant 0 : index
    %c0_79 = arith.constant 0 : index
    %c0_80 = arith.constant 0 : index
    %86 = vector.load %arg7[%c0_78, %c0_79, %c0_80] : memref<1x1x128xf32, #tpu.memory_space<vmem>>, vector<1x1x128xf32>
    %87 = vector.shape_cast %86 : vector<1x1x128xf32> to vector<1x128xf32>
    %88 = vector.shape_cast %85 : vector<1x128xf32> to vector<1x1x128xf32>
    tpu.vector_store %arg7[%c0_78, %c0_79, %c0_80], %88 {strides = array<i32>} : memref<1x1x128xf32, #tpu.memory_space<vmem>>, vector<1x1x128xf32>,
    return
  }
  func.func @transform_0(%arg0: i32) -> (i32, i32, i32, i32) {
    %c0_i32 = arith.constant 0 : i32
    %c0_i32_0 = arith.constant 0 : i32
    %c0_i32_1 = arith.constant 0 : i32
    %c0_i32_2 = arith.constant 0 : i32
    return %arg0, %c0_i32, %c0_i32_0, %c0_i32_1 : i32, i32, i32, i32
  }
  func.func @transform_1(%arg0: i32) -> (i32, i32) {
    %c0_i32 = arith.constant 0 : i32
    %c0_i32_0 = arith.constant 0 : i32
    %c0_i32_1 = arith.constant 0 : i32
    return %c0_i32, %c0_i32_0 : i32, i32
  }
  func.func @transform_2(%arg0: i32) -> (i32, i32) {
    %c0_i32 = arith.constant 0 : i32
    %c0_i32_0 = arith.constant 0 : i32
    %c0_i32_1 = arith.constant 0 : i32
    return %c0_i32, %c0_i32_0 : i32, i32
  }
  func.func @transform_3(%arg0: i32) -> (i32, i32, i32) {
    %c0_i32 = arith.constant 0 : i32
    %c0_i32_0 = arith.constant 0 : i32
    %c0_i32_1 = arith.constant 0 : i32
    %c0_i32_2 = arith.constant 0 : i32
    return %c0_i32, %c0_i32_0, %c0_i32_1 : i32, i32, i32
  }
  func.func @transform_4(%arg0: i32) -> (i32, i32, i32) {
    %c0_i32 = arith.constant 0 : i32
    %c0_i32_0 = arith.constant 0 : i32
    %c0_i32_1 = arith.constant 0 : i32
    return %arg0, %c0_i32, %c0_i32_0 : i32, i32, i32
  }
  func.func @transform_5(%arg0: i32) -> (i32, i32, i32) {
    %c0_i32 = arith.constant 0 : i32
    %c0_i32_0 = arith.constant 0 : i32
    %c0_i32_1 = arith.constant 0 : i32
    return %arg0, %c0_i32, %c0_i32_0 : i32, i32, i32
  }
  func.func @transform_6(%arg0: i32) -> (i32, i32, i32) {
    %c0_i32 = arith.constant 0 : i32
    %c0_i32_0 = arith.constant 0 : i32
    %c0_i32_1 = arith.constant 0 : i32
    return %arg0, %c0_i32, %c0_i32_0 : i32, i32, i32
  }
}

module attributes {stable_mosaic.version = 11 : i64} {
  func.func @_stage_c_kernel(%arg0: i32, %arg1: memref<8x64x128xbf16, #tpu.memory_space<vmem>>, %arg2: memref<1x128xf32, #tpu.memory_space<vmem>>, %arg3: memref<1x128xf32, #tpu.memory_space<vmem>>, %arg4: memref<128x128xbf16, #tpu.memory_space<vmem>>, %arg5: memref<8x64x128xbf16, #tpu.memory_space<vmem>>, %arg6: memref<1x1x128xf32, #tpu.memory_space<vmem>>, %arg7: memref<1x1x128xf32, #tpu.memory_space<vmem>>) attributes {dimension_semantics = [#tpu.dimension_semantics<parallel>], iteration_bounds = array<i64: 1>, scalar_prefetch = 0 : i64, scratch_operands = 0 : i64, tpu.core_type = #tpu.core_type<tc>, window_params = [{transform_indices = @transform_0, window_bounds = array<i64: 8, 64, 128>}, {pipeline_mode = #tpu.pipeline_mode<synchronous>, transform_indices = @transform_1, window_bounds = array<i64: 1, 128>}, {pipeline_mode = #tpu.pipeline_mode<synchronous>, transform_indices = @transform_2, window_bounds = array<i64: 1, 128>}, {pipeline_mode = #tpu.pipeline_mode<synchronous>, transform_indices = @transform_3, window_bounds = array<i64: 128, 128>}, {transform_indices = @transform_4, window_bounds = array<i64: 8, 64, 128>}, {transform_indices = @transform_5, window_bounds = array<i64: 1, 1, 128>}, {transform_indices = @transform_6, window_bounds = array<i64: 1, 1, 128>}]} {
    %c0 = arith.constant 0 : index
    %c0_0 = arith.constant 0 : index
    %c0_1 = arith.constant 0 : index
    %0 = vector.load %arg1[%c0, %c0_0, %c0_1] : memref<8x64x128xbf16, #tpu.memory_space<vmem>>, vector<8x64x128xbf16>
    %1 = arith.extf %0 : vector<8x64x128xbf16> to vector<8x64x128xf32>
    %c0_2 = arith.constant 0 : index
    %c0_3 = arith.constant 0 : index
    %2 = vector.load %arg2[%c0_2, %c0_3] : memref<1x128xf32, #tpu.memory_space<vmem>>, vector<1x128xf32>
    %3 = vector.shape_cast %2 : vector<1x128xf32> to vector<128xf32>
    %4 = vector.shape_cast %3 : vector<128xf32> to vector<1x1x128xf32>
    %5 = vector.broadcast %4 : vector<1x1x128xf32> to vector<8x64x128xf32>
    %6 = arith.mulf %1, %5 : vector<8x64x128xf32>
    %c0_4 = arith.constant 0 : index
    %c0_5 = arith.constant 0 : index
    %7 = vector.load %arg3[%c0_4, %c0_5] : memref<1x128xf32, #tpu.memory_space<vmem>>, vector<1x128xf32>
    %8 = vector.shape_cast %7 : vector<1x128xf32> to vector<128xf32>
    %9 = vector.shape_cast %8 : vector<128xf32> to vector<1x1x128xf32>
    %10 = vector.broadcast %9 : vector<1x1x128xf32> to vector<8x64x128xf32>
    %11 = arith.addf %6, %10 : vector<8x64x128xf32>
    %cst = arith.constant 0.000000e+00 : f32
    %12 = vector.broadcast %cst : f32 to vector<8x64x128xf32>
    %13 = arith.maximumf %11, %12 : vector<8x64x128xf32>
    %14 = tpu.iota {dimensions = array<i32: 0>} : vector<8x1x1xi32>
    %c8_i32 = arith.constant 8 : i32
    %15 = arith.muli %arg0, %c8_i32 : i32
    %16 = vector.broadcast %15 : i32 to vector<8x1x1xi32>
    %17 = arith.addi %14, %16 : vector<8x1x1xi32>
    %c8_i32_6 = arith.constant 8 : i32
    %18 = vector.broadcast %c8_i32_6 : i32 to vector<8x1x1xi32>
    %19 = arith.cmpi slt, %17, %18 : vector<8x1x1xi32>
    %cst_7 = arith.constant 0.000000e+00 : f32
    %20 = vector.shape_cast %19 : vector<8x1x1xi1> to vector<8x1x1xi1>
    %21 = vector.broadcast %20 : vector<8x1x1xi1> to vector<8x64x128xi1>
    %22 = vector.broadcast %cst_7 : f32 to vector<8x64x128xf32>
    %23 = arith.select %21, %13, %22 : vector<8x64x128xi1>, vector<8x64x128xf32>
    %24 = vector.shape_cast %23 : vector<8x64x128xf32> to vector<512x128xf32>
    %25 = arith.truncf %24 : vector<512x128xf32> to vector<512x128xbf16>
    %c0_8 = arith.constant 0 : index
    %c0_9 = arith.constant 0 : index
    %26 = vector.load %arg4[%c0_8, %c0_9] : memref<128x128xbf16, #tpu.memory_space<vmem>>, vector<128x128xbf16>
    %cst_10 = arith.constant dense<0.000000e+00> : vector<512x128xf32>
    %27 = tpu.matmul %25, %26, %cst_10 {dimension_numbers = #tpu.dot_dimension_numbers<[1], [0], [0], [1], [0, 0, 1, 1], [], []>} : vector<512x128xbf16>, vector<128x128xbf16>, vector<512x128xf32> -> vector<512x128xf32>
    %28 = vector.shape_cast %27 : vector<512x128xf32> to vector<8x64x128xf32>
    %29 = arith.truncf %28 : vector<8x64x128xf32> to vector<8x64x128xbf16>
    %c0_11 = arith.constant 0 : index
    %c0_12 = arith.constant 0 : index
    %c0_13 = arith.constant 0 : index
    %30 = vector.load %arg5[%c0_11, %c0_12, %c0_13] : memref<8x64x128xbf16, #tpu.memory_space<vmem>>, vector<8x64x128xbf16>
    tpu.vector_store %arg5[%c0_11, %c0_12, %c0_13], %29 {strides = array<i32>} : memref<8x64x128xbf16, #tpu.memory_space<vmem>>, vector<8x64x128xbf16>,
    %cst_14 = arith.constant dense<0.000000e+00> : vector<128xf32>
    %31 = vector.multi_reduction <add>, %27, %cst_14 [0] : vector<512x128xf32> to vector<128xf32>
    %32 = vector.shape_cast %31 : vector<128xf32> to vector<1x128xf32>
    %c0_15 = arith.constant 0 : index
    %c0_16 = arith.constant 0 : index
    %c0_17 = arith.constant 0 : index
    %33 = vector.load %arg6[%c0_15, %c0_16, %c0_17] : memref<1x1x128xf32, #tpu.memory_space<vmem>>, vector<1x1x128xf32>
    %34 = vector.shape_cast %33 : vector<1x1x128xf32> to vector<1x128xf32>
    %35 = vector.shape_cast %32 : vector<1x128xf32> to vector<1x1x128xf32>
    tpu.vector_store %arg6[%c0_15, %c0_16, %c0_17], %35 {strides = array<i32>} : memref<1x1x128xf32, #tpu.memory_space<vmem>>, vector<1x1x128xf32>,
    %36 = arith.mulf %27, %27 : vector<512x128xf32>
    %cst_18 = arith.constant dense<0.000000e+00> : vector<128xf32>
    %37 = vector.multi_reduction <add>, %36, %cst_18 [0] : vector<512x128xf32> to vector<128xf32>
    %38 = vector.shape_cast %37 : vector<128xf32> to vector<1x128xf32>
    %c0_19 = arith.constant 0 : index
    %c0_20 = arith.constant 0 : index
    %c0_21 = arith.constant 0 : index
    %39 = vector.load %arg7[%c0_19, %c0_20, %c0_21] : memref<1x1x128xf32, #tpu.memory_space<vmem>>, vector<1x1x128xf32>
    %40 = vector.shape_cast %39 : vector<1x1x128xf32> to vector<1x128xf32>
    %41 = vector.shape_cast %38 : vector<1x128xf32> to vector<1x1x128xf32>
    tpu.vector_store %arg7[%c0_19, %c0_20, %c0_21], %41 {strides = array<i32>} : memref<1x1x128xf32, #tpu.memory_space<vmem>>, vector<1x1x128xf32>,
    return
  }
  func.func @transform_0(%arg0: i32) -> (i32, i32, i32) {
    %c0_i32 = arith.constant 0 : i32
    %c0_i32_0 = arith.constant 0 : i32
    %c0_i32_1 = arith.constant 0 : i32
    return %arg0, %c0_i32, %c0_i32_0 : i32, i32, i32
  }
  func.func @transform_1(%arg0: i32) -> (i32, i32) {
    %c0_i32 = arith.constant 0 : i32
    %c0_i32_0 = arith.constant 0 : i32
    %c0_i32_1 = arith.constant 0 : i32
    return %c0_i32, %c0_i32_0 : i32, i32
  }
  func.func @transform_2(%arg0: i32) -> (i32, i32) {
    %c0_i32 = arith.constant 0 : i32
    %c0_i32_0 = arith.constant 0 : i32
    %c0_i32_1 = arith.constant 0 : i32
    return %c0_i32, %c0_i32_0 : i32, i32
  }
  func.func @transform_3(%arg0: i32) -> (i32, i32) {
    %c0_i32 = arith.constant 0 : i32
    %c0_i32_0 = arith.constant 0 : i32
    %c0_i32_1 = arith.constant 0 : i32
    return %c0_i32, %c0_i32_0 : i32, i32
  }
  func.func @transform_4(%arg0: i32) -> (i32, i32, i32) {
    %c0_i32 = arith.constant 0 : i32
    %c0_i32_0 = arith.constant 0 : i32
    %c0_i32_1 = arith.constant 0 : i32
    return %arg0, %c0_i32, %c0_i32_0 : i32, i32, i32
  }
  func.func @transform_5(%arg0: i32) -> (i32, i32, i32) {
    %c0_i32 = arith.constant 0 : i32
    %c0_i32_0 = arith.constant 0 : i32
    %c0_i32_1 = arith.constant 0 : i32
    return %arg0, %c0_i32, %c0_i32_0 : i32, i32, i32
  }
  func.func @transform_6(%arg0: i32) -> (i32, i32, i32) {
    %c0_i32 = arith.constant 0 : i32
    %c0_i32_0 = arith.constant 0 : i32
    %c0_i32_1 = arith.constant 0 : i32
    return %arg0, %c0_i32, %c0_i32_0 : i32, i32, i32
  }
}

module attributes {stable_mosaic.version = 11 : i64} {
  func.func @_final_bn_kernel(%arg0: i32, %arg1: memref<8x64x128xbf16, #tpu.memory_space<vmem>>, %arg2: memref<1x128xf32, #tpu.memory_space<vmem>>, %arg3: memref<1x128xf32, #tpu.memory_space<vmem>>, %arg4: memref<8x64x128xf32, #tpu.memory_space<vmem>>) attributes {dimension_semantics = [#tpu.dimension_semantics<parallel>], iteration_bounds = array<i64: 1>, scalar_prefetch = 0 : i64, scratch_operands = 0 : i64, tpu.core_type = #tpu.core_type<tc>, window_params = [{transform_indices = @transform_0, window_bounds = array<i64: 8, 64, 128>}, {pipeline_mode = #tpu.pipeline_mode<synchronous>, transform_indices = @transform_1, window_bounds = array<i64: 1, 128>}, {pipeline_mode = #tpu.pipeline_mode<synchronous>, transform_indices = @transform_2, window_bounds = array<i64: 1, 128>}, {transform_indices = @transform_3, window_bounds = array<i64: 8, 64, 128>}]} {
    %c0 = arith.constant 0 : index
    %c0_0 = arith.constant 0 : index
    %c0_1 = arith.constant 0 : index
    %0 = vector.load %arg1[%c0, %c0_0, %c0_1] : memref<8x64x128xbf16, #tpu.memory_space<vmem>>, vector<8x64x128xbf16>
    %1 = arith.extf %0 : vector<8x64x128xbf16> to vector<8x64x128xf32>
    %c0_2 = arith.constant 0 : index
    %c0_3 = arith.constant 0 : index
    %2 = vector.load %arg2[%c0_2, %c0_3] : memref<1x128xf32, #tpu.memory_space<vmem>>, vector<1x128xf32>
    %3 = vector.shape_cast %2 : vector<1x128xf32> to vector<128xf32>
    %4 = vector.shape_cast %3 : vector<128xf32> to vector<1x1x128xf32>
    %5 = vector.broadcast %4 : vector<1x1x128xf32> to vector<8x64x128xf32>
    %6 = arith.mulf %1, %5 : vector<8x64x128xf32>
    %c0_4 = arith.constant 0 : index
    %c0_5 = arith.constant 0 : index
    %7 = vector.load %arg3[%c0_4, %c0_5] : memref<1x128xf32, #tpu.memory_space<vmem>>, vector<1x128xf32>
    %8 = vector.shape_cast %7 : vector<1x128xf32> to vector<128xf32>
    %9 = vector.shape_cast %8 : vector<128xf32> to vector<1x1x128xf32>
    %10 = vector.broadcast %9 : vector<1x1x128xf32> to vector<8x64x128xf32>
    %11 = arith.addf %6, %10 : vector<8x64x128xf32>
    %c0_6 = arith.constant 0 : index
    %c0_7 = arith.constant 0 : index
    %c0_8 = arith.constant 0 : index
    %12 = vector.load %arg4[%c0_6, %c0_7, %c0_8] : memref<8x64x128xf32, #tpu.memory_space<vmem>>, vector<8x64x128xf32>
    tpu.vector_store %arg4[%c0_6, %c0_7, %c0_8], %11 {strides = array<i32>} : memref<8x64x128xf32, #tpu.memory_space<vmem>>, vector<8x64x128xf32>,
    return
  }
  func.func @transform_0(%arg0: i32) -> (i32, i32, i32) {
    %c0_i32 = arith.constant 0 : i32
    %c0_i32_0 = arith.constant 0 : i32
    %c0_i32_1 = arith.constant 0 : i32
    return %arg0, %c0_i32, %c0_i32_0 : i32, i32, i32
  }
  func.func @transform_1(%arg0: i32) -> (i32, i32) {
    %c0_i32 = arith.constant 0 : i32
    %c0_i32_0 = arith.constant 0 : i32
    %c0_i32_1 = arith.constant 0 : i32
    return %c0_i32, %c0_i32_0 : i32, i32
  }
  func.func @transform_2(%arg0: i32) -> (i32, i32) {
    %c0_i32 = arith.constant 0 : i32
    %c0_i32_0 = arith.constant 0 : i32
    %c0_i32_1 = arith.constant 0 : i32
    return %c0_i32, %c0_i32_0 : i32, i32
  }
  func.func @transform_3(%arg0: i32) -> (i32, i32, i32) {
    %c0_i32 = arith.constant 0 : i32
    %c0_i32_0 = arith.constant 0 : i32
    %c0_i32_1 = arith.constant 0 : i32
    return %arg0, %c0_i32, %c0_i32_0 : i32, i32, i32
  }
}

</mosaic_0001>

<bundles_post_ra>
// kernel: bottleneck_transform.4
= control target key start
LH: loop header
LB: loop body
LE: loop exit
PB: predicated region body
PF: predicated region fallthrough
CT: control target
= control target key end

     0   :  { %s845_s15 = smov 0   ;;  %s847_s16 = smov 0   ;;  %s951_s0 = inlined_call_operand.vmem [shape: bf16[12,8,8,4], index: 0, kind: input, shape index: {}]   ;;  %s952_s1 = inlined_call_operand.vmem [shape: bf16[3,4,128], index: 1, kind: input, shape index: {}]   ;;  %s953_s2 = inlined_call_operand.vmem [shape: bf16[8,8,8,128], index: 2, kind: output, shape index: {0}]   ;;  %s954_s3 = inlined_call_operand.vmem [shape: f32[8,1,128], index: 3, kind: output, shape index: {1}]   ;;  %s955_s4 = inlined_call_operand.vmem [shape: f32[8,1,128], index: 4, kind: output, shape index: {2}]  }
   0x1   :  { %s849_s17 = smov 0   ;;  %s851_s18 = smov 0  }
   0x2   :  { %s853_s19 = smov 0   ;;  %s855_s20 = smov 0  }
   0x3   :  { %s857_s21 = smov 0  }
   0x4 LB: > { %s27_s22 = sadd.s32 1, %s805_s18  ;;  %s30_s23 = sadd.s32 1, %s809_s19  ;;  %s817_s21 = sphi %s857_s21, %s15_s21   ;;  %s813_s20 = sphi %s855_s20, %s961_s20   ;;  %s809_s19 = sphi %s853_s19, %s960_s19   ;;  %s805_s18 = sphi %s851_s18, %s959_s18   ;;  %s801_s17 = sphi %s849_s17, %s958_s17   ;;  %s797_s16 = sphi %s847_s16, %s957_s16   ;;  %s793_s15 = sphi %s845_s15, %s956_s15  }
   0x5   : > { %p28_p0 = scmp.ge.s32.totalorder %s27_s22, 3  ;;  %p641_p1 = scmp.ge.s32.totalorder %s817_s21, 1 }
   0x6   : > { %p219_p2 = scmp.lt.s32.totalorder %s817_s21, 25  ;;  %s34_s24 = sadd.s32 1, %s813_s20 }
   0x7   : > { %s963_s22 = smov (%p28_p0, %s27_s22), 0  ;;  %s965_s23 = smov (!%p28_p0, %s30_s23), %s809_s19 }
   0x8   : > { %p220_p3 = pnand %p641_p1, %p219_p2  ;;  %p32_p4 = scmp.ge.s32.totalorder %s965_s23, 4 }
   0x9   : > { %s264_s25 = smul.u32 (!%p220_p3), 6, %s801_s17  ;;  %p275_p6 = scmp.lt.s32.totalorder (!%p220_p3), %s793_s15, 2 }
   0xa   : > { %s967_s23 = smov (%p32_p4, %s965_s23), 0  ;;  %s969_s24 = smov (!%p32_p4, %s34_s24), %s813_s20 }
   0xb   : > { %p36_p5 = scmp.ge.s32.totalorder %s969_s24, 2  ;;  %223 = sbr.rel (%p220_p3) target bundleno = 216 (0xd8), region = 28 }
   0xc   : > { %s645_s26 = sshll.u32 (!%p220_p3), %s801_s17, 2  ;;  %s265_s27 = sadd.s32 (!%p220_p3), %s797_s16, %s264_s25 }
   0xd   : > { %s971_s24 = smov (%p36_p5, %s969_s24), 0  ;;  %s280_s28 = sadd.s32 (!%p220_p3), %s797_s16, %s645_s26 }
   0xe   : > { %s266_s29 = sadd.s32 (!%p220_p3), %s793_s15, %s265_s27  ;;  %p281_p8 = scmp.lt.s32.totalorder (!%p220_p3), %s280_s28, 7 }
   0xf   : > { %p267_p7 = scmp.lt.s32.totalorder (!%p220_p3), %s266_s29, 11  ;;  %p650_p9 = scmp.ne.s32.totalorder (!%p220_p3), %s793_s15, 0 }
  0x10   : > { %s276_s30 = scalar_select %p275_p6, %s793_s15, 2 }
  0x11   : > { %s973_s29 = smov (!%p267_p7, %s266_s29), 11  ;;  %s975_s28 = smov (!%p281_p8, %s280_s28), 7 }
  0x12   : > { %s644_s5 = sshll.u32 %s276_s30, 1  ;;  %s674_s6 = sshll.u32 %s973_s29, 5 }
  0x13   : > { %s278_s9 = scalar_lea.vmem %s952_s1, %s644_s5  ;;  %s271_s12 = scalar_lea.vmem %s951_s0, %s674_s6 }
  0x14   : > { %s675_s13 = sshll.u32 %s975_s28, 5  ;;  %s292_s17 = scalar_lea.vmem %s954_s3, %s975_s28 }
  0x15   : > { %s908_s27 = scalar_lea.vmem %s953_s2, %s675_s13  ;;  %s299_s5 = scalar_lea.vmem %s955_s4, %s975_s28 }
  0x16   : > { %306 = sbr.rel (%p650_p9) target bundleno = 36 (0x24), region = 32 }
  0x1b   : > { %v819_v0 = vmov 0.0  }
  0x1c   : > { %307 = vst [vmem:[#allocation2 + $0x30] sm:$0xff] %v819_v0 }
  0x1d   : > { %308 = vst [vmem:[#allocation2] sm:$0xff] %v819_v0 }
  0x1e   : > { %309 = vst [vmem:[#allocation2 + $0x18] sm:$0xff] %v819_v0 }
  0x1f   : > { %310 = vst [vmem:[#allocation2 + $0x10] sm:$0xff] %v819_v0 }
  0x20   : > { %311 = vst [vmem:[#allocation2 + $0x8] sm:$0xff] %v819_v0 }
  0x21   : > { %312 = vst [vmem:[#allocation2 + $0x20] sm:$0xff] %v819_v0 }
  0x22   : > { %313 = vst [vmem:[#allocation2 + $0x28] sm:$0xff] %v819_v0 }
  0x23   : > { %314 = vst [vmem:[#allocation2 + $0x38] sm:$0xff] %v819_v0 }
  0x24 PF: > { %v331_v1 = vld [vmem:[%s278_s9] sm:$0x3]  ;;  %vm365_vm0 = vcmask 1041408   ;;  %v677_v4 = vld [vmem:[%s271_s12 + $0x8] sm:$0xff]  ;;  %vm352_vm1 = vcmask 31744   ;;  %v678_v5 = vld [vmem:[%s271_s12 + $0x10] sm:$0xff] }
  0x25   : > { %v367_v2 = vsel %vm365_vm0, %v331_v1, 0  ;;  %v676_v3 = vld [vmem:[%s271_s12] sm:$0xff]  ;;  %v679_v6 = vld [vmem:[%s271_s12 + $0x18] sm:$0xff]  ;;  %v323_v7 = vld [vmem:[#allocation2 + $0x30] sm:$0xff]  ;;  %p671_p10 = scmp.ne.s32.totalorder %s793_s15, 2 }
  0x26   : > { %376 = vmatpush.bf16.msra.mxu0 %v367_v2  ;;  %703 = vmatpush.bf16.msra.mxu1 %v367_v2  ;;  %v325_v8 = vld [vmem:[#allocation2 + $0x18] sm:$0xff]  ;;  %v324_v15 = vld [vmem:[#allocation2] sm:$0xff]  ;;  %v326_v16 = vld [vmem:[#allocation2 + $0x10] sm:$0xff] }
  0x27   : > { %704 = vmatpush.bf16.msra.mxu2 %v367_v2  ;;  %705 = vmatpush.bf16.msra.mxu3 %v367_v2  ;;  %v327_v13 = vld [vmem:[#allocation2 + $0x8] sm:$0xff] }
  0x28   : > { %v328_v25 = vld [vmem:[#allocation2 + $0x20] sm:$0xff] }
  0x29   : > { %667 = vmatmul.msk.bf16.vlgmr.msra.gmra.mxu0 %vm352_vm1, %v676_v3  ;;  %668 = vmatmul.msk.bf16.vlgmr.msra.gmra.mxu1 %vm352_vm1, %v677_v4  ;;  %v329_v14 = vld [vmem:[#allocation2 + $0x28] sm:$0xff] }
  0x2a   : > { %669 = vmatmul.msk.bf16.vlgmr.msra.gmra.mxu2 %vm352_vm1, %v678_v5  ;;  %670 = vmatmul.msk.bf16.vlgmr.msra.gmra.mxu3 %vm352_vm1, %v679_v6  ;;  %v330_v26 = vld [vmem:[#allocation2 + $0x38] sm:$0xff] }
  0xa6   : > { %v378_v9 = vpop.f32.mrf.mxu0  ;;  %v383_v10 = vpop.f32.mrf.mxu1 }
  0xa7   : > { %v398_v11 = vadd.f32 %v378_v9, %v323_v7  ;;  %v400_v12 = vadd.f32 %v383_v10, %v325_v8 }
  0xa9   : > { %406 = vst [vmem:[#allocation2 + $0x30] sm:$0xff] %v398_v11 }
  0xaa   : > { %408 = vst [vmem:[#allocation2 + $0x18] sm:$0xff] %v400_v12 }
  0xad   : > { %v388_v17 = vpop.f32.mrf.mxu2  ;;  %v393_v18 = vpop.f32.mrf.mxu3 }
  0xae   : > { %v402_v19 = vadd.f32 %v388_v17, %v327_v13  ;;  %v404_v20 = vadd.f32 %v393_v18, %v329_v14  ;;  %v380_v21 = vpop.f32.mrf.mxu0  ;;  %v385_v22 = vpop.f32.mrf.mxu1 }
  0xaf   : > { %v399_v23 = vadd.f32 %v380_v21, %v324_v15  ;;  %v401_v24 = vadd.f32 %v385_v22, %v326_v16 }
  0xb0   : > { %410 = vst [vmem:[#allocation2 + $0x8] sm:$0xff] %v402_v19 }
  0xb1   : > { %412 = vst [vmem:[#allocation2 + $0x28] sm:$0xff] %v404_v20 }
  0xb2   : > { %407 = vst [vmem:[#allocation2] sm:$0xff] %v399_v23 }
  0xb3   : > { %409 = vst [vmem:[#allocation2 + $0x10] sm:$0xff] %v401_v24 }
  0xb5   : > { %v390_v27 = vpop.f32.mrf.mxu2  ;;  %v395_v28 = vpop.f32.mrf.mxu3  ;;  %417 = sbr.rel (%p671_p10) target bundleno = 216 (0xd8), region = 36 }
  0xb6   : > { %v403_v29 = vadd.f32 %v390_v27, %v328_v25  ;;  %v405_v30 = vadd.f32 %v395_v28, %v330_v26 }
  0xb8   : > { %411 = vst [vmem:[#allocation2 + $0x20] sm:$0xff] %v403_v29 }
  0xb9   : > { %413 = vst [vmem:[#allocation2 + $0x38] sm:$0xff] %v405_v30 }
  0xba   : > { %v418_v31 = vld [vmem:[#allocation2 + $0x30] sm:$0xff]  ;;  %v419_v32 = vld [vmem:[#allocation2] sm:$0xff]  ;;  %v420_v33 = vld [vmem:[#allocation2 + $0x18] sm:$0xff] }
  0xbb   : > { %v683_v34 = vpack.c.bf16 %v419_v32, %v418_v31  ;;  %v442_v35 = vadd.f32 %v419_v32, %v418_v31  ;;  %v456_v36 = vmul.f32 %v418_v31, %v418_v31  ;;  %v457_v37 = vmul.f32 %v419_v32, %v419_v32  ;;  %v421_v38 = vld [vmem:[#allocation2 + $0x10] sm:$0xff]  ;;  %v422_v39 = vld [vmem:[#allocation2 + $0x8] sm:$0xff] }
  0xbc   : > { %v688_v41 = vpack.c.bf16 %v421_v38, %v420_v33  ;;  %v458_v42 = vmul.f32 %v420_v33, %v420_v33  ;;  %v459_v46 = vmul.f32 %v421_v38, %v421_v38  ;;  %v424_v47 = vld [vmem:[#allocation2 + $0x28] sm:$0xff]  ;;  %v460_v52 = vmul.f32 %v422_v39, %v422_v39 }
  0xbd   : > { %684 = vst [vmem:[%s908_s27] sm:$0xff] %v683_v34   ;;  %v464_v44 = vadd.f32 %v457_v37, %v456_v36  ;;  %v443_v45 = vadd.f32 %v442_v35, %v420_v33  ;;  %v462_v58 = vmul.f32 %v424_v47, %v424_v47 }
  0xbe   : > { %700 = vst [vmem:[%s908_s27 + $0x8] sm:$0xff] %v688_v41  }
  0xbf   : > { %v423_v40 = vld [vmem:[#allocation2 + $0x20] sm:$0xff]  ;;  %v444_v50 = vadd.f32 %v443_v45, %v421_v38  ;;  %v465_v51 = vadd.f32 %v464_v44, %v458_v42 }
  0xc0   : > { %v693_v43 = vpack.c.bf16 %v423_v40, %v422_v39  ;;  %v425_v48 = vld [vmem:[#allocation2 + $0x38] sm:$0xff]  ;;  %v461_v55 = vmul.f32 %v423_v40, %v423_v40 }
  0xc1   : > { %v698_v49 = vpack.c.bf16 %v425_v48, %v424_v47  ;;  %v466_v53 = vadd.f32 %v465_v51, %v459_v46  ;;  %v445_v54 = vadd.f32 %v444_v50, %v422_v39  ;;  %v463_v61 = vmul.f32 %v425_v48, %v425_v48 }
  0xc2   : > { %701 = vst [vmem:[%s908_s27 + $0x10] sm:$0xff] %v693_v43  }
  0xc3   : > { %702 = vst [vmem:[%s908_s27 + $0x18] sm:$0xff] %v698_v49   ;;  %v446_v56 = vadd.f32 %v445_v54, %v423_v40  ;;  %v467_v57 = vadd.f32 %v466_v53, %v460_v52 }
  0xc5   : > { %v468_v59 = vadd.f32 %v467_v57, %v461_v55  ;;  %v447_v60 = vadd.f32 %v446_v56, %v424_v47 }
  0xc7   : > { %v448_v62 = vadd.f32 %v447_v60, %v425_v48  ;;  %v469_v63 = vadd.f32 %v468_v59, %v462_v58 }
  0xc9   : > { %v449_v0 = vrot.slane %v448_v62, 4  ;;  %v470_v1 = vadd.f32 %v469_v63, %v463_v61 }
  0xcb   : > { %v450_v2 = vadd.f32 %v449_v0, %v448_v62  ;;  %v471_v3 = vrot.slane %v470_v1, 4 }
  0xcd   : > { %v451_v4 = vrot.slane %v450_v2, 2  ;;  %v472_v5 = vadd.f32 %v471_v3, %v470_v1 }
  0xcf   : > { %v452_v6 = vadd.f32 %v451_v4, %v450_v2  ;;  %v473_v7 = vrot.slane %v472_v5, 2 }
  0xd1   : > { %v453_v8 = vrot.slane %v452_v6, 1  ;;  %v474_v9 = vadd.f32 %v473_v7, %v472_v5 }
  0xd3   : > { %v454_v10 = vadd.f32 %v453_v8, %v452_v6  ;;  %v475_v11 = vrot.slane %v474_v9, 1 }
  0xd5   : > { %455 = vst [vmem:[%s292_s17] sm:$0x1] %v454_v10  ;;  %v476_v12 = vadd.f32 %v475_v11, %v474_v9 }
  0xd7   : > { %477 = vst [vmem:[%s299_s5] sm:$0x1] %v476_v12 }
  0xd8 PF: > { %s15_s21 = sadd.s32 1, %s817_s21   ;;  %s956_s15 = smov %s805_s18 }
  0xd9   : > { %p12_p11 = scmp.ge.s32.totalorder %s15_s21, 26   ;;  %s957_s16 = smov %s809_s19 }
  0xda   : > { %s958_s17 = smov %s813_s20  ;;  %s959_s18 = smov %s963_s22 }
  0xdb   : > { %s960_s19 = smov %s967_s23  ;;  %s961_s20 = smov %s971_s24 }
  0xdc   :  { %14 = sbr.rel (!%p12_p11) target bundleno = 4 (0x4), region = 93 }

// kernel: bottleneck_transform.5
= control target key start
LH: loop header
LB: loop body
LE: loop exit
PB: predicated region body
PF: predicated region fallthrough
CT: control target
= control target key end

     0   :  { %s2980_s21 = smov 0   ;;  %s3615_s0 = inlined_call_operand.vmem [shape: bf16[8,8,8,128], index: 0, kind: input, shape index: {}]   ;;  %s3616_s1 = inlined_call_operand.vmem [shape: f32[1,128], index: 1, kind: input, shape index: {}]   ;;  %s3617_s2 = inlined_call_operand.vmem [shape: f32[1,128], index: 2, kind: input, shape index: {}]   ;;  %s3618_s3 = inlined_call_operand.vmem [shape: bf16[9,128,128], index: 3, kind: input, shape index: {}]   ;;  %s3619_s4 = inlined_call_operand.vmem [shape: bf16[8,64,128], index: 4, kind: output, shape index: {0}]   ;;  %s3620_s5 = inlined_call_operand.vmem [shape: f32[8,1,128], index: 5, kind: output, shape index: {1}]   ;;  %s3621_s6 = inlined_call_operand.vmem [shape: f32[8,1,128], index: 6, kind: output, shape index: {2}]  }
   0x1 LB: > { %s2282_s22 = sadd.s32 4294967295, %s2942_s21   ;;  %p2286_p0 = scmp.ge.s32.totalorder %s2942_s21, 1  ;;  %s2942_s21 = sphi %s2980_s21, %s17_s21  }
   0x2   : > { %p217_p1 = scmp.lt.s32.totalorder %s2942_s21, 9 }
   0x4   : > { %p218_p2 = pnand %p2286_p0, %p217_p1 }
   0x5   : > { %p253_p3 = scmp.lt.s32.totalorder (!%p218_p2), %s2282_s22, 7 }
   0x6   : > { %221 = sbr.rel (%p218_p2) target bundleno = 358 (0x166), region = 36 }
   0xb   : > { %v2802_v0 = vld [vmem:[%s3618_s3 + $0x78] sm:$0xff]  ;;  %v2944_v2 = vmov 0   ;;  %v2801_v3 = vld [vmem:[%s3618_s3 + $0x70] sm:$0xff]  ;;  %s3631_s22 = smov (!%p253_p3, %s2282_s22), 7  ;;  %v2800_v6 = vld [vmem:[%s3618_s3 + $0x68] sm:$0xff]  ;;  %vm427_vm0 = vcmask 1043456  }
   0xc   : > { %v2810_v1 = vld [vmem:[%s3618_s3 + $0xb8] sm:$0xff]  ;;  %278 = vst [vmem:[#allocation2 + $0x20] sm:$0xf] %v2944_v2  ;;  %2909 = vmatpush.bf16.msra.mxu1 %v2802_v0  ;;  %709 = vmatpush.bf16.msra.mxu0 %v2802_v0  ;;  %v2809_v4 = vld [vmem:[%s3618_s3 + $0xb0] sm:$0xff]  ;;  %s2781_s9 = sshll.u32 %s3631_s22, 5  ;;  %v2808_v11 = vld [vmem:[%s3618_s3 + $0xa8] sm:$0xff]  ;;  %s265_s7 = scalar_lea.vmem %s3620_s5, %s3631_s22 }
   0xd   : > { %279 = vst [vmem:[#allocation2 + $0x24] sm:$0x1] %v2944_v2  ;;  %979 = vmatpush.bf16.msra.mxu2 %v2810_v1  ;;  %v2822_v5 = vld [vmem:[%s3618_s3 + $0xf8] sm:$0xff]  ;;  %v2821_v7 = vld [vmem:[%s3618_s3 + $0xf0] sm:$0xff]  ;;  %s257_s16 = scalar_lea.vmem %s3615_s0, %s2781_s9  ;;  %v3024_v10 = vld [vmem:[%s3616_s1] ss:$0 sm:$0xff]  ;;  %s3589_s29 = scalar_lea.vmem %s3619_s4, %s2781_s9 }
   0xe   : > { %280 = vst [vmem:[#allocation2 + $0x28] sm:$0xf] %v2944_v2  ;;  %1113 = vmatpush.bf16.msra.mxu3 %v2822_v5  ;;  %v2903_v8 = vld [vmem:[%s257_s16 + $0x8] sm:$0xff]   ;;  %v2904_v9 = vld [vmem:[%s257_s16 + $0x10] sm:$0xff]   ;;  %v3032_v14 = vld [vmem:[%s3617_s2] ss:$0 sm:$0xff]  ;;  %s268_s11 = scalar_lea.vmem %s3621_s6, %s3631_s22 }
   0xf   : > { %281 = vst [vmem:[#allocation2 + $0x2c] sm:$0x1] %v2944_v2  ;;  %v2874_v12 = vunpack.c.h.bf16 %v2903_v8  ;;  %v2877_v13 = vunpack.c.l.bf16 %v2904_v9  ;;  %v2878_v15 = vunpack.c.h.bf16 %v2904_v9  ;;  %v2873_v16 = vunpack.c.l.bf16 %v2903_v8  ;;  %v2820_v17 = vld [vmem:[%s3618_s3 + $0xe8] sm:$0xff]  ;;  %v3041_v20 = vld [vmem:[%s257_s16] sm:$0xff]   ;;  %v3048_v23 = vld [vmem:[%s257_s16 + $0x18] sm:$0xff]  }
  0x10   : > { %2910 = vmatpush.bf16.msra.mxu1 %v2801_v3  ;;  %710 = vmatpush.bf16.msra.mxu0 %v2801_v3  ;;  %270 = vst [vmem:[#allocation2] sm:$0xf] %v2944_v2  ;;  %v2799_v21 = vld [vmem:[%s3618_s3 + $0x60] sm:$0xff]  ;;  %v2869_v22 = vunpack.c.l.bf16 %v3041_v20  ;;  %v2881_v29 = vunpack.c.l.bf16 %v3048_v23  ;;  %vm433_vm1 = vcmask 1040384   ;;  %vm428_vm2 = vsmask.f32 7938 }
  0x11   : > { %980 = vmatpush.bf16.msra.mxu2 %v2809_v4  ;;  %v313_v18 = vmul.f32 %v3024_v10, %v2874_v12  ;;  %v314_v19 = vmul.f32 %v3024_v10, %v2877_v13  ;;  %271 = vst [vmem:[#allocation2 + $0x4] sm:$0x1] %v2944_v2  ;;  %v315_v24 = vmul.f32 %v3024_v10, %v2878_v15  ;;  %v2807_v26 = vld [vmem:[%s3618_s3 + $0xa0] sm:$0xff]  ;;  %v2798_v33 = vld [vmem:[%s3618_s3 + $0x58] sm:$0xff]  ;;  %vm434_vm3 = vsmask.f32 256  ;;  %vm3095_vm7 = vmand %vm427_vm0, %vm428_vm2 }
  0x12   : > { %1114 = vmatpush.bf16.msra.mxu3 %v2821_v7  ;;  %272 = vst [vmem:[#allocation2 + $0x8] sm:$0xf] %v2944_v2  ;;  %v312_v25 = vmul.f32 %v3024_v10, %v2873_v16  ;;  %v310_v30 = vmul.f32 %v3024_v10, %v2869_v22  ;;  %v2806_v37 = vld [vmem:[%s3618_s3 + $0x98] sm:$0xff]  ;;  %v2819_v40 = vld [vmem:[%s3618_s3 + $0xe0] sm:$0xff]  ;;  %v316_v41 = vmul.f32 %v3024_v10, %v2881_v29  ;;  %v2870_v42 = vunpack.c.h.bf16 %v3041_v20  ;;  %v2797_v43 = vld [vmem:[%s3618_s3 + $0x50] sm:$0xff] }
  0x13   : > { %v325_v27 = vadd.f32 %v3032_v14, %v313_v18  ;;  %v326_v28 = vadd.f32 %v3032_v14, %v314_v19  ;;  %273 = vst [vmem:[#allocation2 + $0xc] sm:$0x1] %v2944_v2  ;;  %v3068_v35 = vadd.f32 %v3032_v14, %v315_v24  ;;  %v2805_v50 = vld [vmem:[%s3618_s3 + $0x90] sm:$0xff]  ;;  %v451_v51 = vld [vmem:[#allocation2 + $0x20] sm:$0xf]  ;;  %vm863_vm6 = vcmask 1042432   ;;  %vm3108_vm8 = vmand %vm433_vm1, %vm434_vm3 }
  0x14   : > { %2911 = vmatpush.bf16.msra.mxu1 %v2800_v6  ;;  %711 = vmatpush.bf16.msra.mxu0 %v2800_v6  ;;  %274 = vst [vmem:[#allocation2 + $0x10] sm:$0xf] %v2944_v2  ;;  %v322_v34 = vadd.f32 %v3032_v14, %v310_v30  ;;  %v3071_v36 = vadd.f32 %v3032_v14, %v312_v25  ;;  %v454_v52 = vld [vmem:[#allocation2 + $0x24] sm:$0x1]  ;;  %vm513_vm4 = vsmask.f32 3328 }
  0x15   : > { %981 = vmatpush.bf16.msra.mxu2 %v2808_v11  ;;  %v333_v31 = vmax.f32 %v325_v27, 0.0  ;;  %v334_v32 = vmax.f32 %v326_v28, 0.0  ;;  %275 = vst [vmem:[#allocation2 + $0x14] sm:$0x1] %v2944_v2  ;;  %v457_v53 = vld [vmem:[#allocation2 + $0x28] sm:$0xf]  ;;  %v3103_v62 = vadd.f32 %v3032_v14, %v316_v41  ;;  %v311_v63 = vmul.f32 %v3024_v10, %v2870_v42 }
  0x16   : > { %1115 = vmatpush.bf16.msra.mxu3 %v2820_v17  ;;  %276 = vst [vmem:[#allocation2 + $0x18] sm:$0xf] %v2944_v2  ;;  %v330_v44 = vmax.f32 %v322_v34, 0.0  ;;  %vm514_vm5 = vsmask.f32 7440  ;;  %v335_v55 = vmax.f32 %v3068_v35, 0.0 }
  0x17   : > { %v341_v38 = vpack.c.bf16 %v333_v31, %v333_v31  ;;  %v342_v39 = vpack.c.bf16 %v334_v32, %v334_v32  ;;  %277 = vst [vmem:[#allocation2 + $0x1c] sm:$0x1] %v2944_v2  ;;  %v481_v45 = vld [vmem:[#allocation2] sm:$0xf]  ;;  %v332_v56 = vmax.f32 %v3071_v36, 0.0  ;;  %v2796_v6 = vld [vmem:[%s3618_s3 + $0x48] sm:$0xff]  ;;  %v323_v34 = vadd.f32 %v3032_v14, %v311_v63  ;;  %vm3176_vm11 = vmor %vm513_vm4, %vm514_vm5 }
  0x18   : > { %2912 = vmatpush.bf16.msra.mxu1 %v2799_v21  ;;  %712 = vmatpush.bf16.msra.mxu0 %v2799_v21  ;;  %282 = vst [vmem:[#allocation2 + $0x30] sm:$0xf] %v2944_v2  ;;  %v338_v54 = vpack.c.bf16 %v330_v44, %v330_v44  ;;  %v460_v60 = vld [vmem:[#allocation2 + $0x2c] sm:$0x1]  ;;  %v3100_v61 = vld [vmem:[#allocation2 + $0x4] sm:$0x1]  ;;  %v343_v25 = vpack.c.bf16 %v335_v55, %v335_v55 }
  0x19   : > { %982 = vmatpush.bf16.msra.mxu2 %v2807_v26  ;;  %v371_v46 = vshrl.u32 %v341_v38, 16  ;;  %v374_v47 = vshll.u32 %v341_v38, 16  ;;  %v379_v48 = vshrl.u32 %v342_v39, 16  ;;  %v382_v49 = vshll.u32 %v342_v39, 16  ;;  %283 = vst [vmem:[#allocation2 + $0x34] sm:$0x1] %v2944_v2 }
  0x1a   : > { %1116 = vmatpush.bf16.msra.mxu3 %v2819_v40  ;;  %284 = vst [vmem:[#allocation2 + $0x38] sm:$0xf] %v2944_v2  ;;  %v347_v1 = vshrl.u32 %v338_v54, 16  ;;  %v350_v3 = vshll.u32 %v338_v54, 16  ;;  %v517_v4 = vshrl.u32 %v481_v45, 16  ;;  %v520_v5 = vshll.u32 %v481_v45, 16 }
  0x1b   : > { %v373_v57 = vrot.slane %v371_v46, 7  ;;  %v381_v58 = vrot.slane %v379_v48, 7  ;;  %285 = vst [vmem:[#allocation2 + $0x3c] sm:$0x1] %v2944_v2  ;;  %v2818_v12 = vld [vmem:[%s3618_s3 + $0xd8] sm:$0xff]  ;;  %v526_v17 = vshll.u32 %v3100_v61, 16 }
  0x1c   : > { %2913 = vmatpush.bf16.msra.mxu1 %v2798_v33  ;;  %713 = vmatpush.bf16.msra.mxu0 %v2798_v33  ;;  %286 = vst [vmem:[#allocation2 + $0x40] sm:$0xf] %v2944_v2  ;;  %v349_v13 = vrot.slane %v347_v1, 7  ;;  %v519_v15 = vrot.slane %v517_v4, 4  ;;  %v522_v16 = vrot.slane %v520_v5, 5  ;;  %v2804_v21 = vld [vmem:[%s3618_s3 + $0x88] sm:$0xff] }
  0x1d   : > { %983 = vmatpush.bf16.msra.mxu2 %v2806_v37  ;;  %v376_v7 = vor.u32 %v374_v47, %v373_v57  ;;  %v377_v8 = vrot.slane %v373_v57, 4  ;;  %v384_v9 = vor.u32 %v382_v49, %v381_v58  ;;  %v385_v11 = vrot.slane %v381_v58, 4  ;;  %287 = vst [vmem:[#allocation2 + $0x44] sm:$0x1] %v2944_v2  ;;  %v430_v22 = vld [vmem:[#allocation2 + $0x8] sm:$0xf] }
  0x1e   : > { %288 = vst [vmem:[#allocation2 + $0x48] sm:$0xf] %v2944_v2  ;;  %v839_v24 = vld [vmem:[#allocation2] sm:$0xe]  ;;  %v352_v27 = vor.u32 %v350_v3, %v349_v13  ;;  %v353_v28 = vrot.slane %v349_v13, 4  ;;  %v523_v30 = vor.u32 %v522_v16, %v519_v15  ;;  %1117 = vmatpush.bf16.msra.mxu3 %v2818_v12  ;;  %v2817_v31 = vld [vmem:[%s3618_s3 + $0xd0] sm:$0xff]  ;;  %v3165_v47 = vpack.c.bf16 %v332_v56, %v332_v56 }
  0x1f   : > { %v452_v18 = vsel %vm3095_vm7, %v376_v7, %v451_v51  ;;  %v455_v19 = vsel %vm3108_vm8, %v377_v8, %v454_v52  ;;  %v458_v20 = vsel %vm3095_vm7, %v384_v9, %v457_v53  ;;  %v461_v26 = vsel %vm3108_vm8, %v385_v11, %v460_v60  ;;  %v436_v29 = vld [vmem:[#allocation2 + $0xc] sm:$0x1]  ;;  %v2795_v35 = vld [vmem:[%s3618_s3 + $0x40] sm:$0xff]  ;;  %v2794_v41 = vld [vmem:[%s3618_s3 + $0x38] sm:$0xff]  ;;  %289 = vst [vmem:[#allocation2 + $0x4c] sm:$0x1] %v2944_v2 }
  0x20   : > { %2914 = vmatpush.bf16.msra.mxu1 %v2797_v43  ;;  %714 = vmatpush.bf16.msra.mxu0 %v2797_v43  ;;  %453 = vst [vmem:[#allocation2 + $0x20] sm:$0xf] %v452_v18  ;;  %v3136_v32 = vrot.slane %v526_v17, 5  ;;  %vm864_vm9 = vcmask 1046532   ;;  %v2387_v33 = vrot.slane %v839_v24, 9  ;;  %v431_v37 = vsel %vm3095_vm7, %v352_v27, %v430_v22  ;;  %v2803_v42 = vld [vmem:[%s3618_s3 + $0x80] sm:$0xff] }
  0x21   : > { %984 = vmatpush.bf16.msra.mxu2 %v2805_v50  ;;  %456 = vst [vmem:[#allocation2 + $0x24] sm:$0x1] %v455_v19  ;;  %v3144_v38 = vrot.slane %v523_v30, 4  ;;  %v868_v39 = vrot.slane %v3100_v61, 5  ;;  %v336_v40 = vmax.f32 %v3103_v62, 0.0  ;;  %v437_v43 = vsel %vm3108_vm8, %v353_v28, %v436_v29  ;;  %vm3158_vm10 = vmor %vm863_vm6, %vm864_vm9  ;;  %v2830_v48 = vld [vmem:[%s3618_s3 + $0x138] sm:$0xff] }
  0x22   : > { %459 = vst [vmem:[#allocation2 + $0x28] sm:$0xf] %v458_v20  ;;  %v387_v45 = vshrl.u32 %v343_v25, 16  ;;  %v390_v46 = vshll.u32 %v343_v25, 16  ;;  %1118 = vmatpush.bf16.msra.mxu3 %v2817_v31  ;;  %v2816_v49 = vld [vmem:[%s3618_s3 + $0xc8] sm:$0xff]  ;;  %v2793_v2 = vld [vmem:[%s3618_s3 + $0x30] sm:$0xff] }
  0x23   : > { %462 = vst [vmem:[#allocation2 + $0x2c] sm:$0x1] %v461_v26  ;;  %v344_v50 = vpack.c.bf16 %v336_v40, %v336_v40  ;;  %v463_v52 = vld [vmem:[#allocation2 + $0x30] sm:$0xf]  ;;  %v331_v53 = vmax.f32 %v323_v34, 0.0  ;;  %v529_v54 = vsel %vm3176_vm11, %v3144_v38, %v3136_v32  ;;  %v3189_v55 = vsel %vm3158_vm10, %v2387_v33, %v868_v39  ;;  %v2850_v1 = vld [vmem:[%s3618_s3 + $0x1b8] sm:$0xff] }
  0x24   : > { %2915 = vmatpush.bf16.msra.mxu1 %v2796_v6  ;;  %715 = vmatpush.bf16.msra.mxu0 %v2796_v6  ;;  %432 = vst [vmem:[#allocation2 + $0x8] sm:$0xf] %v431_v37  ;;  %v389_v36 = vrot.slane %v387_v45, 7  ;;  %v2829_v56 = vld [vmem:[%s3618_s3 + $0x130] sm:$0xff]  ;;  %v2815_v3 = vld [vmem:[%s3618_s3 + $0xc0] sm:$0xff]  ;;  %v363_v5 = vshrl.u32 %v3165_v47, 16  ;;  %v915_v40 = vunpack.c.l.b16 %v3189_v55 }
  0x25   : > { %985 = vmatpush.bf16.msra.mxu2 %v2804_v21  ;;  %438 = vst [vmem:[#allocation2 + $0xc] sm:$0x1] %v437_v43  ;;  %v395_v57 = vshrl.u32 %v344_v50, 16  ;;  %v398_v58 = vshll.u32 %v344_v50, 16  ;;  %v466_v60 = vld [vmem:[#allocation2 + $0x34] sm:$0x1]  ;;  %v3200_v4 = vpack.c.bf16 %v331_v53, %v331_v53 }
  0x26   : > { %v392_v62 = vor.u32 %v390_v46, %v389_v36  ;;  %v393_v63 = vrot.slane %v389_v36, 4  ;;  %1119 = vmatpush.bf16.msra.mxu3 %v2816_v49  ;;  %v366_v11 = vshll.u32 %v3165_v47, 16  ;;  %v2792_v15 = vld [vmem:[%s3618_s3 + $0x28] sm:$0xff]  ;;  %v469_v25 = vld [vmem:[#allocation2 + $0x38] sm:$0xf]  ;;  %v2791_v53 = vld [vmem:[%s3618_s3 + $0x20] sm:$0xff] }
  0x27   : > { %v485_v61 = vld [vmem:[#allocation2 + $0x20] sm:$0xf]  ;;  %v397_v9 = vrot.slane %v395_v57, 7  ;;  %v355_v18 = vshrl.u32 %v3200_v4, 16  ;;  %v472_v26 = vld [vmem:[#allocation2 + $0x3c] sm:$0x1] }
  0x28   : > { %2916 = vmatpush.bf16.msra.mxu1 %v2795_v35  ;;  %716 = vmatpush.bf16.msra.mxu0 %v2795_v35  ;;  %v3203_v6 = vld [vmem:[#allocation2 + $0x24] sm:$0x1]  ;;  %v573_v7 = vshrl.u32 %v485_v61, 16  ;;  %v576_v8 = vshll.u32 %v485_v61, 16  ;;  %v464_v16 = vsel %vm3095_vm7, %v392_v62, %v463_v52  ;;  %v467_v17 = vsel %vm3108_vm8, %v393_v63, %v466_v60  ;;  %v2828_v29 = vld [vmem:[%s3618_s3 + $0x128] sm:$0xff]  ;;  %v2849_v32 = vld [vmem:[%s3618_s3 + $0x1b0] sm:$0xff] }
  0x29   : > { %986 = vmatpush.bf16.msra.mxu2 %v2803_v42  ;;  %v486_v12 = vld [vmem:[#allocation2 + $0x28] sm:$0xf]  ;;  %v582_v13 = vshll.u32 %v3203_v6, 16  ;;  %v400_v30 = vor.u32 %v398_v58, %v397_v9  ;;  %v401_v31 = vrot.slane %v397_v9, 4  ;;  %465 = vst [vmem:[#allocation2 + $0x30] sm:$0xf] %v464_v16 }
  0x2a   : > { %v3215_v19 = vld [vmem:[#allocation2 + $0x2c] sm:$0x1]  ;;  %v575_v20 = vrot.slane %v573_v7, 4  ;;  %v578_v21 = vrot.slane %v576_v8, 5  ;;  %v587_v22 = vshrl.u32 %v486_v12, 16  ;;  %v590_v24 = vshll.u32 %v486_v12, 16  ;;  %1120 = vmatpush.bf16.msra.mxu3 %v2815_v3 }
  0x2b   : > { %v584_v27 = vrot.slane %v582_v13, 5  ;;  %v596_v28 = vshll.u32 %v3215_v19, 16  ;;  %v482_v37 = vld [vmem:[#allocation2 + $0x8] sm:$0xf]  ;;  %468 = vst [vmem:[#allocation2 + $0x34] sm:$0x1] %v467_v17  ;;  %v470_v55 = vsel %vm3095_vm7, %v400_v30, %v469_v25  ;;  %v645_v12 = vunpack.c.l.b16 %v529_v54 }
  0x2c   : > { %810 = vmatpush.bf16.msrb.mxu1 %v2794_v41  ;;  %1359 = vmatpush.bf16.msrb.mxu0 %v2830_v48  ;;  %v579_v33 = vor.u32 %v578_v21, %v575_v20  ;;  %v589_v34 = vrot.slane %v587_v22, 4  ;;  %v592_v35 = vrot.slane %v590_v24, 5  ;;  %v840_v39 = vld [vmem:[#allocation2 + $0x8] sm:$0xe]  ;;  %v506_v42 = vld [vmem:[#allocation2 + $0xc] sm:$0x1] }
  0x2d   : > { %1668 = vmatpush.bf16.msrb.mxu2 %v2850_v1  ;;  %v598_v41 = vrot.slane %v596_v28, 5  ;;  %v531_v43 = vshrl.u32 %v482_v37, 16  ;;  %v534_v45 = vshll.u32 %v482_v37, 16  ;;  %v2388_v46 = vrot.slane %v840_v39, 9  ;;  %471 = vst [vmem:[#allocation2 + $0x38] sm:$0xf] %v470_v55 }
  0x2e   : > { %v580_v48 = vrot.slane %v579_v33, 4  ;;  %v593_v49 = vor.u32 %v592_v35, %v589_v34  ;;  %v540_v50 = vshll.u32 %v506_v42, 16  ;;  %v2827_v62 = vld [vmem:[%s3618_s3 + $0x120] sm:$0xff]  ;;  %v357_v7 = vrot.slane %v355_v18, 7  ;;  %v439_v8 = vld [vmem:[#allocation2 + $0x10] sm:$0xf] }
  0x2f   : > { %v533_v36 = vrot.slane %v531_v43, 4  ;;  %v536_v52 = vrot.slane %v534_v45, 5  ;;  %v365_v16 = vrot.slane %v363_v5, 7  ;;  %v442_v17 = vld [vmem:[#allocation2 + $0x14] sm:$0x1]  ;;  %v2790_v24 = vld [vmem:[%s3618_s3 + $0x18] sm:$0xff] }
  0x30   : > { %811 = vmatpush.bf16.msrb.mxu1 %v2793_v2  ;;  %1360 = vmatpush.bf16.msrb.mxu0 %v2829_v56  ;;  %v872_v2 = vrot.slane %v506_v42, 5  ;;  %v473_v56 = vsel %vm3108_vm8, %v401_v31, %v472_v26  ;;  %v585_v57 = vsel %vm3176_vm11, %v580_v48, %v584_v27  ;;  %v594_v58 = vrot.slane %v593_v49, 4  ;;  %v487_v13 = vld [vmem:[#allocation2 + $0x30] sm:$0xf]  ;;  %v445_v25 = vld [vmem:[#allocation2 + $0x18] sm:$0xf] }
  0x31   : > { %v542_v60 = vrot.slane %v540_v50, 5  ;;  %v649_v63 = vunpack.c.l.b16 %v585_v57  ;;  %v537_v1 = vor.u32 %v536_v52, %v533_v36  ;;  %474 = vst [vmem:[#allocation2 + $0x3c] sm:$0x1] %v473_v56  ;;  %v601_v22 = vshrl.u32 %v487_v13, 16  ;;  %v448_v26 = vld [vmem:[#allocation2 + $0x1c] sm:$0x1]  ;;  %1669 = vmatpush.bf16.msrb.mxu2 %v2849_v32 }
  0x32   : > { %v873_v61 = vsel %vm3158_vm10, %v2388_v46, %v872_v2  ;;  %v599_v9 = vsel %vm3176_vm11, %v594_v58, %v598_v41  ;;  %v604_v38 = vshll.u32 %v487_v13, 16  ;;  %v368_v5 = vor.u32 %v366_v11, %v365_v16  ;;  %v2826_v27 = vld [vmem:[%s3618_s3 + $0x118] sm:$0xff]  ;;  %v3262_v31 = vld [vmem:[#allocation2 + $0x34] sm:$0x1]  ;;  %v2848_v45 = vld [vmem:[%s3618_s3 + $0x1a8] sm:$0xff] }
  0x33   : > { %v916_v3 = vunpack.c.l.b16 %v873_v61  ;;  %v650_v20 = vunpack.c.l.b16 %v599_v9  ;;  %v538_v21 = vrot.slane %v537_v1, 4  ;;  %v2858_v28 = vld [vmem:[%s3618_s3 + $0x1f8] sm:$0xff]  ;;  %v603_v33 = vrot.slane %v601_v22, 4  ;;  %v3279_v46 = vld [vmem:[#allocation2 + $0x8] sm:$0xf]  ;;  %v2825_v36 = vld [vmem:[%s3618_s3 + $0x110] sm:$0xff] }
  0x34   : > { %812 = vmatpush.bf16.msrb.mxu1 %v2792_v15  ;;  %1361 = vmatpush.bf16.msrb.mxu0 %v2828_v29  ;;  %v358_v15 = vshll.u32 %v3200_v4, 16  ;;  %v361_v4 = vrot.slane %v357_v7, 4  ;;  %v369_v34 = vrot.slane %v365_v16, 4  ;;  %v606_v11 = vrot.slane %v604_v38, 5  ;;  %v488_v39 = vld [vmem:[#allocation2 + $0x38] sm:$0xf] }
  0x35   : > { %v923_v18 = vpack.c.b16 %v916_v3, %v915_v40  ;;  %v655_v29 = vpack.c.b16 %v650_v20, %v649_v63  ;;  %v543_v30 = vsel %vm3176_vm11, %v538_v21, %v542_v60  ;;  %v610_v35 = vshll.u32 %v3262_v31, 16  ;;  %1914 = vmatpush.bf16.msrb.mxu3 %v2858_v28  ;;  %v2789_v40 = vld [vmem:[%s3618_s3 + $0x10] sm:$0xff]  ;;  %1670 = vmatpush.bf16.msrb.mxu2 %v2848_v45  ;;  %v2461_v60 = vld [vmem:[#allocation2 + $0x8] sm:$0xf]  ;;  %v2823_v16 = vld [vmem:[%s3618_s3 + $0x100] sm:$0xff] }
  0x36   : > { %v360_v54 = vor.u32 %v358_v15, %v357_v7  ;;  %v646_v47 = vunpack.c.l.b16 %v543_v30  ;;  %v443_v41 = vsel %vm3108_vm8, %v361_v4, %v442_v17  ;;  %v446_v42 = vsel %vm3095_vm7, %v368_v5, %v445_v25  ;;  %v2788_v61 = vld [vmem:[%s3618_s3 + $0x8] sm:$0xff]  ;;  %v2787_v15 = vld [vmem:[%s3618_s3] sm:$0xff]  ;;  %v2838_v30 = vld [vmem:[%s3618_s3 + $0x178] sm:$0xff] }
  0x37   : > { %987 = vmatmul.bf16.vlgmr.msra.gmra.mxu2 %v923_v18  ;;  %727 = vmatmul.bf16.vlgmr.msra.gmra.mxu1 %v655_v29  ;;  %v449_v43 = vsel %vm3108_vm8, %v369_v34, %v448_v26  ;;  %v607_v50 = vor.u32 %v606_v11, %v603_v33  ;;  %v615_v2 = vshrl.u32 %v488_v39, 16  ;;  %444 = vst [vmem:[#allocation2 + $0x14] sm:$0x1] %v443_v41  ;;  %v612_v52 = vrot.slane %v610_v35, 5  ;;  %v2847_v35 = vld [vmem:[%s3618_s3 + $0x1a0] sm:$0xff] }
  0x38   : > { %813 = vmatpush.bf16.msrb.mxu1 %v2791_v53  ;;  %1362 = vmatpush.bf16.msrb.mxu0 %v2827_v62  ;;  %v440_v37 = vsel %vm3095_vm7, %v360_v54, %v439_v8  ;;  %v653_v48 = vpack.c.b16 %v646_v47, %v645_v12  ;;  %v3281_v49 = vld [vmem:[#allocation2 + $0x3c] sm:$0x1]  ;;  %v618_v53 = vshll.u32 %v488_v39, 16  ;;  %447 = vst [vmem:[#allocation2 + $0x18] sm:$0xf] %v446_v42  ;;  %v2824_v62 = vld [vmem:[%s3618_s3 + $0x108] sm:$0xff] }
  0x39   : > { %441 = vst [vmem:[#allocation2 + $0x10] sm:$0xf] %v440_v37  ;;  %v624_v55 = vshll.u32 %v3281_v49, 16  ;;  %v608_v56 = vrot.slane %v607_v50, 4  ;;  %v617_v57 = vrot.slane %v615_v2, 4  ;;  %v1167_v63 = vshrl.u32 %v3279_v46, 16  ;;  %1671 = vmatpush.bf16.msrb.mxu2 %v2847_v35 }
  0x3a   : > { %717 = vmatmul.bf16.vlgmr.msra.gmra.mxu0 %v653_v48  ;;  %450 = vst [vmem:[#allocation2 + $0x1c] sm:$0x1] %v449_v43  ;;  %v620_v58 = vrot.slane %v618_v53, 5  ;;  %v1170_v8 = vshll.u32 %v3279_v46, 16  ;;  %v2856_v42 = vld [vmem:[%s3618_s3 + $0x1e8] sm:$0xff]  ;;  %v2837_v53 = vld [vmem:[%s3618_s3 + $0x170] sm:$0xff] }
  0x3b   : > { %v613_v1 = vsel %vm3176_vm11, %v608_v56, %v612_v52  ;;  %v626_v7 = vrot.slane %v624_v55, 5  ;;  %v2835_v35 = vld [vmem:[%s3618_s3 + $0x160] sm:$0xff]  ;;  %v3431_v59 = vld [vmem:[#allocation2 + $0x34] sm:$0x1] }
  0x3c   : > { %814 = vmatpush.bf16.msrb.mxu1 %v2790_v24  ;;  %1363 = vmatpush.bf16.msrb.mxu0 %v2826_v27  ;;  %v621_v3 = vor.u32 %v620_v58, %v617_v57  ;;  %v2857_v24 = vld [vmem:[%s3618_s3 + $0x1f0] sm:$0xff]  ;;  %v651_v25 = vunpack.c.l.b16 %v613_v1  ;;  %v1172_v52 = vrot.slane %v1170_v8, 5 }
  0x3d   : > { %1915 = vmatpush.bf16.msrb.mxu3 %v2857_v24  ;;  %v2812_v24 = vld [vmem:[#allocation2 + $0x1c] sm:$0xf0] }
  0x3e   : > { %v622_v17 = vrot.slane %v621_v3, 4  ;;  %v507_v20 = vld [vmem:[#allocation2 + $0x14] sm:$0x1]  ;;  %v2846_v3 = vld [vmem:[%s3618_s3 + $0x198] sm:$0xff] }
  0x3f   : > { %v484_v32 = vld [vmem:[#allocation2 + $0x18] sm:$0xf]  ;;  %v554_v38 = vshll.u32 %v507_v20, 16  ;;  %1672 = vmatpush.bf16.msrb.mxu2 %v2846_v3  ;;  %v845_v3 = vld [vmem:[#allocation2 + $0x30] sm:$0xe] }
  0x40   : > { %815 = vmatpush.bf16.msrb.mxu1 %v2789_v40  ;;  %1364 = vmatpush.bf16.msrb.mxu0 %v2825_v36  ;;  %v483_v9 = vld [vmem:[#allocation2 + $0x10] sm:$0xf]  ;;  %v842_v54 = vld [vmem:[#allocation2 + $0x18] sm:$0xe]  ;;  %v627_v5 = vsel %vm3176_vm11, %v622_v17, %v626_v7  ;;  %v559_v29 = vshrl.u32 %v484_v32, 16  ;;  %v562_v47 = vshll.u32 %v484_v32, 16 }
  0x41   : > { %v2811_v12 = vld [vmem:[#allocation2 + $0xc] sm:$0xf0]  ;;  %v545_v21 = vshrl.u32 %v483_v9, 16  ;;  %v548_v18 = vshll.u32 %v483_v9, 16  ;;  %v508_v26 = vld [vmem:[#allocation2 + $0x1c] sm:$0x1]  ;;  %v652_v33 = vunpack.c.l.b16 %v627_v5  ;;  %1916 = vmatpush.bf16.msrb.mxu3 %v2856_v42 }
  0x42   : > { %v841_v13 = vld [vmem:[#allocation2 + $0x10] sm:$0xe]  ;;  %v2462_v22 = vor.u32 %v2811_v12, %v2461_v60  ;;  %v556_v34 = vrot.slane %v554_v38, 5  ;;  %v568_v11 = vshll.u32 %v508_v26, 16  ;;  %v561_v39 = vrot.slane %v559_v29, 4  ;;  %v3334_v7 = vld [vmem:[%s3618_s3 + $0x238] sm:$0xff] }
  0x43   : > { %v2389_v4 = vrot.slane %v841_v13, 9  ;;  %v547_v27 = vrot.slane %v545_v21, 4  ;;  %v550_v28 = vrot.slane %v548_v18, 5  ;;  %v876_v40 = vrot.slane %v507_v20, 5  ;;  %v1152_v48 = vld [vmem:[#allocation2 + $0x10] sm:$0xf] }
  0x44   : > { %816 = vmatpush.bf16.msrb.mxu1 %v2788_v61  ;;  %1365 = vmatpush.bf16.msrb.mxu0 %v2824_v62  ;;  %v2390_v41 = vrot.slane %v842_v54, 9  ;;  %v656_v43 = vpack.c.b16 %v652_v33, %v651_v25  ;;  %v564_v45 = vrot.slane %v562_v47, 5  ;;  %v880_v46 = vrot.slane %v508_v26, 5  ;;  %v3326_v62 = vld [vmem:[#allocation2 + $0xc] sm:$0x1] }
  0x45   : > { %1121 = vmatmul.bf16.vlgmr.msra.gmra.mxu3 %v2462_v22  ;;  %v551_v37 = vor.u32 %v550_v28, %v547_v27  ;;  %v877_v2 = vsel %vm3158_vm10, %v2389_v4, %v876_v40  ;;  %v1169_v36 = vrot.slane %v1167_v63, 4  ;;  %v570_v56 = vrot.slane %v568_v11, 5  ;;  %v843_v9 = vld [vmem:[#allocation2 + $0x20] sm:$0xe]  ;;  %v844_v12 = vld [vmem:[#allocation2 + $0x28] sm:$0xe] }
  0x46   : > { %v565_v55 = vor.u32 %v564_v45, %v561_v39  ;;  %v881_v57 = vsel %vm3158_vm10, %v2390_v41, %v880_v46  ;;  %v917_v58 = vunpack.c.l.b16 %v877_v2  ;;  %v1181_v63 = vshrl.u32 %v1152_v48, 16  ;;  %v2836_v21 = vld [vmem:[%s3618_s3 + $0x168] sm:$0xff]  ;;  %v2465_v22 = vld [vmem:[#allocation2 + $0x18] sm:$0xf]  ;;  %v2341_v33 = vld [vmem:[#allocation2] sm:$0xf] }
  0x47   : > { %v552_v50 = vrot.slane %v551_v37, 4  ;;  %732 = vmatmul.bf16.gmra.mxu1 %v656_v43  ;;  %v918_v61 = vunpack.c.l.b16 %v881_v57  ;;  %v1184_v1 = vshll.u32 %v1152_v48, 16  ;;  %v1176_v25 = vshll.u32 %v3326_v62, 16  ;;  %v2783_v37 = vld [vmem:[#allocation2 + $0x4] sm:$0xf0]  ;;  %v3364_v43 = vld [vmem:[%s3618_s3 + $0x230] sm:$0xff] }
  0x48   : > { %817 = vmatpush.bf16.msrb.mxu1 %v2787_v15  ;;  %1366 = vmatpush.bf16.msrb.mxu0 %v2823_v16  ;;  %v566_v8 = vrot.slane %v565_v55, 4  ;;  %v3336_v16 = vld [vmem:[#allocation2 + $0x14] sm:$0x1]  ;;  %v1183_v17 = vrot.slane %v1181_v63, 4  ;;  %v1173_v38 = vor.u32 %v1172_v52, %v1169_v36  ;;  %v2391_v54 = vrot.slane %v843_v9, 9 }
  0x49   : > { %v557_v60 = vsel %vm3176_vm11, %v552_v50, %v556_v34  ;;  %v924_v15 = vpack.c.b16 %v918_v61, %v917_v58  ;;  %v1186_v20 = vrot.slane %v1184_v1, 5  ;;  %v884_v4 = vrot.slane %v3203_v6, 5  ;;  %v1154_v34 = vld [vmem:[#allocation2 + $0x18] sm:$0xf]  ;;  %v2855_v6 = vld [vmem:[%s3618_s3 + $0x1e0] sm:$0xff] }
  0x4a   : > { %v647_v13 = vunpack.c.l.b16 %v557_v60  ;;  %v571_v18 = vsel %vm3176_vm11, %v566_v8, %v570_v56  ;;  %v1190_v26 = vshll.u32 %v3336_v16, 16  ;;  %v2392_v27 = vrot.slane %v844_v12, 9  ;;  %v1156_v45 = vld [vmem:[#allocation2 + $0x20] sm:$0xf]  ;;  %1917 = vmatpush.bf16.msrb.mxu3 %v2855_v6  ;;  %v2854_v50 = vld [vmem:[%s3618_s3 + $0x1d8] sm:$0xff] }
  0x4b   : > { %v648_v32 = vunpack.c.l.b16 %v571_v18  ;;  %992 = vmatmul.bf16.gmra.mxu2 %v924_v15  ;;  %v1187_v5 = vor.u32 %v1186_v20, %v1183_v17  ;;  %v888_v28 = vrot.slane %v3215_v19, 5  ;;  %v1174_v47 = vrot.slane %v1173_v38, 4  ;;  %v2845_v19 = vld [vmem:[%s3618_s3 + $0x190] sm:$0xff]  ;;  %v3376_v61 = vld [vmem:[#allocation2 + $0x1c] sm:$0x1] }
  0x4c   : > { %1533 = vmatpush.bf16.msra.mxu1 %v2838_v30  ;;  %2088 = vmatpush.bf16.msra.mxu0 %v3334_v7  ;;  %v2466_v30 = vor.u32 %v2812_v24, %v2465_v22  ;;  %v885_v11 = vsel %vm3158_vm10, %v2391_v54, %v884_v4  ;;  %v1178_v39 = vrot.slane %v1176_v25, 5  ;;  %v1192_v41 = vrot.slane %v1190_v26, 5  ;;  %v2834_v12 = vld [vmem:[%s3618_s3 + $0x158] sm:$0xff]  ;;  %v2469_v18 = vld [vmem:[#allocation2 + $0x28] sm:$0xf]  ;;  %v2843_v24 = vld [vmem:[%s3618_s3 + $0x180] sm:$0xff] }
  0x4d   : > { %v654_v29 = vpack.c.b16 %v648_v32, %v647_v13  ;;  %v1188_v40 = vrot.slane %v1187_v5, 4  ;;  %v889_v42 = vsel %vm3158_vm10, %v2392_v27, %v888_v28  ;;  %v1195_v46 = vshrl.u32 %v1154_v34, 16  ;;  %1673 = vmatpush.bf16.msrb.mxu2 %v2845_v19  ;;  %v2844_v13 = vld [vmem:[%s3618_s3 + $0x188] sm:$0xff]  ;;  %v3390_v22 = vld [vmem:[#allocation2 + $0x24] sm:$0x1] }
  0x4e   : > { %v1198_v48 = vshll.u32 %v1154_v34, 16  ;;  %v2342_v2 = vor.u32 %v2783_v37, %v2341_v33  ;;  %v919_v36 = vunpack.c.l.b16 %v885_v11  ;;  %v920_v52 = vunpack.c.l.b16 %v889_v42  ;;  %1918 = vmatpush.bf16.msrb.mxu3 %v2854_v50  ;;  %v2813_v32 = vld [vmem:[#allocation2 + $0x2c] sm:$0xf0]  ;;  %v2784_v34 = vld [vmem:[#allocation2 + $0x14] sm:$0xf0] }
  0x4f   : > { %722 = vmatmul.bf16.gmra.mxu0 %v654_v29  ;;  %v1179_v55 = vsel %vm3176_vm11, %v1174_v47, %v1178_v39  ;;  %v1193_v56 = vsel %vm3176_vm11, %v1188_v40, %v1192_v41  ;;  %v1209_v57 = vshrl.u32 %v1156_v45, 16  ;;  %v1212_v58 = vshll.u32 %v1156_v45, 16  ;;  %v2345_v33 = vld [vmem:[#allocation2 + $0x10] sm:$0xf]  ;;  %v478_v50 = vld [vmem:[#allocation2 + $0x44] sm:$0x1] }
  0x50   : > { %1534 = vmatpush.bf16.msra.mxu1 %v2837_v53  ;;  %2089 = vmatpush.bf16.msra.mxu0 %v3364_v43  ;;  %v2882_v53 = vunpack.c.h.bf16 %v3048_v23  ;;  %v1197_v63 = vrot.slane %v1195_v46, 4  ;;  %v1200_v1 = vrot.slane %v1198_v48, 5  ;;  %v1295_v8 = vunpack.c.l.b16 %v1179_v55  ;;  %v1160_v37 = vld [vmem:[#allocation2 + $0x30] sm:$0xf]  ;;  %v475_v48 = vld [vmem:[#allocation2 + $0x40] sm:$0xf] }
  0x51   : > { %v1296_v9 = vunpack.c.l.b16 %v1193_v56  ;;  %v925_v23 = vpack.c.b16 %v920_v52, %v919_v36  ;;  %v1211_v17 = vrot.slane %v1209_v57, 4  ;;  %v1214_v20 = vrot.slane %v1212_v58, 5  ;;  %1674 = vmatpush.bf16.msrb.mxu2 %v2844_v13  ;;  %v2853_v41 = vld [vmem:[%s3618_s3 + $0x1d0] sm:$0xff] }
  0x52   : > { %v317_v60 = vmul.f32 %v3024_v10, %v2882_v53  ;;  %v3387_v10 = vld [vmem:[%s3618_s3 + $0x228] sm:$0xff]  ;;  %v1201_v38 = vor.u32 %v1200_v1, %v1197_v63  ;;  %v1204_v54 = vshll.u32 %v3376_v61, 16  ;;  %v2393_v4 = vrot.slane %v845_v3, 9  ;;  %v2833_v42 = vld [vmem:[%s3618_s3 + $0x150] sm:$0xff]  ;;  %1919 = vmatpush.bf16.msrb.mxu3 %v2853_v41 }
  0x53   : > { %v1303_v5 = vpack.c.b16 %v1296_v9, %v1295_v8  ;;  %v896_v27 = vrot.slane %v3281_v49, 5  ;;  %v1215_v29 = vor.u32 %v1214_v20, %v1211_v17  ;;  %v2470_v47 = vor.u32 %v2813_v32, %v2469_v18  ;;  %v1705_v9 = vld [vmem:[#allocation2 + $0x10] sm:$0xf] }
  0x54   : > { %1535 = vmatpush.bf16.msra.mxu1 %v2836_v21  ;;  %v329_v15 = vadd.f32 %v3032_v14, %v317_v60  ;;  %v846_v21 = vld [vmem:[#allocation2 + $0x38] sm:$0xe]  ;;  %v892_v14 = vrot.slane %v3262_v31, 5  ;;  %2090 = vmatpush.bf16.msra.mxu0 %v3387_v10  ;;  %v1206_v19 = vrot.slane %v1204_v54, 5  ;;  %v1158_v31 = vld [vmem:[#allocation2 + $0x28] sm:$0xf]  ;;  %v2346_v55 = vor.u32 %v2784_v34, %v2345_v33 }
  0x55   : > { %1126 = vmatmul.bf16.gmra.mxu3 %v2466_v30  ;;  %v2394_v26 = vrot.slane %v846_v21, 9  ;;  %v1218_v30 = vshll.u32 %v3390_v22, 16  ;;  %1675 = vmatpush.bf16.msrb.mxu2 %v2843_v24  ;;  %v1216_v45 = vrot.slane %v1215_v29, 4  ;;  %v1223_v52 = vshrl.u32 %v1158_v31, 16  ;;  %v2852_v60 = vld [vmem:[%s3618_s3 + $0x1c8] sm:$0xff] }
  0x56   : > { %v337_v25 = vmax.f32 %v329_v15, 0.0  ;;  %v893_v49 = vsel %vm3158_vm10, %v2393_v4, %v892_v14  ;;  %v1226_v53 = vshll.u32 %v1158_v31, 16  ;;  %v1237_v1 = vshrl.u32 %v1160_v37, 16  ;;  %v3429_v15 = vld [vmem:[#allocation2 + $0x2c] sm:$0x1]  ;;  %1920 = vmatpush.bf16.msrb.mxu3 %v2852_v60  ;;  %v2862_v4 = vld [vmem:[%s3618_s3 + $0x218] sm:$0xff] }
  0x57   : > { %818 = vmatmul.bf16.vlgmr.msrb.gmra.mxu1 %v2342_v2  ;;  %v897_v39 = vsel %vm3158_vm10, %v2394_v26, %v896_v27  ;;  %v1220_v46 = vrot.slane %v1218_v30, 5  ;;  %v921_v57 = vunpack.c.l.b16 %v893_v49  ;;  %v1240_v3 = vshll.u32 %v1160_v37, 16  ;;  %v2832_v54 = vld [vmem:[%s3618_s3 + $0x148] sm:$0xff]  ;;  %v2851_v14 = vld [vmem:[%s3618_s3 + $0x1c0] sm:$0xff] }
  0x58   : > { %1536 = vmatpush.bf16.msra.mxu1 %v2835_v35  ;;  %v345_v28 = vpack.c.bf16 %v337_v25, %v337_v25  ;;  %v1202_v35 = vrot.slane %v1201_v38, 4  ;;  %v922_v58 = vunpack.c.l.b16 %v897_v39  ;;  %v1225_v17 = vrot.slane %v1223_v52, 4  ;;  %v2785_v39 = vld [vmem:[#allocation2 + $0x24] sm:$0xf0] }
  0x59   : > { %2917 = vmatpush.bf16.msra.mxu2 %v3334_v7  ;;  %v3414_v7 = vld [vmem:[%s3618_s3 + $0x220] sm:$0xff]  ;;  %v1228_v20 = vrot.slane %v1226_v53, 5  ;;  %v1722_v21 = vshrl.u32 %v1705_v9, 16  ;;  %v1725_v0 = vshll.u32 %v1705_v9, 16  ;;  %v1239_v32 = vrot.slane %v1237_v1, 4 }
  0x5a   : > { %v403_v11 = vshrl.u32 %v345_v28, 16  ;;  %v406_v6 = vshll.u32 %v345_v28, 16  ;;  %v1207_v56 = vsel %vm3176_vm11, %v1202_v35, %v1206_v19  ;;  %2091 = vmatpush.bf16.msra.mxu0 %v3414_v7  ;;  %v1242_v38 = vrot.slane %v1240_v3, 5  ;;  %v2473_v28 = vld [vmem:[#allocation2 + $0x38] sm:$0xf]  ;;  %1921 = vmatpush.bf16.msrb.mxu3 %v2851_v14  ;;  %v2860_v3 = vld [vmem:[%s3618_s3 + $0x208] sm:$0xff] }
  0x5b   : > { %997 = vmatmul.bf16.gmra.mxu2 %v925_v23  ;;  %v1707_v23 = vld [vmem:[#allocation2 + $0x18] sm:$0xf]  ;;  %v1297_v13 = vunpack.c.l.b16 %v1207_v56  ;;  %v1232_v26 = vshll.u32 %v3429_v15, 16  ;;  %v1246_v27 = vshll.u32 %v3431_v59, 16  ;;  %v1724_v29 = vrot.slane %v1722_v21, 4 }
  0x5c   : > { %1537 = vmatpush.bf16.msra.mxu1 %v2834_v12  ;;  %v405_v40 = vrot.slane %v403_v11, 7  ;;  %v1221_v12 = vsel %vm3176_vm11, %v1216_v45, %v1220_v46  ;;  %v1736_v18 = vshrl.u32 %v1707_v23, 16  ;;  %v1739_v24 = vshll.u32 %v1707_v23, 16  ;;  %v3445_v35 = vld [vmem:[#allocation2 + $0x14] sm:$0x1] }
  0x5d   : > { %2918 = vmatpush.bf16.msra.mxu2 %v3364_v43  ;;  %v1298_v25 = vunpack.c.l.b16 %v1221_v12  ;;  %v926_v43 = vpack.c.b16 %v922_v58, %v921_v57  ;;  %v1727_v30 = vrot.slane %v1725_v0, 5  ;;  %v2349_v19 = vld [vmem:[#allocation2 + $0x20] sm:$0xf]  ;;  %v1234_v49 = vrot.slane %v1232_v26, 5  ;;  %v1711_v57 = vld [vmem:[#allocation2 + $0x28] sm:$0xf] }
  0x5e   : > { %v408_v2 = vor.u32 %v406_v6, %v405_v40  ;;  %v409_v36 = vrot.slane %v405_v40, 4  ;;  %2092 = vmatpush.bf16.msra.mxu0 %v2862_v4  ;;  %v1738_v33 = vrot.slane %v1736_v18, 4  ;;  %v1741_v34 = vrot.slane %v1739_v24, 5  ;;  %v1162_v40 = vld [vmem:[#allocation2 + $0x38] sm:$0xf] }
  0x5f   : > { %1367 = vmatmul.bf16.vlgmr.msrb.gmra.mxu0 %v1303_v5  ;;  %v1229_v5 = vor.u32 %v1228_v20, %v1225_v17  ;;  %v1243_v6 = vor.u32 %v1242_v38, %v1239_v32  ;;  %v1728_v41 = vor.u32 %v1727_v30, %v1724_v29  ;;  %v2350_v52 = vor.u32 %v2785_v39, %v2349_v19  ;;  %v1709_v56 = vld [vmem:[#allocation2 + $0x20] sm:$0xf]  ;;  %v2629_v9 = vld [vmem:[#allocation2 + $0x10] sm:$0xf]  ;;  %v2839_v17 = vld [vmem:[#allocation2 + $0x14] sm:$0xf0] }
  0x60   : > { %1538 = vmatpush.bf16.msra.mxu1 %v2833_v42  ;;  %v476_v63 = vsel %vm3095_vm7, %v408_v2, %v475_v48  ;;  %v479_v8 = vsel %vm3108_vm8, %v409_v36, %v478_v50  ;;  %v1731_v42 = vshll.u32 %v3445_v35, 16  ;;  %v1742_v45 = vor.u32 %v1741_v34, %v1738_v33  ;;  %v2831_v2 = vld [vmem:[%s3618_s3 + $0x140] sm:$0xff]  ;;  %v3478_v19 = vld [vmem:[#allocation2 + $0x2c] sm:$0x1] }
  0x61   : > { %477 = vst [vmem:[#allocation2 + $0x40] sm:$0xf] %v476_v63  ;;  %2919 = vmatpush.bf16.msra.mxu2 %v3387_v10  ;;  %v3447_v10 = vld [vmem:[#allocation2 + $0x1c] sm:$0x1]  ;;  %v1230_v37 = vrot.slane %v1229_v5, 4  ;;  %v1244_v48 = vrot.slane %v1243_v6, 4 }
  0x62   : > { %480 = vst [vmem:[#allocation2 + $0x44] sm:$0x1] %v479_v8  ;;  %v1745_v46 = vshll.u32 %v3447_v10, 16  ;;  %v1248_v50 = vrot.slane %v1246_v27, 5  ;;  %v1729_v58 = vrot.slane %v1728_v41, 4  ;;  %v1733_v60 = vrot.slane %v1731_v42, 5 }
  0x63   : > { %v1235_v53 = vsel %vm3176_vm11, %v1230_v37, %v1234_v49  ;;  %v1743_v63 = vrot.slane %v1742_v45, 4  ;;  %v1254_v23 = vshll.u32 %v1162_v40, 16  ;;  %v1750_v20 = vshrl.u32 %v1709_v56, 16  ;;  %v2859_v27 = vld [vmem:[%s3618_s3 + $0x200] sm:$0xff] }
  0x64   : > { %1539 = vmatpush.bf16.msra.mxu1 %v2832_v54  ;;  %v1747_v1 = vrot.slane %v1745_v46, 5  ;;  %v1249_v8 = vsel %vm3176_vm11, %v1244_v48, %v1248_v50  ;;  %v1753_v21 = vshll.u32 %v1709_v56, 16  ;;  %v1764_v0 = vshrl.u32 %v1711_v57, 16  ;;  %v3476_v6 = vld [vmem:[#allocation2 + $0x24] sm:$0x1] }
  0x65   : > { %1131 = vmatmul.bf16.gmra.mxu3 %v2470_v47  ;;  %v1304_v47 = vpack.c.b16 %v1298_v25, %v1297_v13  ;;  %2920 = vmatpush.bf16.msra.mxu2 %v3414_v7  ;;  %v2861_v7 = vld [vmem:[%s3618_s3 + $0x210] sm:$0xff]  ;;  %v1767_v18 = vshll.u32 %v1711_v57, 16  ;;  %v1299_v24 = vunpack.c.l.b16 %v1235_v53  ;;  %v1300_v25 = vunpack.c.l.b16 %v1249_v8  ;;  %v2786_v53 = vld [vmem:[#allocation2 + $0x34] sm:$0xf0] }
  0x66   : > { %2093 = vmatpush.bf16.msra.mxu0 %v2861_v7  ;;  %v1734_v32 = vsel %vm3176_vm11, %v1729_v58, %v1733_v60  ;;  %v1748_v38 = vsel %vm3176_vm11, %v1743_v63, %v1747_v1  ;;  %v2630_v54 = vor.u32 %v2839_v17, %v2629_v9  ;;  %v1256_v14 = vrot.slane %v1254_v23, 5  ;;  %v2353_v50 = vld [vmem:[#allocation2 + $0x30] sm:$0xf]  ;;  %v1715_v63 = vld [vmem:[#allocation2 + $0x38] sm:$0xf] }
  0x67   : > { %823 = vmatmul.bf16.gmra.mxu1 %v2346_v55  ;;  %v1251_v55 = vshrl.u32 %v1162_v40, 16  ;;  %v1752_v29 = vrot.slane %v1750_v20, 4  ;;  %v1755_v30 = vrot.slane %v1753_v21, 5  ;;  %v1766_v33 = vrot.slane %v1764_v0, 4  ;;  %v1713_v60 = vld [vmem:[#allocation2 + $0x30] sm:$0xf] }
  0x68   : > { %v2814_v11 = vld [vmem:[#allocation2 + $0x3c] sm:$0xf0]  ;;  %1540 = vmatpush.bf16.msra.mxu1 %v2831_v2  ;;  %v1769_v34 = vrot.slane %v1767_v18, 5  ;;  %v1759_v42 = vshll.u32 %v3476_v6, 16  ;;  %v1773_v46 = vshll.u32 %v3478_v19, 16  ;;  %v2354_v1 = vor.u32 %v2786_v53, %v2353_v50 }
  0x69   : > { %v2474_v31 = vor.u32 %v2814_v11, %v2473_v28  ;;  %v1164_v36 = vld [vmem:[#allocation2 + $0x40] sm:$0xf]  ;;  %2921 = vmatpush.bf16.msra.mxu2 %v2862_v4  ;;  %v3469_v4 = vld [vmem:[#allocation2 + $0x3c] sm:$0x1]  ;;  %v3474_v28 = vld [vmem:[#allocation2 + $0x44] sm:$0x1]  ;;  %v1851_v11 = vunpack.c.l.b16 %v1748_v38  ;;  %v1756_v41 = vor.u32 %v1755_v30, %v1752_v29 }
  0x6a   : > { %v1265_v12 = vshrl.u32 %v1164_v36, 16  ;;  %v1268_v13 = vshll.u32 %v1164_v36, 16  ;;  %2094 = vmatpush.bf16.msra.mxu0 %v2860_v3  ;;  %v1260_v49 = vshll.u32 %v3469_v4, 16  ;;  %v1274_v40 = vshll.u32 %v3474_v28, 16  ;;  %v2633_v9 = vld [vmem:[#allocation2 + $0x20] sm:$0xf] }
  0x6b   : > { %1002 = vmatmul.bf16.gmra.mxu2 %v926_v43  ;;  %v1253_v43 = vrot.slane %v1251_v55, 4  ;;  %v1770_v45 = vor.u32 %v1769_v34, %v1766_v33  ;;  %v1757_v55 = vrot.slane %v1756_v41, 4  ;;  %v1761_v56 = vrot.slane %v1759_v42, 5  ;;  %v2840_v23 = vld [vmem:[#allocation2 + $0x24] sm:$0xf0] }
  0x6c   : > { %v1267_v5 = vrot.slane %v1265_v12, 4  ;;  %v1270_v26 = vrot.slane %v1268_v13, 5  ;;  %v1775_v58 = vrot.slane %v1773_v46, 5  ;;  %v1396_v12 = vld [vmem:[#allocation2 + $0x8] sm:$0xe]  ;;  %v1778_v21 = vshrl.u32 %v1713_v60, 16 }
  0x6d   : > { %2922 = vmatpush.bf16.msra.mxu2 %v2861_v7  ;;  %v1257_v37 = vor.u32 %v1256_v14, %v1253_v43  ;;  %v1262_v7 = vrot.slane %v1260_v49, 5  ;;  %v1771_v57 = vrot.slane %v1770_v45, 4  ;;  %v1762_v13 = vsel %vm3176_vm11, %v1757_v55, %v1761_v56  ;;  %v1397_v20 = vld [vmem:[#allocation2 + $0x10] sm:$0xe] }
  0x6e   : > { %2095 = vmatpush.bf16.msra.mxu0 %v2859_v27  ;;  %v1271_v39 = vor.u32 %v1270_v26, %v1267_v5  ;;  %v1781_v0 = vshll.u32 %v1713_v60, 16  ;;  %v1792_v18 = vshrl.u32 %v1715_v63, 16  ;;  %v1426_v43 = vrot.slane %v3336_v16, 5  ;;  %v1951_v49 = vld [vmem:[#allocation2 + $0x10] sm:$0xe] }
  0x6f   : > { %1372 = vmatmul.bf16.gmra.mxu0 %v1304_v47  ;;  %v1850_v47 = vunpack.c.l.b16 %v1734_v32  ;;  %v1258_v2 = vrot.slane %v1257_v37, 4  ;;  %v1776_v17 = vsel %vm3176_vm11, %v1771_v57, %v1775_v58  ;;  %v2555_v14 = vrot.slane %v1396_v12, 9  ;;  %v1717_v58 = vld [vmem:[#allocation2 + $0x40] sm:$0xf]  ;;  %v1719_v60 = vld [vmem:[#allocation2 + $0x48] sm:$0xf] }
  0x70   : > { %v1272_v36 = vrot.slane %v1271_v39, 4  ;;  %v2556_v5 = vrot.slane %v1397_v20, 9  ;;  %v1852_v26 = vunpack.c.l.b16 %v1762_v13  ;;  %v1780_v29 = vrot.slane %v1778_v21, 4  ;;  %v1952_v39 = vld [vmem:[#allocation2 + $0x18] sm:$0xe] }
  0x71   : > { %2923 = vmatpush.bf16.msra.mxu2 %v2860_v3  ;;  %v1858_v48 = vpack.c.b16 %v1851_v11, %v1850_v47  ;;  %v1263_v3 = vsel %vm3176_vm11, %v1258_v2, %v1262_v7  ;;  %v1783_v30 = vrot.slane %v1781_v0, 5  ;;  %v1794_v33 = vrot.slane %v1792_v18, 4  ;;  %v3494_v47 = vld [vmem:[#allocation2 + $0x34] sm:$0x1]  ;;  %v3496_v11 = vld [vmem:[#allocation2 + $0x3c] sm:$0x1] }
  0x72   : > { %v1301_v32 = vunpack.c.l.b16 %v1263_v3  ;;  %v1427_v16 = vsel %vm3158_vm10, %v2556_v5, %v1426_v43  ;;  %v1787_v41 = vshll.u32 %v3494_v47, 16  ;;  %v1801_v45 = vshll.u32 %v3496_v11, 16  ;;  %v2637_v3 = vld [vmem:[#allocation2 + $0x30] sm:$0xf] }
  0x73   : > { %v1977_v50 = vrot.slane %v3445_v35, 5  ;;  %v1981_v2 = vrot.slane %v3447_v10, 5  ;;  %v2723_v7 = vrot.slane %v1951_v49, 9  ;;  %v2841_v35 = vld [vmem:[#allocation2 + $0x34] sm:$0xf0]  ;;  %v1806_v12 = vshrl.u32 %v1717_v58, 16 }
  0x74   : > { %v1789_v53 = vrot.slane %v1787_v41, 5  ;;  %v1803_v56 = vrot.slane %v1801_v45, 5  ;;  %v1399_v10 = vld [vmem:[#allocation2 + $0x20] sm:$0xe]  ;;  %v1809_v13 = vshll.u32 %v1717_v58, 16  ;;  %v1823_v20 = vshll.u32 %v1719_v60, 16 }
  0x75   : > { %1136 = vmatmul.bf16.gmra.mxu3 %v2474_v31  ;;  %v1305_v31 = vpack.c.b16 %v1300_v25, %v1299_v24  ;;  %2924 = vmatpush.bf16.msra.mxu2 %v2859_v27  ;;  %v1795_v24 = vshll.u32 %v1715_v63, 16  ;;  %v1422_v25 = vrot.slane %v3326_v62, 5  ;;  %v1853_v27 = vunpack.c.l.b16 %v1776_v17  ;;  %v1401_v58 = vld [vmem:[#allocation2 + $0x30] sm:$0xe] }
  0x76   : > { %v1978_v63 = vsel %vm3158_vm10, %v2723_v7, %v1977_v50  ;;  %v1820_v17 = vshrl.u32 %v1719_v60, 16  ;;  %v2638_v18 = vor.u32 %v2841_v35, %v2637_v3  ;;  %v2558_v43 = vrot.slane %v1399_v10, 9 }
  0x77   : > { %828 = vmatmul.bf16.gmra.mxu1 %v2350_v52  ;;  %v1276_v52 = vrot.slane %v1274_v40, 5  ;;  %v1797_v34 = vrot.slane %v1795_v24, 5  ;;  %v1423_v62 = vsel %vm3158_vm10, %v2555_v14, %v1422_v25  ;;  %v1859_v37 = vpack.c.b16 %v1853_v27, %v1852_v26  ;;  %v1953_v14 = vld [vmem:[#allocation2 + $0x20] sm:$0xe] }
  0x78   : > { %v1784_v40 = vor.u32 %v1783_v30, %v1780_v29  ;;  %v1469_v46 = vunpack.c.l.b16 %v1423_v62  ;;  %v2024_v21 = vunpack.c.l.b16 %v1978_v63  ;;  %v1430_v25 = vrot.slane %v3376_v61, 5 }
  0x79   : > { %v1277_v8 = vsel %vm3176_vm11, %v1272_v36, %v1276_v52  ;;  %v1798_v42 = vor.u32 %v1797_v34, %v1794_v33  ;;  %v2724_v36 = vrot.slane %v1952_v39, 9  ;;  %v1808_v5 = vrot.slane %v1806_v12, 4  ;;  %v3516_v33 = vld [vmem:[#allocation2 + $0x44] sm:$0x1]  ;;  %v3518_v34 = vld [vmem:[#allocation2 + $0x4c] sm:$0x1] }
  0x7a   : > { %v1302_v38 = vunpack.c.l.b16 %v1277_v8  ;;  %v1785_v52 = vrot.slane %v1784_v40, 4  ;;  %v1398_v8 = vld [vmem:[#allocation2 + $0x18] sm:$0xe]  ;;  %v1811_v26 = vrot.slane %v1809_v13, 5  ;;  %v1822_v27 = vrot.slane %v1820_v17, 4 }
  0x7b   : > { %1676 = vmatmul.bf16.vlgmr.msrb.gmra.mxu2 %v2630_v54  ;;  %v2634_v54 = vor.u32 %v2840_v23, %v2633_v9  ;;  %v1799_v55 = vrot.slane %v1798_v42, 4  ;;  %v2557_v24 = vrot.slane %v1398_v8, 9  ;;  %v1825_v29 = vrot.slane %v1823_v20, 5  ;;  %v1957_v13 = vld [vmem:[#allocation2 + $0x40] sm:$0xe] }
  0x7c   : > { %v1790_v9 = vsel %vm3176_vm11, %v1785_v52, %v1789_v53  ;;  %v1812_v49 = vor.u32 %v1811_v26, %v1808_v5  ;;  %v1815_v39 = vshll.u32 %v3516_v33, 16  ;;  %v1829_v41 = vshll.u32 %v3518_v34, 16  ;;  %v1958_v17 = vld [vmem:[#allocation2 + $0x48] sm:$0xe] }
  0x7d   : > { %v1804_v23 = vsel %vm3176_vm11, %v1799_v55, %v1803_v56  ;;  %v1826_v40 = vor.u32 %v1825_v29, %v1822_v27  ;;  %v2641_v55 = vld [vmem:[#allocation2 + $0x40] sm:$0xf]  ;;  %v2842_v56 = vld [vmem:[#allocation2 + $0x44] sm:$0xf0]  ;;  %v1438_v8 = vrot.slane %v3429_v15, 5  ;;  %v2560_v10 = vrot.slane %v1401_v58, 9 }
  0x7e   : > { %v1817_v7 = vrot.slane %v1815_v39, 5  ;;  %v1955_v15 = vld [vmem:[#allocation2 + $0x30] sm:$0xe]  ;;  %v1997_v26 = vrot.slane %v3496_v11, 5  ;;  %v1403_v11 = vld [vmem:[#allocation2 + $0x40] sm:$0xe] }
  0x7f   : > { %1377 = vmatmul.bf16.gmra.mxu0 %v1305_v31  ;;  %v1306_v31 = vpack.c.b16 %v1302_v38, %v1301_v32  ;;  %v1434_v32 = vrot.slane %v3390_v22, 5  ;;  %v1854_v38 = vunpack.c.l.b16 %v1790_v9  ;;  %v1954_v22 = vld [vmem:[#allocation2 + $0x28] sm:$0xe]  ;;  %v1442_v9 = vrot.slane %v3431_v59, 5 }
  0x81   : > { %v1435_v61 = vsel %vm3158_vm10, %v2558_v43, %v1434_v32  ;;  %v1443_v51 = vsel %vm3158_vm10, %v2560_v10, %v1442_v9  ;;  %v1956_v43 = vld [vmem:[#allocation2 + $0x38] sm:$0xe] }
  0x82   : > { %v1472_v45 = vunpack.c.l.b16 %v1435_v61  ;;  %v2728_v5 = vrot.slane %v1956_v43, 9 }
  0x85   : > { %1922 = vmatmul.bf16.vlgmr.msrb.gmra.mxu3 %v1858_v48  ;;  %v1470_v48 = vunpack.c.l.b16 %v1427_v16  ;;  %v2725_v16 = vrot.slane %v1953_v14, 9  ;;  %v1993_v14 = vrot.slane %v3494_v47, 5  ;;  %v1998_v47 = vsel %vm3158_vm10, %v2728_v5, %v1997_v26 }
  0x87   : > { %833 = vmatmul.bf16.gmra.mxu1 %v2354_v1  ;;  %v1477_v57 = vpack.c.b16 %v1470_v48, %v1469_v46  ;;  %v1982_v1 = vsel %vm3158_vm10, %v2724_v36, %v1981_v2  ;;  %v2726_v46 = vrot.slane %v1954_v22, 9  ;;  %v1989_v48 = vrot.slane %v3478_v19, 5  ;;  %v1402_v22 = vld [vmem:[#allocation2 + $0x38] sm:$0xe] }
  0x88   : > { %v2025_v0 = vunpack.c.l.b16 %v1982_v1  ;;  %v1813_v2 = vrot.slane %v1812_v49, 4  ;;  %v1827_v36 = vrot.slane %v1826_v40, 4  ;;  %v2642_v1 = vor.u32 %v2842_v56, %v2641_v55 }
  0x89   : > { %v1990_v53 = vsel %vm3158_vm10, %v2726_v46, %v1989_v48  ;;  %v2561_v39 = vrot.slane %v1402_v22, 9  ;;  %v1446_v40 = vrot.slane %v3469_v4, 5 }
  0x8a   : > { %v2032_v30 = vpack.c.b16 %v2025_v0, %v2024_v21  ;;  %v2027_v63 = vunpack.c.l.b16 %v1990_v53  ;;  %v1818_v19 = vsel %vm3176_vm11, %v1813_v2, %v1817_v7  ;;  %v2001_v0 = vrot.slane %v3516_v33, 5 }
  0x8b   : > { %1681 = vmatmul.bf16.gmra.mxu2 %v2634_v54  ;;  %v1855_v54 = vunpack.c.l.b16 %v1804_v23  ;;  %v1856_v23 = vunpack.c.l.b16 %v1818_v19 }
  0x8d   : > { %v1860_v62 = vpack.c.b16 %v1855_v54, %v1854_v38  ;;  %v1474_v38 = vunpack.c.l.b16 %v1443_v51  ;;  %v2727_v54 = vrot.slane %v1955_v15, 9 }
  0x8f   : > { %1382 = vmatmul.bf16.gmra.mxu0 %v1306_v31  ;;  %v1431_v31 = vsel %vm3158_vm10, %v2557_v24, %v1430_v25  ;;  %v2729_v24 = vrot.slane %v1957_v13, 9  ;;  %v2730_v25 = vrot.slane %v1958_v17, 9  ;;  %v1994_v61 = vsel %vm3158_vm10, %v2727_v54, %v1993_v14 }
  0x90   : > { %v1471_v42 = vunpack.c.l.b16 %v1431_v31 }
  0x91   : > { %v2002_v27 = vsel %vm3158_vm10, %v2729_v24, %v2001_v0 }
  0x92   : > { %v1478_v52 = vpack.c.b16 %v1472_v45, %v1471_v42  ;;  %v2030_v33 = vunpack.c.l.b16 %v2002_v27  ;;  %v1450_v42 = vrot.slane %v3474_v28, 5 }
  0x95   : > { %1927 = vmatmul.bf16.gmra.mxu3 %v1859_v37  ;;  %v1985_v37 = vrot.slane %v3476_v6, 5  ;;  %v1831_v6 = vrot.slane %v1829_v41, 5  ;;  %v2562_v41 = vrot.slane %v1403_v11, 9 }
  0x97   : > { %1541 = vmatmul.bf16.vlgmr.msra.gmra.mxu1 %v1477_v57  ;;  %v1986_v50 = vsel %vm3158_vm10, %v2725_v16, %v1985_v37  ;;  %v1400_v57 = vld [vmem:[#allocation2 + $0x28] sm:$0xe]  ;;  %v1832_v3 = vsel %vm3176_vm11, %v1827_v36, %v1831_v6  ;;  %v2029_v16 = vunpack.c.l.b16 %v1998_v47  ;;  %v1451_v2 = vsel %vm3158_vm10, %v2562_v41, %v1450_v42 }
  0x98   : > { %v2026_v60 = vunpack.c.l.b16 %v1986_v50  ;;  %v2559_v35 = vrot.slane %v1400_v57, 9  ;;  %v1857_v12 = vunpack.c.l.b16 %v1832_v3  ;;  %v1447_v50 = vsel %vm3158_vm10, %v2561_v39, %v1446_v40 }
  0x99   : > { %v1475_v7 = vunpack.c.l.b16 %v1447_v50  ;;  %v1476_v36 = vunpack.c.l.b16 %v1451_v2 }
  0x9a   : > { %v2033_v20 = vpack.c.b16 %v2027_v63, %v2026_v60  ;;  %v1439_v21 = vsel %vm3158_vm10, %v2559_v35, %v1438_v8  ;;  %v1861_v59 = vpack.c.b16 %v1857_v12, %v1856_v23 }
  0x9b   : > { %1686 = vmatmul.bf16.gmra.mxu2 %v2638_v18  ;;  %v2005_v18 = vrot.slane %v3518_v34, 5  ;;  %v1473_v32 = vunpack.c.l.b16 %v1439_v21 }
  0x9d   : > { %v2006_v29 = vsel %vm3158_vm10, %v2730_v25, %v2005_v18 }
  0x9e   : > { %v2031_v34 = vunpack.c.l.b16 %v2006_v29 }
  0x9f   : > { %2096 = vmatmul.bf16.vlgmr.msra.gmra.mxu0 %v2032_v30  ;;  %v1479_v30 = vpack.c.b16 %v1474_v38, %v1473_v32 }
  0xa0   : > { %v2035_v37 = vpack.c.b16 %v2031_v34, %v2030_v33 }
  0xa5   : > { %1932 = vmatmul.bf16.gmra.mxu3 %v1860_v62  ;;  %v2028_v62 = vunpack.c.l.b16 %v1994_v61 }
  0xa7   : > { %1546 = vmatmul.bf16.gmra.mxu1 %v1478_v52  ;;  %v2034_v46 = vpack.c.b16 %v2029_v16, %v2028_v62  ;;  %v1480_v52 = vpack.c.b16 %v1476_v36, %v1475_v7 }
  0xab   : > { %1691 = vmatmul.bf16.gmra.mxu2 %v2642_v1 }
  0xaf   : > { %2101 = vmatmul.bf16.gmra.mxu0 %v2033_v20 }
  0xb4   : > { %v3550_v31 = vpop.f32.mrf.mxu1 }
  0xb5   : > { %1937 = vmatmul.bf16.gmra.mxu3 %v1861_v59 }
  0xb7   : > { %1551 = vmatmul.bf16.gmra.mxu1 %v1479_v30  ;;  %v718_v49 = vpop.f32.mrf.mxu0 }
  0xba   : > { %v988_v45 = vpop.f32.mrf.mxu2 }
  0xbb   : > { %2111 = vmatmul.bf16.vlgmr.msra.gmra.mxu2 %v2035_v37 }
  0xbc   : > { %v730_v48 = vpop.f32.mrf.mxu1 }
  0xbf   : > { %2106 = vmatmul.bf16.gmra.mxu0 %v2034_v46  ;;  %v720_v6 = vpop.f32.mrf.mxu0 }
  0xc2   : > { %v990_v53 = vpop.f32.mrf.mxu2 }
  0xc4   : > { %v733_v4 = vpop.f32.mrf.mxu1 }
  0xc7   : > { %1556 = vmatmul.bf16.gmra.mxu1 %v1480_v52 }
  0xc8   : > { %v1122_v55 = vpop.f32.mrf.mxu3 }
  0xcc   : > { %v723_v28 = vpop.f32.mrf.mxu0  ;;  %v735_v56 = vpop.f32.mrf.mxu1 }
  0xce   : > { %v993_v58 = vpop.f32.mrf.mxu2 }
  0xd0   : > { %v1124_v57 = vpop.f32.mrf.mxu3 }
  0xd4   : > { %v725_v60 = vpop.f32.mrf.mxu0  ;;  %v819_v63 = vpop.f32.mrf.mxu1 }
  0xd5   : > { %v820_v1 = vadd.f32 %v819_v63, %v718_v49 }
  0xd6   : > { %v995_v3 = vpop.f32.mrf.mxu2 }
  0xd7   : > { %v1008_v44 = vadd.f32 %v988_v45, %v820_v1 }
  0xd8   : > { %v1127_v19 = vpop.f32.mrf.mxu3 }
  0xd9   : > { %v1142_v35 = vadd.f32 %v1122_v55, %v1008_v44 }
  0xdc   : > { %v1368_v8 = vpop.f32.mrf.mxu0  ;;  %v821_v10 = vpop.f32.mrf.mxu1 }
  0xdd   : > { %v1388_v9 = vadd.f32 %v1368_v8, %v1142_v35  ;;  %v822_v23 = vadd.f32 %v821_v10, %v720_v6 }
  0xde   : > { %v998_v13 = vpop.f32.mrf.mxu2 }
  0xdf   : > { %v1009_v17 = vadd.f32 %v990_v53, %v822_v23 }
  0xe0   : > { %v3562_v12 = vpop.f32.mrf.mxu3 }
  0xe1   : > { %v1143_v55 = vadd.f32 %v1124_v57, %v1009_v17 }
  0xe4   : > { %v1370_v20 = vpop.f32.mrf.mxu0  ;;  %v824_v21 = vpop.f32.mrf.mxu1 }
  0xe5   : > { %v825_v51 = vadd.f32 %v824_v21, %v723_v28 }
  0xe6   : > { %v1000_v18 = vpop.f32.mrf.mxu2 }
  0xe7   : > { %v1010_v15 = vadd.f32 %v993_v58, %v825_v51 }
  0xe8   : > { %v1132_v0 = vpop.f32.mrf.mxu3 }
  0xe9   : > { %v1144_v24 = vadd.f32 %v1127_v19, %v1010_v15 }
  0xec   : > { %v1373_v25 = vpop.f32.mrf.mxu0  ;;  %v826_v59 = vpop.f32.mrf.mxu1 }
  0xed   : > { %v1390_v43 = vadd.f32 %v1373_v25, %v1144_v24  ;;  %v827_v32 = vadd.f32 %v826_v59, %v725_v60 }
  0xee   : > { %v1003_v54 = vpop.f32.mrf.mxu2 }
  0xef   : > { %v1011_v14 = vadd.f32 %v995_v3, %v827_v32 }
  0xf0   : > { %v3564_v38 = vpop.f32.mrf.mxu3 }
  0xf4   : > { %v1375_v5 = vpop.f32.mrf.mxu0  ;;  %v829_v26 = vpop.f32.mrf.mxu1 }
  0xf5   : > { %v830_v27 = vadd.f32 %v829_v26, %v3550_v31 }
  0xf6   : > { %v1005_v30 = vpop.f32.mrf.mxu2 }
  0xf7   : > { %v1012_v33 = vadd.f32 %v998_v13, %v830_v27 }
  0xf8   : > { %v3567_v29 = vpop.f32.mrf.mxu3 }
  0xf9   : > { %v1146_v34 = vadd.f32 %v1132_v0, %v1012_v33 }
  0xfc   : > { %v1378_v61 = vpop.f32.mrf.mxu0  ;;  %v831_v47 = vpop.f32.mrf.mxu1 }
  0xfd   : > { %v3569_v22 = vadd.f32 %v1378_v61, %v1146_v34  ;;  %v832_v11 = vadd.f32 %v831_v47, %v730_v48 }
  0xfe   : > { %v1677_v62 = vpop.f32.mrf.mxu2 }
  0xff   : > { %v1013_v16 = vadd.f32 %v1000_v18, %v832_v11 }
 0x100   : > { %v3571_v37 = vpop.f32.mrf.mxu3 }
 0x104   : > { %v3573_v49 = vpop.f32.mrf.mxu0  ;;  %v834_v39 = vpop.f32.mrf.mxu1 }
 0x105   : > { %v835_v40 = vadd.f32 %v834_v39, %v733_v4  ;;  %v1389_v4 = vadd.f32 %v1370_v20, %v1143_v55  ;;  %v1147_v39 = vadd.f32 %v3564_v38, %v1013_v16 }
 0x106   : > { %v1679_v41 = vpop.f32.mrf.mxu2 }
 0x107   : > { %v3575_v31 = vadd.f32 %v1003_v54, %v835_v40 }
 0x108   : > { %v1923_v42 = vpop.f32.mrf.mxu3 }
 0x10c   : > { %v3577_v45 = vpop.f32.mrf.mxu0  ;;  %v836_v46 = vpop.f32.mrf.mxu1 }
 0x10d   : > { %v837_v50 = vadd.f32 %v836_v46, %v735_v56 }
 0x10e   : > { %v1682_v2 = vpop.f32.mrf.mxu2 }
 0x10f   : > { %v3579_v7 = vadd.f32 %v1005_v30, %v837_v50 }
 0x110   : > { %v1925_v48 = vpop.f32.mrf.mxu3 }
 0x114   : > { %v3581_v36 = vpop.f32.mrf.mxu0  ;;  %v1542_v6 = vpop.f32.mrf.mxu1 }
 0x115   : > { %v1562_v52 = vadd.f32 %v1542_v6, %v1388_v9  ;;  %v1145_v9 = vadd.f32 %v3562_v12, %v1011_v14 }
 0x116   : > { %v1684_v53 = vpop.f32.mrf.mxu2 }
 0x117   : > { %v1697_v28 = vadd.f32 %v1677_v62, %v1562_v52  ;;  %v1391_v25 = vadd.f32 %v1375_v5, %v1145_v9 }
 0x118   : > { %v1928_v1 = vpop.f32.mrf.mxu3 }
 0x119   : > { %v1943_v19 = vadd.f32 %v1923_v42, %v1697_v28 }
 0x11c   : > { %v2097_v58 = vpop.f32.mrf.mxu0  ;;  %v1544_v60 = vpop.f32.mrf.mxu1 }
 0x11d   : > { %v1563_v63 = vadd.f32 %v1544_v60, %v1389_v4  ;;  %v2117_v35 = vadd.f32 %v2097_v58, %v1943_v19 }
 0x11e   : > { %v1687_v56 = vpop.f32.mrf.mxu2 }
 0x11f   : > { %v1698_v3 = vadd.f32 %v1679_v41, %v1563_v63  ;;  %v2155_v21 = vmul.f32 %v2117_v35, %v2117_v35 }
 0x120   : > { %v1930_v0 = vpop.f32.mrf.mxu3 }
 0x121   : > { %v1944_v44 = vadd.f32 %v1925_v48, %v1698_v3 }
 0x124   : > { %v2099_v8 = vpop.f32.mrf.mxu0  ;;  %v1547_v10 = vpop.f32.mrf.mxu1 }
 0x125   : > { %v2118_v23 = vadd.f32 %v2099_v8, %v1944_v44  ;;  %v1564_v13 = vadd.f32 %v1547_v10, %v1390_v43 }
 0x126   : > { %v1689_v15 = vpop.f32.mrf.mxu2 }
 0x127   : > { %v2886_v57 = vpack.c.bf16 %v2118_v23, %v2117_v35  ;;  %v2141_v17 = vadd.f32 %v2118_v23, %v2117_v35  ;;  %v2156_v20 = vmul.f32 %v2118_v23, %v2118_v23  ;;  %v1699_v51 = vadd.f32 %v1682_v2, %v1564_v13 }
 0x128   : > { %v1933_v30 = vpop.f32.mrf.mxu3  ;;  %v1393_v2 = vadd.f32 %v3573_v49, %v1147_v39 }
 0x129   : > { %2887 = vst [vmem:[%s3589_s29] sm:$0xff] %v2886_v57   ;;  %v2163_v18 = vadd.f32 %v2156_v20, %v2155_v21  ;;  %v1945_v24 = vadd.f32 %v1928_v1, %v1699_v51 }
 0x12c   : > { %v2102_v59 = vpop.f32.mrf.mxu0  ;;  %v1549_v12 = vpop.f32.mrf.mxu1 }
 0x12d   : > { %v2119_v43 = vadd.f32 %v2102_v59, %v1945_v24  ;;  %v1565_v32 = vadd.f32 %v1549_v12, %v1391_v25 }
 0x12e   : > { %v1692_v34 = vpop.f32.mrf.mxu2 }
 0x12f   : > { %v2142_v54 = vadd.f32 %v2141_v17, %v2119_v43  ;;  %v2157_v14 = vmul.f32 %v2119_v43, %v2119_v43  ;;  %v1700_v26 = vadd.f32 %v1684_v53, %v1565_v32 }
 0x130   : > { %v1935_v48 = vpop.f32.mrf.mxu3 }
 0x131   : > { %v2164_v27 = vadd.f32 %v2163_v18, %v2157_v14  ;;  %v1946_v33 = vadd.f32 %v1930_v0, %v1700_v26 }
 0x134   : > { %v2104_v61 = vpop.f32.mrf.mxu0  ;;  %v1552_v47 = vpop.f32.mrf.mxu1 }
 0x135   : > { %v2120_v11 = vadd.f32 %v2104_v61, %v1946_v33  ;;  %v1566_v62 = vadd.f32 %v1552_v47, %v3569_v22  ;;  %v1148_v22 = vadd.f32 %v3567_v29, %v3575_v31 }
 0x136   : > { %v1694_v28 = vpop.f32.mrf.mxu2 }
 0x137   : > { %v2891_v5 = vpack.c.bf16 %v2120_v11, %v2119_v43  ;;  %v2143_v40 = vadd.f32 %v2142_v54, %v2120_v11  ;;  %v2158_v41 = vmul.f32 %v2120_v11, %v2120_v11  ;;  %v1701_v42 = vadd.f32 %v1687_v56, %v1566_v62 }
 0x138   : > { %v1394_v63 = vadd.f32 %v3577_v45, %v1148_v22  ;;  %v1149_v56 = vadd.f32 %v3571_v37, %v3579_v7  ;;  %v1938_v44 = vpop.f32.mrf.mxu3 }
 0x139   : > { %2906 = vst [vmem:[%s3589_s29 + $0x8] sm:$0xff] %v2891_v5   ;;  %v2165_v46 = vadd.f32 %v2164_v27, %v2158_v41  ;;  %v1947_v50 = vadd.f32 %v1933_v30, %v1701_v42 }
 0x13a   : > { %v1395_v9 = vadd.f32 %v3581_v36, %v1149_v56 }
 0x13c   : > { %v2107_v6 = vpop.f32.mrf.mxu0  ;;  %v1554_v52 = vpop.f32.mrf.mxu1 }
 0x13d   : > { %v2121_v53 = vadd.f32 %v2107_v6, %v1947_v50  ;;  %v1567_v55 = vadd.f32 %v1554_v52, %v1393_v2 }
 0x13e   : > { %v2112_v31 = vpop.f32.mrf.mxu2 }
 0x13f   : > { %v2144_v4 = vadd.f32 %v2143_v40, %v2121_v53  ;;  %v2159_v38 = vmul.f32 %v2121_v53, %v2121_v53  ;;  %v1702_v16 = vadd.f32 %v1689_v15, %v1567_v55 }
 0x140   : > { %v1940_v37 = vpop.f32.mrf.mxu3 }
 0x141   : > { %v2166_v58 = vadd.f32 %v2165_v46, %v2159_v38  ;;  %v1948_v60 = vadd.f32 %v1935_v48, %v1702_v16 }
 0x144   : > { %v2109_v1 = vpop.f32.mrf.mxu0  ;;  %v1557_v19 = vpop.f32.mrf.mxu1 }
 0x145   : > { %v2122_v49 = vadd.f32 %v2109_v1, %v1948_v60  ;;  %v1568_v3 = vadd.f32 %v1557_v19, %v1394_v63 }
 0x146   : > { %v2114_v18 = vpop.f32.mrf.mxu2 }
 0x147   : > { %v2896_v35 = vpack.c.bf16 %v2122_v49, %v2121_v53  ;;  %v2145_v8 = vadd.f32 %v2144_v4, %v2122_v49  ;;  %v2160_v10 = vmul.f32 %v2122_v49, %v2122_v49  ;;  %v1703_v29 = vadd.f32 %v1692_v34, %v1568_v3 }
 0x149   : > { %2907 = vst [vmem:[%s3589_s29 + $0x10] sm:$0xff] %v2896_v35   ;;  %v2167_v23 = vadd.f32 %v2166_v58, %v2160_v10  ;;  %v1949_v13 = vadd.f32 %v1938_v44, %v1703_v29 }
 0x14b   : > { %v2123_v45 = vadd.f32 %v2112_v31, %v1949_v13 }
 0x14c   : > { %v1559_v21 = vpop.f32.mrf.mxu1 }
 0x14d   : > { %v2146_v57 = vadd.f32 %v2145_v8, %v2123_v45  ;;  %v2161_v17 = vmul.f32 %v2123_v45, %v2123_v45  ;;  %v1569_v20 = vadd.f32 %v1559_v21, %v1395_v9 }
 0x14f   : > { %v2168_v51 = vadd.f32 %v2167_v23, %v2161_v17  ;;  %v1704_v0 = vadd.f32 %v1694_v28, %v1569_v20 }
 0x151   : > { %v1950_v7 = vadd.f32 %v1940_v37, %v1704_v0 }
 0x153   : > { %v2124_v15 = vadd.f32 %v2114_v18, %v1950_v7 }
 0x155   : > { %v2901_v24 = vpack.c.bf16 %v2124_v15, %v2123_v45  ;;  %v2147_v25 = vadd.f32 %v2146_v57, %v2124_v15  ;;  %v2162_v59 = vmul.f32 %v2124_v15, %v2124_v15 }
 0x157   : > { %2908 = vst [vmem:[%s3589_s29 + $0x18] sm:$0xff] %v2901_v24   ;;  %v2148_v12 = vrot.slane %v2147_v25, 4  ;;  %v2169_v43 = vadd.f32 %v2168_v51, %v2162_v59 }
 0x159   : > { %v2149_v36 = vadd.f32 %v2148_v12, %v2147_v25  ;;  %v2170_v32 = vrot.slane %v2169_v43, 4 }
 0x15b   : > { %v2150_v54 = vrot.slane %v2149_v36, 2  ;;  %v2171_v14 = vadd.f32 %v2170_v32, %v2169_v43 }
 0x15d   : > { %v2151_v26 = vadd.f32 %v2150_v54, %v2149_v36  ;;  %v2172_v27 = vrot.slane %v2171_v14, 2 }
 0x15f   : > { %v2152_v30 = vrot.slane %v2151_v26, 1  ;;  %v2173_v33 = vadd.f32 %v2172_v27, %v2171_v14 }
 0x161   : > { %v2153_v34 = vadd.f32 %v2152_v30, %v2151_v26  ;;  %v2174_v61 = vrot.slane %v2173_v33, 1 }
 0x163   : > { %2154 = vst [vmem:[%s265_s7] sm:$0x1] %v2153_v34  ;;  %v2175_v47 = vadd.f32 %v2174_v61, %v2173_v33 }
 0x165   : > { %2176 = vst [vmem:[%s268_s11] sm:$0x1] %v2175_v47 }
 0x166 PF: > { %s17_s21 = sadd.s32 1, %s2942_s21  }
 0x167   : > { %p14_p4 = scmp.ge.s32.totalorder %s17_s21, 10  }
 0x169   :  { %16 = sbr.rel (!%p14_p4) target bundleno = 1 (0x1), region = 100 }

// kernel: bottleneck_transform.6
= control target key start
LH: loop header
LB: loop body
LE: loop exit
PB: predicated region body
PF: predicated region fallthrough
CT: control target
= control target key end

     0   :  { %s2153_s3 = inlined_call_operand.vmem [shape: bf16[128,128], index: 3, kind: input, shape index: {}]   ;;  %s2154_s1 = inlined_call_operand.vmem [shape: f32[1,128], index: 1, kind: input, shape index: {}]   ;;  %s2155_s2 = inlined_call_operand.vmem [shape: f32[1,128], index: 2, kind: input, shape index: {}]   ;;  %s2156_s0 = inlined_call_operand.vmem [shape: bf16[8,64,128], index: 0, kind: input, shape index: {}]   ;;  %s2157_s4 = inlined_call_operand.vmem [shape: bf16[8,64,128], index: 4, kind: output, shape index: {0}]   ;;  %s2158_s5 = inlined_call_operand.vmem [shape: f32[1,1,128], index: 5, kind: output, shape index: {1}]   ;;  %s2159_s6 = inlined_call_operand.vmem [shape: f32[1,1,128], index: 6, kind: output, shape index: {2}]  }
   0x1   :  { %v1093_v0 = vld [vmem:[%s2153_s3 + $0x38] sm:$0xff]  ;;  %v1092_v1 = vld [vmem:[%s2153_s3 + $0x30] sm:$0xff]  ;;  %v1091_v2 = vld [vmem:[%s2153_s3 + $0x28] sm:$0xff] }
   0x2   :  { %541 = vmatpush.bf16.msra.mxu0 %v1093_v0  ;;  %1444 = vmatpush.bf16.msra.mxu1 %v1093_v0  ;;  %v1090_v3 = vld [vmem:[%s2153_s3 + $0x20] sm:$0xff]  ;;  %v1089_v8 = vld [vmem:[%s2153_s3 + $0x18] sm:$0xff]  ;;  %v1088_v17 = vld [vmem:[%s2153_s3 + $0x10] sm:$0xff] }
   0x3   :  { %1445 = vmatpush.bf16.msra.mxu2 %v1093_v0  ;;  %1446 = vmatpush.bf16.msra.mxu3 %v1093_v0  ;;  %v1095_v4 = vld [vmem:[%s2156_s0] sm:$0xff]   ;;  %v1087_v22 = vld [vmem:[%s2153_s3 + $0x8] sm:$0xff]  ;;  %v1383_v47 = vld [vmem:[%s2156_s0 + $0x10] sm:$0xff]  }
   0x4   :  { %v1096_v5 = vunpack.c.l.bf16 %v1095_v4  ;;  %v1097_v6 = vunpack.c.h.bf16 %v1095_v4  ;;  %v1523_v7 = vld [vmem:[%s2154_s1] ss:$0 sm:$0xff]  ;;  %v1382_v25 = vld [vmem:[%s2156_s0 + $0x8] sm:$0xff]   ;;  %v1104_v54 = vunpack.c.l.bf16 %v1383_v47  ;;  %v1105_v55 = vunpack.c.h.bf16 %v1383_v47  ;;  %v1391_v60 = vld [vmem:[%s2156_s0 + $0x50] sm:$0xff]  }
   0x5   :  { %v1389_v9 = vld [vmem:[%s2156_s0 + $0x40] sm:$0xff]   ;;  %v1100_v29 = vunpack.c.l.bf16 %v1382_v25  ;;  %v1101_v30 = vunpack.c.h.bf16 %v1382_v25  ;;  %v1390_v33 = vld [vmem:[%s2156_s0 + $0x48] sm:$0xff]   ;;  %v1136_v63 = vunpack.c.l.bf16 %v1391_v60  ;;  %v1137_v0 = vunpack.c.h.bf16 %v1391_v60 }
   0x6   :  { %542 = vmatpush.bf16.msra.mxu0 %v1092_v1  ;;  %1447 = vmatpush.bf16.msra.mxu1 %v1092_v1  ;;  %v1128_v10 = vunpack.c.l.bf16 %v1389_v9  ;;  %v1129_v11 = vunpack.c.h.bf16 %v1389_v9  ;;  %v152_v12 = vmul.f32 %v1523_v7, %v1096_v5  ;;  %v153_v13 = vmul.f32 %v1523_v7, %v1097_v6  ;;  %v1536_v14 = vld [vmem:[%s2155_s2] ss:$0 sm:$0xff] }
   0x7   :  { %1448 = vmatpush.bf16.msra.mxu2 %v1092_v1  ;;  %1449 = vmatpush.bf16.msra.mxu3 %v1092_v1  ;;  %v1086_v28 = vld [vmem:[%s2153_s3] sm:$0xff]  ;;  %v1132_v34 = vunpack.c.l.bf16 %v1390_v33  ;;  %v1133_v35 = vunpack.c.h.bf16 %v1390_v33  ;;  %v154_v36 = vmul.f32 %v1523_v7, %v1100_v29  ;;  %v155_v37 = vmul.f32 %v1523_v7, %v1101_v30 }
   0x8   :  { %v168_v15 = vmul.f32 %v1523_v7, %v1128_v10  ;;  %v169_v16 = vmul.f32 %v1523_v7, %v1129_v11  ;;  %v220_v18 = vadd.f32 %v1536_v14, %v152_v12  ;;  %v221_v19 = vadd.f32 %v1536_v14, %v153_v13  ;;  %v1397_v46 = vld [vmem:[%s2156_s0 + $0x80] sm:$0xff]   ;;  %v1398_v13 = vld [vmem:[%s2156_s0 + $0x88] sm:$0xff]  }
   0x9   :  { %v170_v38 = vmul.f32 %v1523_v7, %v1132_v34  ;;  %v171_v39 = vmul.f32 %v1523_v7, %v1133_v35  ;;  %v222_v40 = vadd.f32 %v1536_v14, %v154_v36  ;;  %v223_v41 = vadd.f32 %v1536_v14, %v155_v37  ;;  %v1405_v47 = vld [vmem:[%s2156_s0 + $0xc0] sm:$0xff]  }
   0xa   :  { %543 = vmatpush.bf16.msra.mxu0 %v1091_v2  ;;  %1450 = vmatpush.bf16.msra.mxu1 %v1091_v2  ;;  %v236_v20 = vadd.f32 %v1536_v14, %v168_v15  ;;  %v237_v21 = vadd.f32 %v1536_v14, %v169_v16  ;;  %v284_v23 = vmax.f32 %v220_v18, 0.0  ;;  %v285_v24 = vmax.f32 %v221_v19, 0.0  ;;  %v1384_v15 = vld [vmem:[%s2156_s0 + $0x18] sm:$0xff]  }
   0xb   :  { %1451 = vmatpush.bf16.msra.mxu2 %v1091_v2  ;;  %1452 = vmatpush.bf16.msra.mxu3 %v1091_v2  ;;  %v238_v42 = vadd.f32 %v1536_v14, %v170_v38  ;;  %v239_v43 = vadd.f32 %v1536_v14, %v171_v39  ;;  %v286_v44 = vmax.f32 %v222_v40, 0.0  ;;  %v287_v45 = vmax.f32 %v223_v41, 0.0 }
   0xc   :  { %v300_v26 = vmax.f32 %v236_v20, 0.0  ;;  %v301_v27 = vmax.f32 %v237_v21, 0.0  ;;  %v445_v31 = vpack.c.bf16 %v285_v24, %v284_v23  ;;  %v1160_v50 = vunpack.c.l.bf16 %v1397_v46 }
   0xd   :  { %v302_v48 = vmax.f32 %v238_v42, 0.0  ;;  %v303_v49 = vmax.f32 %v239_v43, 0.0  ;;  %v1161_v51 = vunpack.c.h.bf16 %v1397_v46  ;;  %v446_v56 = vpack.c.bf16 %v287_v45, %v286_v44  ;;  %v1399_v46 = vld [vmem:[%s2156_s0 + $0x90] sm:$0xff]  }
   0xe   :  { %544 = vmatpush.bf16.msra.mxu0 %v1090_v3  ;;  %1453 = vmatpush.bf16.msra.mxu1 %v1090_v3  ;;  %v453_v32 = vpack.c.bf16 %v301_v27, %v300_v26  ;;  %v184_v52 = vmul.f32 %v1523_v7, %v1160_v50  ;;  %v156_v1 = vmul.f32 %v1523_v7, %v1104_v54  ;;  %v1164_v18 = vunpack.c.l.bf16 %v1398_v13 }
   0xf   :  { %1454 = vmatpush.bf16.msra.mxu2 %v1090_v3  ;;  %1455 = vmatpush.bf16.msra.mxu3 %v1090_v3  ;;  %v185_v53 = vmul.f32 %v1523_v7, %v1161_v51  ;;  %v454_v57 = vpack.c.bf16 %v303_v49, %v302_v48  ;;  %v157_v2 = vmul.f32 %v1523_v7, %v1105_v55  ;;  %v1165_v19 = vunpack.c.h.bf16 %v1398_v13  ;;  %v1385_v48 = vld [vmem:[%s2156_s0 + $0x20] sm:$0xff]  }
  0x10   :  { %v252_v58 = vadd.f32 %v1536_v14, %v184_v52  ;;  %v172_v4 = vmul.f32 %v1523_v7, %v1136_v63  ;;  %v173_v5 = vmul.f32 %v1523_v7, %v1137_v0  ;;  %v224_v6 = vadd.f32 %v1536_v14, %v156_v1  ;;  %v1393_v1 = vld [vmem:[%s2156_s0 + $0x60] sm:$0xff]  }
  0x11   :  { %v253_v59 = vadd.f32 %v1536_v14, %v185_v53  ;;  %v186_v20 = vmul.f32 %v1523_v7, %v1164_v18  ;;  %v187_v21 = vmul.f32 %v1523_v7, %v1165_v19  ;;  %v1109_v23 = vunpack.c.h.bf16 %v1384_v15 }
  0x12   :  { %545 = vmatpush.bf16.msra.mxu0 %v1089_v8  ;;  %1456 = vmatpush.bf16.msra.mxu1 %v1089_v8  ;;  %v316_v61 = vmax.f32 %v252_v58, 0.0  ;;  %v240_v9 = vadd.f32 %v1536_v14, %v172_v4  ;;  %v241_v10 = vadd.f32 %v1536_v14, %v173_v5  ;;  %v288_v11 = vmax.f32 %v224_v6, 0.0 }
  0x13   :  { %1457 = vmatpush.bf16.msra.mxu2 %v1089_v8  ;;  %1458 = vmatpush.bf16.msra.mxu3 %v1089_v8  ;;  %v317_v62 = vmax.f32 %v253_v59, 0.0  ;;  %v225_v8 = vadd.f32 %v1536_v14, %v157_v2  ;;  %v254_v26 = vadd.f32 %v1536_v14, %v186_v20  ;;  %v255_v27 = vadd.f32 %v1536_v14, %v187_v21 }
  0x14   :  { %v304_v16 = vmax.f32 %v240_v9, 0.0  ;;  %v159_v34 = vmul.f32 %v1523_v7, %v1109_v23  ;;  %v1168_v49 = vunpack.c.l.bf16 %v1399_v46  ;;  %v1169_v50 = vunpack.c.h.bf16 %v1399_v46 }
  0x15   :  { %v461_v3 = vpack.c.bf16 %v317_v62, %v316_v61  ;;  %v289_v12 = vmax.f32 %v225_v8, 0.0  ;;  %v318_v29 = vmax.f32 %v254_v26, 0.0  ;;  %v319_v30 = vmax.f32 %v255_v27, 0.0  ;;  %v1386_v26 = vld [vmem:[%s2156_s0 + $0x28] sm:$0xff]  }
  0x16   :  { %546 = vmatpush.bf16.msra.mxu0 %v1088_v17  ;;  %1459 = vmatpush.bf16.msra.mxu1 %v1088_v17  ;;  %v227_v39 = vadd.f32 %v1536_v14, %v159_v34  ;;  %v1192_v51 = vunpack.c.l.bf16 %v1405_v47  ;;  %v1193_v52 = vunpack.c.h.bf16 %v1405_v47  ;;  %v188_v53 = vmul.f32 %v1523_v7, %v1168_v49 }
  0x17   :  { %1460 = vmatpush.bf16.msra.mxu2 %v1088_v17  ;;  %1461 = vmatpush.bf16.msra.mxu3 %v1088_v17  ;;  %v305_v17 = vmax.f32 %v241_v10, 0.0  ;;  %v447_v24 = vpack.c.bf16 %v289_v12, %v288_v11  ;;  %v462_v35 = vpack.c.bf16 %v319_v30, %v318_v29  ;;  %v189_v54 = vmul.f32 %v1523_v7, %v1169_v50 }
  0x18   :  { %v291_v43 = vmax.f32 %v227_v39, 0.0  ;;  %v200_v55 = vmul.f32 %v1523_v7, %v1192_v51  ;;  %v1112_v58 = vunpack.c.l.bf16 %v1385_v48  ;;  %v1113_v59 = vunpack.c.h.bf16 %v1385_v48 }
  0x19   :  { %v455_v25 = vpack.c.bf16 %v305_v17, %v304_v16  ;;  %v256_v61 = vadd.f32 %v1536_v14, %v188_v53  ;;  %v257_v62 = vadd.f32 %v1536_v14, %v189_v54  ;;  %v1144_v9 = vunpack.c.l.bf16 %v1393_v1 }
  0x1a   :  { %547 = vmatpush.bf16.msra.mxu0 %v1087_v22  ;;  %1462 = vmatpush.bf16.msra.mxu1 %v1087_v22  ;;  %v268_v63 = vadd.f32 %v1536_v14, %v200_v55  ;;  %v160_v6 = vmul.f32 %v1523_v7, %v1112_v58  ;;  %v161_v8 = vmul.f32 %v1523_v7, %v1113_v59  ;;  %v1145_v10 = vunpack.c.h.bf16 %v1393_v1  ;;  %v1407_v1 = vld [vmem:[%s2156_s0 + $0xd0] sm:$0xff]  }
  0x1b   :  { %1463 = vmatpush.bf16.msra.mxu2 %v1087_v22  ;;  %1464 = vmatpush.bf16.msra.mxu3 %v1087_v22  ;;  %v1108_v22 = vunpack.c.l.bf16 %v1384_v15  ;;  %v320_v2 = vmax.f32 %v256_v61, 0.0  ;;  %v176_v13 = vmul.f32 %v1523_v7, %v1144_v9 }
  0x1c   :  { %v332_v4 = vmax.f32 %v268_v63, 0.0  ;;  %v177_v15 = vmul.f32 %v1523_v7, %v1145_v10  ;;  %v228_v16 = vadd.f32 %v1536_v14, %v160_v6  ;;  %v229_v17 = vadd.f32 %v1536_v14, %v161_v8 }
  0x1d   :  { %v158_v33 = vmul.f32 %v1523_v7, %v1108_v22  ;;  %v244_v18 = vadd.f32 %v1536_v14, %v176_v13  ;;  %v1201_v6 = vunpack.c.h.bf16 %v1407_v1 }
  0x1e   :  { %548 = vmatpush.bf16.msra.mxu0 %v1086_v28  ;;  %1465 = vmatpush.bf16.msra.mxu1 %v1086_v28  ;;  %v245_v19 = vadd.f32 %v1536_v14, %v177_v15  ;;  %v292_v20 = vmax.f32 %v228_v16, 0.0  ;;  %v293_v21 = vmax.f32 %v229_v17, 0.0 }
  0x1f   :  { %1466 = vmatpush.bf16.msra.mxu2 %v1086_v28  ;;  %1467 = vmatpush.bf16.msra.mxu3 %v1086_v28  ;;  %v1392_v28 = vld [vmem:[%s2156_s0 + $0x58] sm:$0xff]   ;;  %v226_v38 = vadd.f32 %v1536_v14, %v158_v33  ;;  %v308_v22 = vmax.f32 %v244_v18, 0.0 }
  0x20   :  { %v309_v23 = vmax.f32 %v245_v19, 0.0 }
  0x21   :  { %549 = vmatmul.bf16.vlgmr.msra.gmra.mxu0 %v445_v31  ;;  %589 = vmatmul.bf16.vlgmr.msra.gmra.mxu1 %v453_v32  ;;  %v1140_v31 = vunpack.c.l.bf16 %v1392_v28  ;;  %v1141_v32 = vunpack.c.h.bf16 %v1392_v28  ;;  %v290_v42 = vmax.f32 %v226_v38, 0.0 }
  0x22   :  { %629 = vmatmul.bf16.vlgmr.msra.gmra.mxu2 %v461_v3  ;;  %v321_v3 = vmax.f32 %v257_v62, 0.0  ;;  %v457_v38 = vpack.c.bf16 %v309_v23, %v308_v22 }
  0x23   :  { %v174_v36 = vmul.f32 %v1523_v7, %v1140_v31  ;;  %v175_v37 = vmul.f32 %v1523_v7, %v1141_v32 }
  0x24   :  { %v463_v11 = vpack.c.bf16 %v321_v3, %v320_v2  ;;  %v1387_v2 = vld [vmem:[%s2156_s0 + $0x30] sm:$0xff]  }
  0x25   :  { %v242_v40 = vadd.f32 %v1536_v14, %v174_v36  ;;  %v243_v41 = vadd.f32 %v1536_v14, %v175_v37  ;;  %v1116_v36 = vunpack.c.l.bf16 %v1386_v26  ;;  %v1117_v37 = vunpack.c.h.bf16 %v1386_v26 }
  0x26   :  { %v1120_v13 = vunpack.c.l.bf16 %v1387_v2  ;;  %v1121_v15 = vunpack.c.h.bf16 %v1387_v2 }
  0x27   :  { %v306_v44 = vmax.f32 %v242_v40, 0.0  ;;  %v307_v45 = vmax.f32 %v243_v41, 0.0  ;;  %v162_v48 = vmul.f32 %v1523_v7, %v1116_v36  ;;  %v163_v49 = vmul.f32 %v1523_v7, %v1117_v37 }
  0x28   :  { %v164_v26 = vmul.f32 %v1523_v7, %v1120_v13 }
  0x29   :  { %v456_v60 = vpack.c.bf16 %v307_v45, %v306_v44 }
  0x31   :  { %554 = vmatmul.bf16.gmra.mxu0 %v446_v56  ;;  %594 = vmatmul.bf16.gmra.mxu1 %v454_v57  ;;  %v201_v56 = vmul.f32 %v1523_v7, %v1193_v52  ;;  %v448_v57 = vpack.c.bf16 %v291_v43, %v290_v42  ;;  %v1394_v43 = vld [vmem:[%s2156_s0 + $0x68] sm:$0xff]  }
  0x32   :  { %634 = vmatmul.bf16.gmra.mxu2 %v462_v35  ;;  %v449_v35 = vpack.c.bf16 %v293_v21, %v292_v20  ;;  %v1148_v50 = vunpack.c.l.bf16 %v1394_v43  ;;  %v1149_v51 = vunpack.c.h.bf16 %v1394_v43  ;;  %v1395_v21 = vld [vmem:[%s2156_s0 + $0x70] sm:$0xff]   ;;  %v1408_v43 = vld [vmem:[%s2156_s0 + $0xd8] sm:$0xff]  }
  0x33   :  { %v269_v0 = vadd.f32 %v1536_v14, %v201_v56  ;;  %v230_v56 = vadd.f32 %v1536_v14, %v162_v48  ;;  %v1205_v48 = vunpack.c.h.bf16 %v1408_v43 }
  0x34   :  { %v178_v54 = vmul.f32 %v1523_v7, %v1148_v50  ;;  %v179_v55 = vmul.f32 %v1523_v7, %v1149_v51 }
  0x35   :  { %v333_v5 = vmax.f32 %v269_v0, 0.0  ;;  %v1401_v0 = vld [vmem:[%s2156_s0 + $0xa0] sm:$0xff]  }
  0x36   :  { %v246_v58 = vadd.f32 %v1536_v14, %v178_v54  ;;  %v247_v59 = vadd.f32 %v1536_v14, %v179_v55  ;;  %v1176_v3 = vunpack.c.l.bf16 %v1401_v0 }
  0x37   :  { %v469_v12 = vpack.c.bf16 %v333_v5, %v332_v4  ;;  %v1177_v4 = vunpack.c.h.bf16 %v1401_v0  ;;  %v1200_v5 = vunpack.c.l.bf16 %v1407_v1 }
  0x38   :  { %v310_v62 = vmax.f32 %v246_v58, 0.0  ;;  %v311_v63 = vmax.f32 %v247_v59, 0.0  ;;  %v192_v8 = vmul.f32 %v1523_v7, %v1176_v3 }
  0x39   :  { %669 = vmatmul.bf16.vlgmr.msra.gmra.mxu3 %v469_v12  ;;  %v193_v9 = vmul.f32 %v1523_v7, %v1177_v4  ;;  %v204_v10 = vmul.f32 %v1523_v7, %v1200_v5 }
  0x3a   :  { %v458_v16 = vpack.c.bf16 %v311_v63, %v310_v62  ;;  %v260_v17 = vadd.f32 %v1536_v14, %v192_v8 }
  0x3b   :  { %v261_v18 = vadd.f32 %v1536_v14, %v193_v9  ;;  %v272_v19 = vadd.f32 %v1536_v14, %v204_v10 }
  0x3c   :  { %v324_v22 = vmax.f32 %v260_v17, 0.0 }
  0x3d   :  { %v325_v23 = vmax.f32 %v261_v18, 0.0 }
  0x41   :  { %559 = vmatmul.bf16.gmra.mxu0 %v447_v24  ;;  %599 = vmatmul.bf16.gmra.mxu1 %v455_v25  ;;  %v1400_v24 = vld [vmem:[%s2156_s0 + $0x98] sm:$0xff]   ;;  %v1406_v25 = vld [vmem:[%s2156_s0 + $0xc8] sm:$0xff]  }
  0x42   :  { %639 = vmatmul.bf16.gmra.mxu2 %v463_v11  ;;  %v1172_v27 = vunpack.c.l.bf16 %v1400_v24  ;;  %v1173_v28 = vunpack.c.h.bf16 %v1400_v24  ;;  %v1196_v29 = vunpack.c.l.bf16 %v1406_v25  ;;  %v1197_v30 = vunpack.c.h.bf16 %v1406_v25 }
  0x43   :  { %v205_v11 = vmul.f32 %v1523_v7, %v1201_v6  ;;  %v336_v24 = vmax.f32 %v272_v19, 0.0 }
  0x44   :  { %v190_v31 = vmul.f32 %v1523_v7, %v1172_v27  ;;  %v191_v32 = vmul.f32 %v1523_v7, %v1173_v28  ;;  %v202_v33 = vmul.f32 %v1523_v7, %v1196_v29  ;;  %v203_v34 = vmul.f32 %v1523_v7, %v1197_v30 }
  0x45   :  { %v273_v20 = vadd.f32 %v1536_v14, %v205_v11  ;;  %v165_v27 = vmul.f32 %v1523_v7, %v1121_v15  ;;  %v1152_v28 = vunpack.c.l.bf16 %v1395_v21  ;;  %v1153_v29 = vunpack.c.h.bf16 %v1395_v21  ;;  %v1409_v21 = vld [vmem:[%s2156_s0 + $0xe0] sm:$0xff]  }
  0x46   :  { %v258_v39 = vadd.f32 %v1536_v14, %v190_v31  ;;  %v259_v40 = vadd.f32 %v1536_v14, %v191_v32  ;;  %v270_v41 = vadd.f32 %v1536_v14, %v202_v33  ;;  %v271_v42 = vadd.f32 %v1536_v14, %v203_v34 }
  0x47   :  { %v337_v25 = vmax.f32 %v273_v20, 0.0  ;;  %v465_v30 = vpack.c.bf16 %v325_v23, %v324_v22  ;;  %v180_v32 = vmul.f32 %v1523_v7, %v1152_v28  ;;  %v181_v33 = vmul.f32 %v1523_v7, %v1153_v29  ;;  %v1403_v20 = vld [vmem:[%s2156_s0 + $0xb0] sm:$0xff]  }
  0x48   :  { %v322_v44 = vmax.f32 %v258_v39, 0.0  ;;  %v323_v45 = vmax.f32 %v259_v40, 0.0  ;;  %v334_v46 = vmax.f32 %v270_v41, 0.0  ;;  %v335_v47 = vmax.f32 %v271_v42, 0.0  ;;  %v1402_v42 = vld [vmem:[%s2156_s0 + $0xa8] sm:$0xff]  }
  0x49   :  { %v471_v31 = vpack.c.bf16 %v337_v25, %v336_v24  ;;  %v232_v34 = vadd.f32 %v1536_v14, %v164_v26  ;;  %v248_v36 = vadd.f32 %v1536_v14, %v180_v32  ;;  %v249_v37 = vadd.f32 %v1536_v14, %v181_v33 }
  0x4a   :  { %v464_v52 = vpack.c.bf16 %v323_v45, %v322_v44  ;;  %v470_v53 = vpack.c.bf16 %v335_v47, %v334_v46  ;;  %v1388_v44 = vld [vmem:[%s2156_s0 + $0x38] sm:$0xff]   ;;  %v1180_v45 = vunpack.c.l.bf16 %v1402_v42  ;;  %v1181_v46 = vunpack.c.h.bf16 %v1402_v42 }
  0x4b   :  { %v312_v40 = vmax.f32 %v248_v36, 0.0  ;;  %v313_v41 = vmax.f32 %v249_v37, 0.0  ;;  %v1204_v47 = vunpack.c.l.bf16 %v1408_v43  ;;  %v1124_v54 = vunpack.c.l.bf16 %v1388_v44  ;;  %v1404_v42 = vld [vmem:[%s2156_s0 + $0xb8] sm:$0xff]   ;;  %v1410_v43 = vld [vmem:[%s2156_s0 + $0xe8] sm:$0xff]  }
  0x4c   :  { %674 = vmatmul.bf16.gmra.mxu3 %v470_v53  ;;  %v195_v50 = vmul.f32 %v1523_v7, %v1181_v46  ;;  %v1125_v55 = vunpack.c.h.bf16 %v1388_v44  ;;  %v1184_v22 = vunpack.c.l.bf16 %v1403_v20  ;;  %v1185_v23 = vunpack.c.h.bf16 %v1403_v20 }
  0x4d   :  { %v206_v51 = vmul.f32 %v1523_v7, %v1204_v47  ;;  %v166_v2 = vmul.f32 %v1523_v7, %v1124_v54  ;;  %v1208_v24 = vunpack.c.l.bf16 %v1409_v21  ;;  %v1209_v25 = vunpack.c.h.bf16 %v1409_v21 }
  0x4e   :  { %v263_v58 = vadd.f32 %v1536_v14, %v195_v50  ;;  %v167_v3 = vmul.f32 %v1523_v7, %v1125_v55  ;;  %v196_v26 = vmul.f32 %v1523_v7, %v1184_v22  ;;  %v1188_v44 = vunpack.c.l.bf16 %v1404_v42 }
  0x4f   :  { %v274_v59 = vadd.f32 %v1536_v14, %v206_v51  ;;  %v234_v11 = vadd.f32 %v1536_v14, %v166_v2  ;;  %v208_v28 = vmul.f32 %v1523_v7, %v1208_v24  ;;  %v209_v29 = vmul.f32 %v1523_v7, %v1209_v25 }
  0x50   :  { %v327_v63 = vmax.f32 %v263_v58, 0.0  ;;  %v264_v32 = vadd.f32 %v1536_v14, %v196_v26  ;;  %v1212_v46 = vunpack.c.l.bf16 %v1410_v43  ;;  %v1213_v47 = vunpack.c.h.bf16 %v1410_v43 }
  0x51   :  { %564 = vmatmul.bf16.gmra.mxu0 %v448_v57  ;;  %604 = vmatmul.bf16.gmra.mxu1 %v456_v60  ;;  %v231_v57 = vadd.f32 %v1536_v14, %v163_v49  ;;  %v294_v60 = vmax.f32 %v230_v56, 0.0  ;;  %v194_v49 = vmul.f32 %v1523_v7, %v1180_v45  ;;  %v459_v56 = vpack.c.bf16 %v313_v41, %v312_v40 }
  0x52   :  { %644 = vmatmul.bf16.gmra.mxu2 %v464_v52  ;;  %v207_v52 = vmul.f32 %v1523_v7, %v1205_v48  ;;  %v338_v0 = vmax.f32 %v274_v59, 0.0  ;;  %v328_v36 = vmax.f32 %v264_v32, 0.0  ;;  %v1189_v45 = vunpack.c.h.bf16 %v1404_v42  ;;  %v1412_v32 = vld [vmem:[%s2156_s0 + $0xf8] sm:$0xff]  }
  0x53   :  { %v295_v61 = vmax.f32 %v231_v57, 0.0  ;;  %v262_v57 = vadd.f32 %v1536_v14, %v194_v49  ;;  %v198_v48 = vmul.f32 %v1523_v7, %v1188_v44  ;;  %v210_v50 = vmul.f32 %v1523_v7, %v1212_v46 }
  0x54   :  { %v199_v49 = vmul.f32 %v1523_v7, %v1189_v45  ;;  %v211_v51 = vmul.f32 %v1523_v7, %v1213_v47 }
  0x55   :  { %v450_v12 = vpack.c.bf16 %v295_v61, %v294_v60  ;;  %v275_v60 = vadd.f32 %v1536_v14, %v207_v52  ;;  %v1396_v61 = vld [vmem:[%s2156_s0 + $0x78] sm:$0xff]   ;;  %v326_v62 = vmax.f32 %v262_v57, 0.0  ;;  %v266_v52 = vadd.f32 %v1536_v14, %v198_v48 }
  0x56   :  { %v1156_v4 = vunpack.c.l.bf16 %v1396_v61  ;;  %v1157_v5 = vunpack.c.h.bf16 %v1396_v61  ;;  %v278_v54 = vadd.f32 %v1536_v14, %v210_v50  ;;  %v279_v55 = vadd.f32 %v1536_v14, %v211_v51 }
  0x57   :  { %v339_v1 = vmax.f32 %v275_v60, 0.0  ;;  %v466_v6 = vpack.c.bf16 %v327_v63, %v326_v62  ;;  %v330_v58 = vmax.f32 %v266_v52, 0.0 }
  0x58   :  { %v182_v9 = vmul.f32 %v1523_v7, %v1156_v4  ;;  %v183_v10 = vmul.f32 %v1523_v7, %v1157_v5  ;;  %v342_v60 = vmax.f32 %v278_v54, 0.0  ;;  %v343_v61 = vmax.f32 %v279_v55, 0.0 }
  0x59   :  { %v472_v8 = vpack.c.bf16 %v339_v1, %v338_v0 }
  0x5a   :  { %v250_v13 = vadd.f32 %v1536_v14, %v182_v9  ;;  %v251_v15 = vadd.f32 %v1536_v14, %v183_v10  ;;  %v474_v63 = vpack.c.bf16 %v343_v61, %v342_v60 }
  0x5c   :  { %679 = vmatmul.bf16.gmra.mxu3 %v471_v31  ;;  %v314_v18 = vmax.f32 %v250_v13, 0.0  ;;  %v315_v19 = vmax.f32 %v251_v15, 0.0 }
  0x5e   :  { %v460_v31 = vpack.c.bf16 %v315_v19, %v314_v18 }
  0x61   :  { %569 = vmatmul.bf16.gmra.mxu0 %v449_v35  ;;  %609 = vmatmul.bf16.gmra.mxu1 %v457_v38  ;;  %v233_v35 = vadd.f32 %v1536_v14, %v165_v27  ;;  %v296_v38 = vmax.f32 %v232_v34, 0.0  ;;  %v197_v27 = vmul.f32 %v1523_v7, %v1185_v23  ;;  %v276_v34 = vadd.f32 %v1536_v14, %v208_v28 }
  0x62   :  { %649 = vmatmul.bf16.gmra.mxu2 %v465_v30 }
  0x63   :  { %v297_v39 = vmax.f32 %v233_v35, 0.0  ;;  %v265_v33 = vadd.f32 %v1536_v14, %v197_v27  ;;  %v277_v35 = vadd.f32 %v1536_v14, %v209_v29 }
  0x65   :  { %v451_v53 = vpack.c.bf16 %v297_v39, %v296_v38  ;;  %v329_v37 = vmax.f32 %v265_v33, 0.0  ;;  %v340_v38 = vmax.f32 %v276_v34, 0.0  ;;  %v341_v39 = vmax.f32 %v277_v35, 0.0 }
  0x66   :  { %v1220_v34 = vunpack.c.l.bf16 %v1412_v32  ;;  %v1221_v35 = vunpack.c.h.bf16 %v1412_v32 }
  0x67   :  { %v467_v40 = vpack.c.bf16 %v329_v37, %v328_v36  ;;  %v473_v41 = vpack.c.bf16 %v341_v39, %v340_v38 }
  0x68   :  { %v214_v36 = vmul.f32 %v1523_v7, %v1220_v34  ;;  %v215_v37 = vmul.f32 %v1523_v7, %v1221_v35 }
  0x6a   :  { %v282_v38 = vadd.f32 %v1536_v14, %v214_v36  ;;  %v283_v39 = vadd.f32 %v1536_v14, %v215_v37 }
  0x6c   :  { %684 = vmatmul.bf16.gmra.mxu3 %v472_v8  ;;  %v1411_v8 = vld [vmem:[%s2156_s0 + $0xf0] sm:$0xff]   ;;  %v346_v45 = vmax.f32 %v282_v38, 0.0  ;;  %v347_v47 = vmax.f32 %v283_v39, 0.0 }
  0x6d   :  { %v1216_v10 = vunpack.c.l.bf16 %v1411_v8 }
  0x71   :  { %574 = vmatmul.bf16.gmra.mxu0 %v450_v12  ;;  %614 = vmatmul.bf16.gmra.mxu1 %v458_v16  ;;  %v235_v12 = vadd.f32 %v1536_v14, %v167_v3  ;;  %v298_v16 = vmax.f32 %v234_v11, 0.0  ;;  %v1217_v11 = vunpack.c.h.bf16 %v1411_v8 }
  0x72   :  { %654 = vmatmul.bf16.gmra.mxu2 %v466_v6 }
  0x73   :  { %v299_v17 = vmax.f32 %v235_v12, 0.0  ;;  %v212_v12 = vmul.f32 %v1523_v7, %v1216_v10  ;;  %v213_v13 = vmul.f32 %v1523_v7, %v1217_v11  ;;  %v476_v7 = vpack.c.bf16 %v347_v47, %v346_v45 }
  0x75   :  { %v452_v30 = vpack.c.bf16 %v299_v17, %v298_v16  ;;  %v280_v15 = vadd.f32 %v1536_v14, %v212_v12  ;;  %v281_v16 = vadd.f32 %v1536_v14, %v213_v13 }
  0x77   :  { %v344_v21 = vmax.f32 %v280_v15, 0.0  ;;  %v345_v22 = vmax.f32 %v281_v16, 0.0 }
  0x79   :  { %v475_v24 = vpack.c.bf16 %v345_v22, %v344_v21 }
  0x7c   :  { %689 = vmatmul.bf16.gmra.mxu3 %v473_v41 }
  0x81   :  { %579 = vmatmul.bf16.gmra.mxu0 %v451_v53  ;;  %619 = vmatmul.bf16.gmra.mxu1 %v459_v56  ;;  %v267_v53 = vadd.f32 %v1536_v14, %v199_v49 }
  0x82   :  { %659 = vmatmul.bf16.gmra.mxu2 %v467_v40 }
  0x83   :  { %v331_v59 = vmax.f32 %v267_v53, 0.0 }
  0x85   :  { %v468_v62 = vpack.c.bf16 %v331_v59, %v330_v58 }
  0x8c   :  { %694 = vmatmul.bf16.gmra.mxu3 %v474_v63 }
  0x91   :  { %584 = vmatmul.bf16.gmra.mxu0 %v452_v30  ;;  %624 = vmatmul.bf16.gmra.mxu1 %v460_v31 }
  0x92   :  { %664 = vmatmul.bf16.gmra.mxu2 %v468_v62 }
  0x9c   :  { %699 = vmatmul.bf16.gmra.mxu3 %v475_v24 }
  0x9e   :  { %v550_v56 = vpop.f32.mrf.mxu0  ;;  %v1749_v57 = vpop.f32.mrf.mxu1 }
  0x9f   :  { %v908_v0 = vmul.f32 %v550_v56, %v550_v56 }
  0xa5   :  { %v1774_v31 = vpop.f32.mrf.mxu2 }
  0xa6   :  { %v552_v1 = vpop.f32.mrf.mxu0  ;;  %v1751_v2 = vpop.f32.mrf.mxu1 }
  0xa7   :  { %v1225_v3 = vpack.c.bf16 %v552_v1, %v550_v56  ;;  %v838_v4 = vadd.f32 %v552_v1, %v550_v56  ;;  %v909_v5 = vmul.f32 %v552_v1, %v552_v1  ;;  %v1265_v6 = vpack.c.bf16 %v1751_v2, %v1749_v57 }
  0xa9   :  { %1226 = vst [vmem:[%s2157_s4] sm:$0xff] %v1225_v3   ;;  %v972_v9 = vadd.f32 %v909_v5, %v908_v0 }
  0xaa   :  { %1420 = vst [vmem:[%s2157_s4 + $0x40] sm:$0xff] %v1265_v6  }
  0xac   :  { %704 = vmatmul.bf16.gmra.mxu3 %v476_v7 }
  0xad   :  { %v1793_v44 = vpop.f32.mrf.mxu2 }
  0xae   :  { %v555_v17 = vpop.f32.mrf.mxu0  ;;  %v1768_v18 = vpop.f32.mrf.mxu1  ;;  %v1305_v46 = vpack.c.bf16 %v1793_v44, %v1774_v31 }
  0xaf   :  { %v839_v19 = vadd.f32 %v838_v4, %v555_v17  ;;  %v910_v20 = vmul.f32 %v555_v17, %v555_v17 }
  0xb0   :  { %1428 = vst [vmem:[%s2157_s4 + $0x80] sm:$0xff] %v1305_v46  }
  0xb1   :  { %v973_v23 = vadd.f32 %v972_v9, %v910_v20 }
  0xb5   :  { %v1806_v52 = vpop.f32.mrf.mxu2 }
  0xb6   :  { %v557_v25 = vpop.f32.mrf.mxu0  ;;  %v1770_v26 = vpop.f32.mrf.mxu1 }
  0xb7   :  { %v1230_v27 = vpack.c.bf16 %v557_v25, %v555_v17  ;;  %v840_v28 = vadd.f32 %v839_v19, %v557_v25  ;;  %v911_v29 = vmul.f32 %v557_v25, %v557_v25  ;;  %v1270_v30 = vpack.c.bf16 %v1770_v26, %v1768_v18 }
  0xb9   :  { %1413 = vst [vmem:[%s2157_s4 + $0x8] sm:$0xff] %v1230_v27   ;;  %v974_v33 = vadd.f32 %v973_v23, %v911_v29 }
  0xba   :  { %1421 = vst [vmem:[%s2157_s4 + $0x48] sm:$0xff] %v1270_v30  }
  0xbc   :  { %v1829_v63 = vpop.f32.mrf.mxu3 }
  0xbd   :  { %v1816_v55 = vpop.f32.mrf.mxu2 }
  0xbe   :  { %v560_v40 = vpop.f32.mrf.mxu0  ;;  %v1789_v41 = vpop.f32.mrf.mxu1  ;;  %v1310_v56 = vpack.c.bf16 %v1816_v55, %v1806_v52 }
  0xbf   :  { %v1791_v42 = vadd.f32 %v840_v28, %v560_v40  ;;  %v912_v43 = vmul.f32 %v560_v40, %v560_v40 }
  0xc0   :  { %1429 = vst [vmem:[%s2157_s4 + $0x88] sm:$0xff] %v1310_v56  }
  0xc1   :  { %v1797_v48 = vadd.f32 %v974_v33, %v912_v43 }
  0xc4   :  { %v1841_v4 = vpop.f32.mrf.mxu3 }
  0xc5   :  { %v1827_v62 = vpop.f32.mrf.mxu2  ;;  %v1345_v6 = vpack.c.bf16 %v1841_v4, %v1829_v63 }
  0xc6   :  { %v562_v14 = vpop.f32.mrf.mxu0  ;;  %v1802_v49 = vpop.f32.mrf.mxu1 }
  0xc7   :  { %v1235_v50 = vpack.c.bf16 %v562_v14, %v560_v40  ;;  %v1275_v51 = vpack.c.bf16 %v1802_v49, %v1789_v41  ;;  %1436 = vst [vmem:[%s2157_s4 + $0xc0] sm:$0xff] %v1345_v6   ;;  %v913_v34 = vmul.f32 %v562_v14, %v562_v14  ;;  %v842_v38 = vadd.f32 %v1791_v42, %v562_v14 }
  0xc9   :  { %1414 = vst [vmem:[%s2157_s4 + $0x10] sm:$0xff] %v1235_v50   ;;  %v976_v39 = vadd.f32 %v1797_v48, %v913_v34 }
  0xca   :  { %1422 = vst [vmem:[%s2157_s4 + $0x50] sm:$0xff] %v1275_v51  }
  0xcd   :  { %v1839_v3 = vpop.f32.mrf.mxu2 }
  0xce   :  { %v565_v53 = vpop.f32.mrf.mxu0  ;;  %v1814_v54 = vpop.f32.mrf.mxu1  ;;  %v1315_v5 = vpack.c.bf16 %v1839_v3, %v1827_v62 }
  0xcf   :  { %v1859_v13 = vpop.f32.mrf.mxu3  ;;  %v914_v37 = vmul.f32 %v565_v53, %v565_v53  ;;  %v843_v43 = vadd.f32 %v842_v38, %v565_v53 }
  0xd0   :  { %1430 = vst [vmem:[%s2157_s4 + $0x90] sm:$0xff] %v1315_v5  }
  0xd1   :  { %v977_v45 = vadd.f32 %v976_v39, %v914_v37 }
  0xd5   :  { %v1857_v12 = vpop.f32.mrf.mxu2 }
  0xd6   :  { %v567_v58 = vpop.f32.mrf.mxu0  ;;  %v1823_v59 = vpop.f32.mrf.mxu1 }
  0xd7   :  { %v1240_v60 = vpack.c.bf16 %v567_v58, %v565_v53  ;;  %v1280_v61 = vpack.c.bf16 %v1823_v59, %v1814_v54  ;;  %v1871_v19 = vpop.f32.mrf.mxu3  ;;  %v915_v40 = vmul.f32 %v567_v58, %v567_v58  ;;  %v844_v50 = vadd.f32 %v843_v43, %v567_v58 }
  0xd8   :  { %v1350_v21 = vpack.c.bf16 %v1871_v19, %v1859_v13 }
  0xd9   :  { %1415 = vst [vmem:[%s2157_s4 + $0x18] sm:$0xff] %v1240_v60   ;;  %v978_v14 = vadd.f32 %v977_v45, %v915_v40 }
  0xda   :  { %1423 = vst [vmem:[%s2157_s4 + $0x58] sm:$0xff] %v1280_v61  }
  0xdb   :  { %1437 = vst [vmem:[%s2157_s4 + $0xc8] sm:$0xff] %v1350_v21  }
  0xdd   :  { %v1869_v17 = vpop.f32.mrf.mxu2 }
  0xde   :  { %v570_v0 = vpop.f32.mrf.mxu0  ;;  %v1837_v1 = vpop.f32.mrf.mxu1  ;;  %v1320_v20 = vpack.c.bf16 %v1869_v17, %v1857_v12 }
  0xdf   :  { %v1889_v28 = vpop.f32.mrf.mxu3  ;;  %v916_v46 = vmul.f32 %v570_v0, %v570_v0  ;;  %v845_v5 = vadd.f32 %v844_v50, %v570_v0 }
  0xe0   :  { %1431 = vst [vmem:[%s2157_s4 + $0x98] sm:$0xff] %v1320_v20  }
  0xe1   :  { %v979_v48 = vadd.f32 %v978_v14, %v916_v46 }
  0xe5   :  { %v1887_v27 = vpop.f32.mrf.mxu2 }
  0xe6   :  { %v572_v8 = vpop.f32.mrf.mxu0  ;;  %v1853_v9 = vpop.f32.mrf.mxu1 }
  0xe7   :  { %v1245_v10 = vpack.c.bf16 %v572_v8, %v570_v0  ;;  %v1285_v11 = vpack.c.bf16 %v1853_v9, %v1837_v1  ;;  %v1901_v33 = vpop.f32.mrf.mxu3  ;;  %v917_v61 = vmul.f32 %v572_v8, %v572_v8  ;;  %v846_v58 = vadd.f32 %v845_v5, %v572_v8 }
  0xe8   :  { %v1355_v36 = vpack.c.bf16 %v1901_v33, %v1889_v28 }
  0xe9   :  { %1416 = vst [vmem:[%s2157_s4 + $0x20] sm:$0xff] %v1245_v10   ;;  %v980_v6 = vadd.f32 %v979_v48, %v917_v61 }
  0xea   :  { %1424 = vst [vmem:[%s2157_s4 + $0x60] sm:$0xff] %v1285_v11  }
  0xeb   :  { %1438 = vst [vmem:[%s2157_s4 + $0xd0] sm:$0xff] %v1355_v36  }
  0xed   :  { %v1899_v32 = vpop.f32.mrf.mxu2 }
  0xee   :  { %v575_v15 = vpop.f32.mrf.mxu0  ;;  %v1867_v16 = vpop.f32.mrf.mxu1  ;;  %v1325_v35 = vpack.c.bf16 %v1899_v32, %v1887_v27 }
  0xef   :  { %v1921_v42 = vpop.f32.mrf.mxu3  ;;  %v918_v53 = vmul.f32 %v575_v15, %v575_v15  ;;  %v847_v11 = vadd.f32 %v846_v58, %v575_v15 }
  0xf0   :  { %1432 = vst [vmem:[%s2157_s4 + $0xa0] sm:$0xff] %v1325_v35  }
  0xf1   :  { %v981_v20 = vadd.f32 %v980_v6, %v918_v53  ;;  %v925_v6 = vmul.f32 %v1751_v2, %v1751_v2 }
  0xf5   :  { %v1919_v60 = vpop.f32.mrf.mxu2 }
  0xf6   :  { %v577_v22 = vpop.f32.mrf.mxu0  ;;  %v1883_v23 = vpop.f32.mrf.mxu1 }
  0xf7   :  { %v1250_v24 = vpack.c.bf16 %v577_v22, %v575_v15  ;;  %v1290_v25 = vpack.c.bf16 %v1883_v23, %v1867_v16  ;;  %v919_v10 = vmul.f32 %v577_v22, %v577_v22  ;;  %v848_v0 = vadd.f32 %v847_v11, %v577_v22  ;;  %v1933_v35 = vpop.f32.mrf.mxu3 }
  0xf8   :  { %v1360_v8 = vpack.c.bf16 %v1933_v35, %v1921_v42 }
  0xf9   :  { %1417 = vst [vmem:[%s2157_s4 + $0x28] sm:$0xff] %v1250_v24   ;;  %v982_v36 = vadd.f32 %v981_v20, %v919_v10  ;;  %v926_v20 = vmul.f32 %v1768_v18, %v1768_v18 }
  0xfa   :  { %1425 = vst [vmem:[%s2157_s4 + $0x68] sm:$0xff] %v1290_v25  }
  0xfb   :  { %1439 = vst [vmem:[%s2157_s4 + $0xd8] sm:$0xff] %v1360_v8  }
  0xfd   :  { %v1931_v34 = vpop.f32.mrf.mxu2 }
  0xfe   :  { %v580_v29 = vpop.f32.mrf.mxu0  ;;  %v1897_v30 = vpop.f32.mrf.mxu1  ;;  %v1330_v38 = vpack.c.bf16 %v1931_v34, %v1919_v60 }
  0xff   :  { %v920_v21 = vmul.f32 %v580_v29, %v580_v29  ;;  %v849_v39 = vadd.f32 %v848_v0, %v580_v29  ;;  %v1951_v48 = vpop.f32.mrf.mxu3 }
 0x100   :  { %1433 = vst [vmem:[%s2157_s4 + $0xa8] sm:$0xff] %v1330_v38  }
 0x101   :  { %v983_v15 = vadd.f32 %v982_v36, %v920_v21 }
 0x105   :  { %v1949_v5 = vpop.f32.mrf.mxu2 }
 0x106   :  { %v582_v47 = vpop.f32.mrf.mxu0  ;;  %v1915_v7 = vpop.f32.mrf.mxu1 }
 0x107   :  { %v1255_v51 = vpack.c.bf16 %v582_v47, %v580_v29  ;;  %v1295_v56 = vpack.c.bf16 %v1915_v7, %v1897_v30  ;;  %v921_v37 = vmul.f32 %v582_v47, %v582_v47  ;;  %v850_v22 = vadd.f32 %v849_v39, %v582_v47  ;;  %v1973_v38 = vpop.f32.mrf.mxu3 }
 0x108   :  { %v924_v47 = vmul.f32 %v1749_v57, %v1749_v57  ;;  %v1365_v8 = vpack.c.bf16 %v1973_v38, %v1951_v48 }
 0x109   :  { %1418 = vst [vmem:[%s2157_s4 + $0x30] sm:$0xff] %v1255_v51   ;;  %v984_v43 = vadd.f32 %v983_v15, %v921_v37 }
 0x10a   :  { %1426 = vst [vmem:[%s2157_s4 + $0x70] sm:$0xff] %v1295_v56  }
 0x10b   :  { %1440 = vst [vmem:[%s2157_s4 + $0xe0] sm:$0xff] %v1365_v8   ;;  %v937_v8 = vmul.f32 %v1915_v7, %v1915_v7 }
 0x10d   :  { %v1971_v37 = vpop.f32.mrf.mxu2 }
 0x10e   :  { %v585_v24 = vpop.f32.mrf.mxu0  ;;  %v1929_v25 = vpop.f32.mrf.mxu1 }
 0x10f   :  { %v922_v40 = vmul.f32 %v585_v24, %v585_v24  ;;  %v851_v45 = vadd.f32 %v850_v22, %v585_v24 }
 0x111   :  { %v985_v46 = vadd.f32 %v984_v43, %v922_v40  ;;  %v930_v43 = vmul.f32 %v1814_v54, %v1814_v54 }
 0x116   :  { %v587_v50 = vpop.f32.mrf.mxu0  ;;  %v1945_v51 = vpop.f32.mrf.mxu1 }
 0x117   :  { %v1260_v56 = vpack.c.bf16 %v587_v50, %v585_v24  ;;  %v852_v14 = vadd.f32 %v851_v45, %v587_v50  ;;  %v923_v29 = vmul.f32 %v587_v50, %v587_v50  ;;  %v1300_v61 = vpack.c.bf16 %v1945_v51, %v1929_v25 }
 0x119   :  { %1419 = vst [vmem:[%s2157_s4 + $0x38] sm:$0xff] %v1260_v56   ;;  %v853_v53 = vadd.f32 %v852_v14, %v1749_v57  ;;  %v986_v58 = vadd.f32 %v985_v46, %v923_v29  ;;  %v927_v57 = vmul.f32 %v1770_v26, %v1770_v26  ;;  %v931_v46 = vmul.f32 %v1823_v59, %v1823_v59  ;;  %v1997_v14 = vpop.f32.mrf.mxu2 }
 0x11a   :  { %1427 = vst [vmem:[%s2157_s4 + $0x78] sm:$0xff] %v1300_v61   ;;  %v932_v29 = vmul.f32 %v1837_v1, %v1837_v1 }
 0x11b   :  { %v854_v10 = vadd.f32 %v853_v53, %v1751_v2  ;;  %v987_v11 = vadd.f32 %v986_v58, %v924_v47  ;;  %v1335_v2 = vpack.c.bf16 %v1971_v37, %v1949_v5  ;;  %v933_v53 = vmul.f32 %v1853_v9, %v1853_v9 }
 0x11d   :  { %v855_v21 = vadd.f32 %v854_v10, %v1768_v18  ;;  %v988_v24 = vadd.f32 %v987_v11, %v925_v6  ;;  %v928_v18 = vmul.f32 %v1789_v41, %v1789_v41  ;;  %1434 = vst [vmem:[%s2157_s4 + $0xb0] sm:$0xff] %v1335_v2   ;;  %v935_v11 = vmul.f32 %v1883_v23, %v1883_v23 }
 0x11f   :  { %v856_v0 = vadd.f32 %v855_v21, %v1770_v26  ;;  %v989_v36 = vadd.f32 %v988_v24, %v926_v20  ;;  %v929_v26 = vmul.f32 %v1802_v49, %v1802_v49 }
 0x121   :  { %v857_v39 = vadd.f32 %v856_v0, %v1789_v41  ;;  %v990_v15 = vadd.f32 %v989_v36, %v927_v57 }
 0x123   :  { %v858_v40 = vadd.f32 %v857_v39, %v1802_v49  ;;  %v991_v22 = vadd.f32 %v990_v15, %v928_v18  ;;  %v1999_v49 = vpop.f32.mrf.mxu3 }
 0x125   :  { %v992_v45 = vadd.f32 %v991_v22, %v929_v26  ;;  %v859_v41 = vadd.f32 %v858_v40, %v1814_v54  ;;  %v939_v40 = vmul.f32 %v1945_v51, %v1945_v51 }
 0x127   :  { %v860_v50 = vadd.f32 %v859_v41, %v1823_v59  ;;  %v993_v56 = vadd.f32 %v992_v45, %v930_v43  ;;  %v934_v59 = vmul.f32 %v1867_v16, %v1867_v16  ;;  %v941_v41 = vmul.f32 %v1793_v44, %v1793_v44 }
 0x129   :  { %v861_v61 = vadd.f32 %v860_v50, %v1837_v1  ;;  %v994_v47 = vadd.f32 %v993_v56, %v931_v46  ;;  %v2013_v1 = vpop.f32.mrf.mxu2  ;;  %v942_v50 = vmul.f32 %v1806_v52, %v1806_v52 }
 0x12b   :  { %v862_v54 = vadd.f32 %v861_v61, %v1853_v9  ;;  %v995_v58 = vadd.f32 %v994_v47, %v932_v29  ;;  %v2015_v24 = vpop.f32.mrf.mxu3  ;;  %v1340_v9 = vpack.c.bf16 %v2013_v1, %v1997_v14  ;;  %v943_v29 = vmul.f32 %v1816_v55, %v1816_v55 }
 0x12c   :  { %v1370_v57 = vpack.c.bf16 %v2015_v24, %v1999_v49 }
 0x12d   :  { %v863_v6 = vadd.f32 %v862_v54, %v1867_v16  ;;  %v996_v10 = vadd.f32 %v995_v58, %v933_v53  ;;  %v936_v16 = vmul.f32 %v1897_v30, %v1897_v30  ;;  %1435 = vst [vmem:[%s2157_s4 + $0xb8] sm:$0xff] %v1340_v9  }
 0x12e   :  { %1441 = vst [vmem:[%s2157_s4 + $0xe8] sm:$0xff] %v1370_v57   ;;  %v948_v57 = vmul.f32 %v1887_v27, %v1887_v27 }
 0x12f   :  { %v864_v20 = vadd.f32 %v863_v6, %v1883_v23  ;;  %v997_v21 = vadd.f32 %v996_v10, %v934_v59  ;;  %v946_v6 = vmul.f32 %v1857_v12, %v1857_v12 }
 0x131   :  { %v865_v0 = vadd.f32 %v864_v20, %v1897_v30  ;;  %v998_v36 = vadd.f32 %v997_v21, %v935_v11  ;;  %v938_v30 = vmul.f32 %v1929_v25, %v1929_v25 }
 0x133   :  { %v999_v23 = vadd.f32 %v998_v36, %v936_v16  ;;  %v866_v2 = vadd.f32 %v865_v0, %v1915_v7  ;;  %v2039_v22 = vpop.f32.mrf.mxu3  ;;  %v940_v7 = vmul.f32 %v1774_v31, %v1774_v31  ;;  %v949_v16 = vmul.f32 %v1899_v32, %v1899_v32 }
 0x135   :  { %v1000_v18 = vadd.f32 %v999_v23, %v937_v8  ;;  %v867_v39 = vadd.f32 %v866_v2, %v1929_v25  ;;  %v950_v23 = vmul.f32 %v1919_v60, %v1919_v60 }
 0x137   :  { %v1001_v15 = vadd.f32 %v1000_v18, %v938_v30  ;;  %v868_v26 = vadd.f32 %v867_v39, %v1945_v51  ;;  %v951_v18 = vmul.f32 %v1931_v34, %v1931_v34 }
 0x139   :  { %v869_v43 = vadd.f32 %v868_v26, %v1774_v31  ;;  %v1002_v45 = vadd.f32 %v1001_v15, %v939_v40 }
 0x13b   :  { %v870_v46 = vadd.f32 %v869_v43, %v1793_v44  ;;  %v1003_v25 = vadd.f32 %v1002_v45, %v940_v7  ;;  %v2053_v31 = vpop.f32.mrf.mxu3  ;;  %v944_v44 = vmul.f32 %v1827_v62, %v1827_v62  ;;  %v954_v45 = vmul.f32 %v1997_v14, %v1997_v14 }
 0x13c   :  { %v1375_v53 = vpack.c.bf16 %v2053_v31, %v2039_v22 }
 0x13d   :  { %v871_v56 = vadd.f32 %v870_v46, %v1806_v52  ;;  %v1004_v51 = vadd.f32 %v1003_v25, %v941_v41  ;;  %v945_v52 = vmul.f32 %v1839_v3, %v1839_v3  ;;  %v956_v25 = vmul.f32 %v1829_v63, %v1829_v63 }
 0x13e   :  { %1442 = vst [vmem:[%s2157_s4 + $0xf0] sm:$0xff] %v1375_v53  }
 0x13f   :  { %v872_v61 = vadd.f32 %v871_v56, %v1816_v55  ;;  %v1005_v47 = vadd.f32 %v1004_v51, %v942_v50 }
 0x141   :  { %v873_v54 = vadd.f32 %v872_v61, %v1827_v62  ;;  %v1006_v58 = vadd.f32 %v1005_v47, %v943_v29  ;;  %v947_v62 = vmul.f32 %v1869_v17, %v1869_v17 }
 0x143   :  { %v874_v55 = vadd.f32 %v873_v54, %v1839_v3  ;;  %v1007_v59 = vadd.f32 %v1006_v58, %v944_v44  ;;  %v2072_v9 = vpop.f32.mrf.mxu3 }
 0x145   :  { %v1008_v10 = vadd.f32 %v1007_v59, %v945_v52  ;;  %v875_v11 = vadd.f32 %v874_v55, %v1857_v12 }
 0x147   :  { %v876_v20 = vadd.f32 %v875_v11, %v1869_v17  ;;  %v1009_v21 = vadd.f32 %v1008_v10, %v946_v6 }
 0x149   :  { %v877_v3 = vadd.f32 %v876_v20, %v1887_v27  ;;  %v1010_v0 = vadd.f32 %v1009_v21, %v947_v62 }
 0x14b   :  { %v878_v36 = vadd.f32 %v877_v3, %v1899_v32  ;;  %v1011_v12 = vadd.f32 %v1010_v0, %v948_v57  ;;  %v707_v27 = vpop.f32.mrf.mxu3  ;;  %v952_v32 = vmul.f32 %v1949_v5, %v1949_v5 }
 0x14c   :  { %v1380_v30 = vpack.c.bf16 %v707_v27, %v2072_v9 }
 0x14d   :  { %v879_v17 = vadd.f32 %v878_v36, %v1919_v60  ;;  %v1012_v2 = vadd.f32 %v1011_v12, %v949_v16  ;;  %v967_v16 = vmul.f32 %v2015_v24, %v2015_v24 }
 0x14e   :  { %1443 = vst [vmem:[%s2157_s4 + $0xf8] sm:$0xff] %v1380_v30   ;;  %v971_v30 = vmul.f32 %v707_v27, %v707_v27 }
 0x14f   :  { %v880_v8 = vadd.f32 %v879_v17, %v1931_v34  ;;  %v1013_v39 = vadd.f32 %v1012_v2, %v950_v23  ;;  %v953_v34 = vmul.f32 %v1971_v37, %v1971_v37  ;;  %v968_v23 = vmul.f32 %v2039_v22, %v2039_v22 }
 0x150   :  { %v969_v2 = vmul.f32 %v2053_v31, %v2053_v31 }
 0x151   :  { %v1014_v15 = vadd.f32 %v1013_v39, %v951_v18  ;;  %v881_v26 = vadd.f32 %v880_v8, %v1949_v5  ;;  %v955_v5 = vmul.f32 %v2013_v1, %v2013_v1  ;;  %v970_v18 = vmul.f32 %v2072_v9, %v2072_v9 }
 0x153   :  { %v1015_v60 = vadd.f32 %v1014_v15, %v952_v32  ;;  %v882_v40 = vadd.f32 %v881_v26, %v1971_v37  ;;  %v957_v37 = vmul.f32 %v1841_v4, %v1841_v4 }
 0x155   :  { %v1016_v7 = vadd.f32 %v1015_v60, %v953_v34  ;;  %v883_v43 = vadd.f32 %v882_v40, %v1997_v14  ;;  %v958_v14 = vmul.f32 %v1859_v13, %v1859_v13 }
 0x157   :  { %v1017_v41 = vadd.f32 %v1016_v7, %v954_v45  ;;  %v884_v46 = vadd.f32 %v883_v43, %v2013_v1  ;;  %v959_v1 = vmul.f32 %v1871_v19, %v1871_v19 }
 0x159   :  { %v885_v50 = vadd.f32 %v884_v46, %v1829_v63  ;;  %v1018_v56 = vadd.f32 %v1017_v41, %v955_v5  ;;  %v960_v63 = vmul.f32 %v1889_v28, %v1889_v28 }
 0x15b   :  { %v886_v51 = vadd.f32 %v885_v50, %v1841_v4  ;;  %v1019_v29 = vadd.f32 %v1018_v56, %v956_v25  ;;  %v961_v4 = vmul.f32 %v1901_v33, %v1901_v33 }
 0x15d   :  { %v887_v61 = vadd.f32 %v886_v51, %v1859_v13  ;;  %v1020_v47 = vadd.f32 %v1019_v29, %v957_v37  ;;  %v962_v13 = vmul.f32 %v1921_v42, %v1921_v42 }
 0x15f   :  { %v888_v53 = vadd.f32 %v887_v61, %v1871_v19  ;;  %v1021_v44 = vadd.f32 %v1020_v47, %v958_v14  ;;  %v963_v19 = vmul.f32 %v1933_v35, %v1933_v35 }
 0x161   :  { %v889_v54 = vadd.f32 %v888_v53, %v1889_v28  ;;  %v1022_v58 = vadd.f32 %v1021_v44, %v959_v1  ;;  %v964_v28 = vmul.f32 %v1951_v48, %v1951_v48 }
 0x163   :  { %v890_v52 = vadd.f32 %v889_v54, %v1901_v33  ;;  %v1023_v55 = vadd.f32 %v1022_v58, %v960_v63  ;;  %v965_v33 = vmul.f32 %v1973_v38, %v1973_v38 }
 0x165   :  { %v1024_v59 = vadd.f32 %v1023_v55, %v961_v4  ;;  %v891_v6 = vadd.f32 %v890_v52, %v1921_v42  ;;  %v966_v42 = vmul.f32 %v1999_v49, %v1999_v49 }
 0x167   :  { %v892_v10 = vadd.f32 %v891_v6, %v1933_v35  ;;  %v1025_v11 = vadd.f32 %v1024_v59, %v962_v13 }
 0x169   :  { %v893_v62 = vadd.f32 %v892_v10, %v1951_v48  ;;  %v1026_v20 = vadd.f32 %v1025_v11, %v963_v19 }
 0x16b   :  { %v894_v21 = vadd.f32 %v893_v62, %v1973_v38  ;;  %v1027_v57 = vadd.f32 %v1026_v20, %v964_v28 }
 0x16d   :  { %v895_v3 = vadd.f32 %v894_v21, %v1999_v49  ;;  %v1028_v0 = vadd.f32 %v1027_v57, %v965_v33 }
 0x16f   :  { %v896_v35 = vadd.f32 %v895_v3, %v2015_v24  ;;  %v1029_v36 = vadd.f32 %v1028_v0, %v966_v42 }
 0x171   :  { %v1030_v48 = vadd.f32 %v1029_v36, %v967_v16  ;;  %v897_v12 = vadd.f32 %v896_v35, %v2039_v22 }
 0x173   :  { %v1031_v38 = vadd.f32 %v1030_v48, %v968_v23  ;;  %v898_v17 = vadd.f32 %v897_v12, %v2053_v31 }
 0x175   :  { %v1032_v49 = vadd.f32 %v1031_v38, %v969_v2  ;;  %v899_v8 = vadd.f32 %v898_v17, %v2072_v9 }
 0x177   :  { %v1033_v24 = vadd.f32 %v1032_v49, %v970_v18  ;;  %v900_v39 = vadd.f32 %v899_v8, %v707_v27 }
 0x179   :  { %v901_v15 = vrot.slane %v900_v39, 4  ;;  %v1034_v26 = vadd.f32 %v1033_v24, %v971_v30 }
 0x17b   :  { %v902_v32 = vadd.f32 %v901_v15, %v900_v39  ;;  %v1035_v60 = vrot.slane %v1034_v26, 4 }
 0x17d   :  { %v903_v22 = vrot.slane %v902_v32, 2  ;;  %v1036_v40 = vadd.f32 %v1035_v60, %v1034_v26 }
 0x17f   :  { %v904_v34 = vadd.f32 %v903_v22, %v902_v32  ;;  %v1037_v7 = vrot.slane %v1036_v40, 2 }
 0x181   :  { %v905_v43 = vrot.slane %v904_v34, 1  ;;  %v1038_v45 = vadd.f32 %v1037_v7, %v1036_v40 }
 0x183   :  { %v906_v31 = vadd.f32 %v905_v43, %v904_v34  ;;  %v1039_v41 = vrot.slane %v1038_v45, 1 }
 0x185   :  { %907 = vst [vmem:[%s2158_s5] sm:$0x1] %v906_v31  ;;  %v1040_v9 = vadd.f32 %v1039_v41, %v1038_v45 }
 0x187   :  { %1041 = vst [vmem:[%s2159_s6] sm:$0x1] %v1040_v9 }

// kernel: bottleneck_transform.7
= control target key start
LH: loop header
LB: loop body
LE: loop exit
PB: predicated region body
PF: predicated region fallthrough
CT: control target
= control target key end

     0   :  { %s957_s0 = inlined_call_operand.vmem [shape: bf16[8,64,128], index: 0, kind: input, shape index: {}]   ;;  %s958_s1 = inlined_call_operand.vmem [shape: f32[1,128], index: 1, kind: input, shape index: {}]   ;;  %s959_s2 = inlined_call_operand.vmem [shape: f32[1,128], index: 2, kind: input, shape index: {}]   ;;  %s960_s3 = inlined_call_operand.vmem [shape: f32[8,64,128], index: 3, kind: output, shape index: {}]  }
   0x1   :  { %v347_v0 = vld [vmem:[%s957_s0] sm:$0xff]   ;;  %v474_v5 = vld [vmem:[%s957_s0 + $0x8] sm:$0xff]   ;;  %v475_v8 = vld [vmem:[%s957_s0 + $0x10] sm:$0xff]  }
   0x2   :  { %v533_v1 = vld [vmem:[%s958_s1] ss:$0 sm:$0xff]  ;;  %v348_v2 = vunpack.c.l.bf16 %v347_v0  ;;  %v349_v4 = vunpack.c.h.bf16 %v347_v0  ;;  %v352_v6 = vunpack.c.l.bf16 %v474_v5  ;;  %v353_v7 = vunpack.c.h.bf16 %v474_v5  ;;  %v476_v9 = vld [vmem:[%s957_s0 + $0x18] sm:$0xff]   ;;  %v478_v23 = vld [vmem:[%s957_s0 + $0x28] sm:$0xff]  }
   0x3   :  { %v538_v3 = vld [vmem:[%s959_s2] ss:$0 sm:$0xff]  ;;  %v356_v12 = vunpack.c.l.bf16 %v475_v8  ;;  %v357_v13 = vunpack.c.h.bf16 %v475_v8  ;;  %v360_v16 = vunpack.c.l.bf16 %v476_v9  ;;  %v361_v17 = vunpack.c.h.bf16 %v476_v9  ;;  %v479_v28 = vld [vmem:[%s957_s0 + $0x30] sm:$0xff]   ;;  %v480_v33 = vld [vmem:[%s957_s0 + $0x38] sm:$0xff]  }
   0x4   :  { %v146_v10 = vmul.f32 %v533_v1, %v348_v2  ;;  %v147_v11 = vmul.f32 %v533_v1, %v349_v4  ;;  %v148_v14 = vmul.f32 %v533_v1, %v352_v6  ;;  %v149_v15 = vmul.f32 %v533_v1, %v353_v7  ;;  %v477_v18 = vld [vmem:[%s957_s0 + $0x20] sm:$0xff]   ;;  %v482_v49 = vld [vmem:[%s957_s0 + $0x48] sm:$0xff]   ;;  %v483_v52 = vld [vmem:[%s957_s0 + $0x50] sm:$0xff]  }
   0x5   :  { %v150_v21 = vmul.f32 %v533_v1, %v356_v12  ;;  %v151_v22 = vmul.f32 %v533_v1, %v357_v13  ;;  %v152_v26 = vmul.f32 %v533_v1, %v360_v16  ;;  %v153_v27 = vmul.f32 %v533_v1, %v361_v17  ;;  %v481_v46 = vld [vmem:[%s957_s0 + $0x40] sm:$0xff]   ;;  %v484_v61 = vld [vmem:[%s957_s0 + $0x58] sm:$0xff]   ;;  %v486_v13 = vld [vmem:[%s957_s0 + $0x68] sm:$0xff]  }
   0x6   :  { %v214_v19 = vadd.f32 %v538_v3, %v146_v10  ;;  %v215_v20 = vadd.f32 %v538_v3, %v147_v11  ;;  %v216_v24 = vadd.f32 %v538_v3, %v148_v14  ;;  %v217_v25 = vadd.f32 %v538_v3, %v149_v15  ;;  %v485_v6 = vld [vmem:[%s957_s0 + $0x60] sm:$0xff]  }
   0x7   :  { %v218_v29 = vadd.f32 %v538_v3, %v150_v21  ;;  %v219_v30 = vadd.f32 %v538_v3, %v151_v22  ;;  %v364_v31 = vunpack.c.l.bf16 %v477_v18  ;;  %v365_v32 = vunpack.c.h.bf16 %v477_v18 }
   0x8   :  { %278 = vst [vmem:[%s960_s3] sm:$0xff] %v214_v19  ;;  %v220_v34 = vadd.f32 %v538_v3, %v152_v26  ;;  %v221_v35 = vadd.f32 %v538_v3, %v153_v27  ;;  %v368_v36 = vunpack.c.l.bf16 %v478_v23  ;;  %v369_v37 = vunpack.c.h.bf16 %v478_v23  ;;  %v488_v27 = vld [vmem:[%s957_s0 + $0x78] sm:$0xff]  }
   0x9   :  { %279 = vst [vmem:[%s960_s3 + $0x8] sm:$0xff] %v215_v20  ;;  %v154_v38 = vmul.f32 %v533_v1, %v364_v31  ;;  %v155_v39 = vmul.f32 %v533_v1, %v365_v32  ;;  %v372_v40 = vunpack.c.l.bf16 %v479_v28  ;;  %v373_v41 = vunpack.c.h.bf16 %v479_v28  ;;  %v487_v20 = vld [vmem:[%s957_s0 + $0x70] sm:$0xff]  }
   0xa   :  { %280 = vst [vmem:[%s960_s3 + $0x10] sm:$0xff] %v216_v24  ;;  %v156_v42 = vmul.f32 %v533_v1, %v368_v36  ;;  %v157_v43 = vmul.f32 %v533_v1, %v369_v37  ;;  %v376_v44 = vunpack.c.l.bf16 %v480_v33  ;;  %v377_v45 = vunpack.c.h.bf16 %v480_v33 }
   0xb   :  { %281 = vst [vmem:[%s960_s3 + $0x18] sm:$0xff] %v217_v25  ;;  %v222_v47 = vadd.f32 %v538_v3, %v154_v38  ;;  %v158_v48 = vmul.f32 %v533_v1, %v372_v40  ;;  %v223_v50 = vadd.f32 %v538_v3, %v155_v39  ;;  %v159_v51 = vmul.f32 %v533_v1, %v373_v41  ;;  %v490_v41 = vld [vmem:[%s957_s0 + $0x88] sm:$0xff]  }
   0xc   :  { %282 = vst [vmem:[%s960_s3 + $0x20] sm:$0xff] %v218_v29  ;;  %v224_v53 = vadd.f32 %v538_v3, %v156_v42  ;;  %v160_v54 = vmul.f32 %v533_v1, %v376_v44  ;;  %v380_v55 = vunpack.c.l.bf16 %v481_v46  ;;  %v381_v56 = vunpack.c.h.bf16 %v481_v46 }
   0xd   :  { %283 = vst [vmem:[%s960_s3 + $0x28] sm:$0xff] %v219_v30  ;;  %v225_v57 = vadd.f32 %v538_v3, %v157_v43  ;;  %v161_v58 = vmul.f32 %v533_v1, %v377_v45  ;;  %v384_v59 = vunpack.c.l.bf16 %v482_v49  ;;  %v385_v60 = vunpack.c.h.bf16 %v482_v49 }
   0xe   :  { %284 = vst [vmem:[%s960_s3 + $0x30] sm:$0xff] %v220_v34  ;;  %v226_v62 = vadd.f32 %v538_v3, %v158_v48  ;;  %v162_v63 = vmul.f32 %v533_v1, %v380_v55  ;;  %v388_v0 = vunpack.c.l.bf16 %v483_v52  ;;  %v227_v2 = vadd.f32 %v538_v3, %v159_v51  ;;  %v489_v34 = vld [vmem:[%s957_s0 + $0x80] sm:$0xff]   ;;  %v491_v48 = vld [vmem:[%s957_s0 + $0x90] sm:$0xff]   ;;  %v492_v55 = vld [vmem:[%s957_s0 + $0x98] sm:$0xff]  }
   0xf   :  { %285 = vst [vmem:[%s960_s3 + $0x38] sm:$0xff] %v221_v35  ;;  %v163_v4 = vmul.f32 %v533_v1, %v381_v56  ;;  %v389_v5 = vunpack.c.h.bf16 %v483_v52  ;;  %v228_v7 = vadd.f32 %v538_v3, %v160_v54  ;;  %v164_v8 = vmul.f32 %v533_v1, %v384_v59 }
  0x10   :  { %286 = vst [vmem:[%s960_s3 + $0x40] sm:$0xff] %v222_v47  ;;  %v392_v9 = vunpack.c.l.bf16 %v484_v61  ;;  %v229_v10 = vadd.f32 %v538_v3, %v161_v58  ;;  %v165_v11 = vmul.f32 %v533_v1, %v385_v60  ;;  %v393_v12 = vunpack.c.h.bf16 %v484_v61 }
  0x11   :  { %287 = vst [vmem:[%s960_s3 + $0x48] sm:$0xff] %v223_v50  ;;  %v230_v14 = vadd.f32 %v538_v3, %v162_v63  ;;  %v166_v15 = vmul.f32 %v533_v1, %v388_v0  ;;  %v396_v16 = vunpack.c.l.bf16 %v485_v6  ;;  %v231_v17 = vadd.f32 %v538_v3, %v163_v4 }
  0x12   :  { %288 = vst [vmem:[%s960_s3 + $0x50] sm:$0xff] %v224_v53  ;;  %v167_v18 = vmul.f32 %v533_v1, %v389_v5  ;;  %v397_v19 = vunpack.c.h.bf16 %v485_v6  ;;  %v232_v21 = vadd.f32 %v538_v3, %v164_v8  ;;  %v168_v22 = vmul.f32 %v533_v1, %v392_v9 }
  0x13   :  { %289 = vst [vmem:[%s960_s3 + $0x58] sm:$0xff] %v225_v57  ;;  %v400_v23 = vunpack.c.l.bf16 %v486_v13  ;;  %v233_v24 = vadd.f32 %v538_v3, %v165_v11  ;;  %v169_v25 = vmul.f32 %v533_v1, %v393_v12  ;;  %v401_v26 = vunpack.c.h.bf16 %v486_v13 }
  0x14   :  { %290 = vst [vmem:[%s960_s3 + $0x60] sm:$0xff] %v226_v62  ;;  %v234_v28 = vadd.f32 %v538_v3, %v166_v15  ;;  %v170_v29 = vmul.f32 %v533_v1, %v396_v16  ;;  %v404_v30 = vunpack.c.l.bf16 %v487_v20  ;;  %v235_v31 = vadd.f32 %v538_v3, %v167_v18  ;;  %v493_v62 = vld [vmem:[%s957_s0 + $0xa0] sm:$0xff]  }
  0x15   :  { %291 = vst [vmem:[%s960_s3 + $0x68] sm:$0xff] %v227_v2  ;;  %v171_v32 = vmul.f32 %v533_v1, %v397_v19  ;;  %v405_v33 = vunpack.c.h.bf16 %v487_v20  ;;  %v236_v35 = vadd.f32 %v538_v3, %v168_v22  ;;  %v172_v36 = vmul.f32 %v533_v1, %v400_v23 }
  0x16   :  { %292 = vst [vmem:[%s960_s3 + $0x70] sm:$0xff] %v228_v7  ;;  %v408_v37 = vunpack.c.l.bf16 %v488_v27  ;;  %v237_v38 = vadd.f32 %v538_v3, %v169_v25  ;;  %v173_v39 = vmul.f32 %v533_v1, %v401_v26  ;;  %v409_v40 = vunpack.c.h.bf16 %v488_v27  ;;  %v494_v7 = vld [vmem:[%s957_s0 + $0xa8] sm:$0xff]  }
  0x17   :  { %293 = vst [vmem:[%s960_s3 + $0x78] sm:$0xff] %v229_v10  ;;  %v238_v42 = vadd.f32 %v538_v3, %v170_v29  ;;  %v174_v43 = vmul.f32 %v533_v1, %v404_v30  ;;  %v412_v44 = vunpack.c.l.bf16 %v489_v34  ;;  %v239_v45 = vadd.f32 %v538_v3, %v171_v32 }
  0x18   :  { %294 = vst [vmem:[%s960_s3 + $0x80] sm:$0xff] %v230_v14  ;;  %v175_v46 = vmul.f32 %v533_v1, %v405_v33  ;;  %v413_v47 = vunpack.c.h.bf16 %v489_v34  ;;  %v240_v49 = vadd.f32 %v538_v3, %v172_v36  ;;  %v176_v50 = vmul.f32 %v533_v1, %v408_v37  ;;  %v495_v14 = vld [vmem:[%s957_s0 + $0xb0] sm:$0xff]  }
  0x19   :  { %295 = vst [vmem:[%s960_s3 + $0x88] sm:$0xff] %v231_v17  ;;  %v416_v51 = vunpack.c.l.bf16 %v490_v41  ;;  %v241_v52 = vadd.f32 %v538_v3, %v173_v39  ;;  %v177_v53 = vmul.f32 %v533_v1, %v409_v40  ;;  %v417_v54 = vunpack.c.h.bf16 %v490_v41  ;;  %v815_v39 = vld [vmem:[%s957_s0 + $0xf8] sm:$0xff]  }
  0x1a   :  { %296 = vst [vmem:[%s960_s3 + $0x90] sm:$0xff] %v232_v21  ;;  %v242_v56 = vadd.f32 %v538_v3, %v174_v43  ;;  %v178_v57 = vmul.f32 %v533_v1, %v412_v44  ;;  %v420_v58 = vunpack.c.l.bf16 %v491_v48  ;;  %v243_v59 = vadd.f32 %v538_v3, %v175_v46  ;;  %v496_v21 = vld [vmem:[%s957_s0 + $0xb8] sm:$0xff]   ;;  %v499_v43 = vld [vmem:[%s957_s0 + $0xd0] sm:$0xff]  }
  0x1b   :  { %297 = vst [vmem:[%s960_s3 + $0x98] sm:$0xff] %v233_v24  ;;  %v179_v60 = vmul.f32 %v533_v1, %v413_v47  ;;  %v421_v61 = vunpack.c.h.bf16 %v491_v48  ;;  %v244_v63 = vadd.f32 %v538_v3, %v176_v50  ;;  %v180_v0 = vmul.f32 %v533_v1, %v416_v51  ;;  %v500_v50 = vld [vmem:[%s957_s0 + $0xd8] sm:$0xff]  }
  0x1c   :  { %298 = vst [vmem:[%s960_s3 + $0xa0] sm:$0xff] %v234_v28  ;;  %v424_v2 = vunpack.c.l.bf16 %v492_v55  ;;  %v245_v4 = vadd.f32 %v538_v3, %v177_v53  ;;  %v181_v5 = vmul.f32 %v533_v1, %v417_v54  ;;  %v425_v6 = vunpack.c.h.bf16 %v492_v55  ;;  %v497_v28 = vld [vmem:[%s957_s0 + $0xc0] sm:$0xff]  }
  0x1d   :  { %299 = vst [vmem:[%s960_s3 + $0xa8] sm:$0xff] %v235_v31  ;;  %v246_v8 = vadd.f32 %v538_v3, %v178_v57  ;;  %v182_v9 = vmul.f32 %v533_v1, %v420_v58  ;;  %v428_v10 = vunpack.c.l.bf16 %v493_v62  ;;  %v247_v11 = vadd.f32 %v538_v3, %v179_v60  ;;  %v501_v58 = vld [vmem:[%s957_s0 + $0xe0] sm:$0xff]  }
  0x1e   :  { %300 = vst [vmem:[%s960_s3 + $0xb0] sm:$0xff] %v236_v35  ;;  %v183_v12 = vmul.f32 %v533_v1, %v421_v61  ;;  %v429_v13 = vunpack.c.h.bf16 %v493_v62  ;;  %v248_v15 = vadd.f32 %v538_v3, %v180_v0  ;;  %v184_v16 = vmul.f32 %v533_v1, %v424_v2  ;;  %v498_v35 = vld [vmem:[%s957_s0 + $0xc8] sm:$0xff]  }
  0x1f   :  { %301 = vst [vmem:[%s960_s3 + $0xb8] sm:$0xff] %v237_v38  ;;  %v432_v17 = vunpack.c.l.bf16 %v494_v7  ;;  %v249_v18 = vadd.f32 %v538_v3, %v181_v5  ;;  %v185_v19 = vmul.f32 %v533_v1, %v425_v6  ;;  %v433_v20 = vunpack.c.h.bf16 %v494_v7 }
  0x20   :  { %302 = vst [vmem:[%s960_s3 + $0xc0] sm:$0xff] %v238_v42  ;;  %v250_v22 = vadd.f32 %v538_v3, %v182_v9  ;;  %v186_v23 = vmul.f32 %v533_v1, %v428_v10  ;;  %v436_v24 = vunpack.c.l.bf16 %v495_v14  ;;  %v251_v25 = vadd.f32 %v538_v3, %v183_v12  ;;  %v503_v12 = vld [vmem:[%s957_s0 + $0xf0] sm:$0xff]  }
  0x21   :  { %303 = vst [vmem:[%s960_s3 + $0xc8] sm:$0xff] %v239_v45  ;;  %v187_v26 = vmul.f32 %v533_v1, %v429_v13  ;;  %v437_v27 = vunpack.c.h.bf16 %v495_v14  ;;  %v252_v29 = vadd.f32 %v538_v3, %v184_v16  ;;  %v188_v30 = vmul.f32 %v533_v1, %v432_v17 }
  0x22   :  { %304 = vst [vmem:[%s960_s3 + $0xd0] sm:$0xff] %v240_v49  ;;  %v440_v31 = vunpack.c.l.bf16 %v496_v21  ;;  %v253_v32 = vadd.f32 %v538_v3, %v185_v19  ;;  %v189_v33 = vmul.f32 %v533_v1, %v433_v20  ;;  %v441_v34 = vunpack.c.h.bf16 %v496_v21 }
  0x23   :  { %305 = vst [vmem:[%s960_s3 + $0xd8] sm:$0xff] %v241_v52  ;;  %v254_v36 = vadd.f32 %v538_v3, %v186_v23  ;;  %v190_v37 = vmul.f32 %v533_v1, %v436_v24  ;;  %v444_v38 = vunpack.c.l.bf16 %v497_v28  ;;  %v255_v40 = vadd.f32 %v538_v3, %v187_v26 }
  0x24   :  { %306 = vst [vmem:[%s960_s3 + $0xe0] sm:$0xff] %v242_v56  ;;  %v191_v41 = vmul.f32 %v533_v1, %v437_v27  ;;  %v445_v42 = vunpack.c.h.bf16 %v497_v28  ;;  %v256_v44 = vadd.f32 %v538_v3, %v188_v30  ;;  %v192_v45 = vmul.f32 %v533_v1, %v440_v31 }
  0x25   :  { %307 = vst [vmem:[%s960_s3 + $0xe8] sm:$0xff] %v243_v59  ;;  %v448_v46 = vunpack.c.l.bf16 %v498_v35  ;;  %v257_v47 = vadd.f32 %v538_v3, %v189_v33  ;;  %v193_v48 = vmul.f32 %v533_v1, %v441_v34  ;;  %v449_v49 = vunpack.c.h.bf16 %v498_v35 }
  0x26   :  { %308 = vst [vmem:[%s960_s3 + $0xf0] sm:$0xff] %v244_v63  ;;  %v473_v51 = vunpack.c.h.bf16 %v815_v39  ;;  %v258_v52 = vadd.f32 %v538_v3, %v190_v37  ;;  %v194_v53 = vmul.f32 %v533_v1, %v444_v38  ;;  %v452_v54 = vunpack.c.l.bf16 %v499_v43 }
  0x27   :  { %309 = vst [vmem:[%s960_s3 + $0xf8] sm:$0xff] %v245_v4  ;;  %v259_v55 = vadd.f32 %v538_v3, %v191_v41  ;;  %v195_v56 = vmul.f32 %v533_v1, %v445_v42  ;;  %v453_v57 = vunpack.c.h.bf16 %v499_v43  ;;  %v260_v60 = vadd.f32 %v538_v3, %v192_v45  ;;  %v502_v4 = vld [vmem:[%s957_s0 + $0xe8] sm:$0xff]  }
  0x28   :  { %310 = vst [vmem:[%s960_s3 + $0x100] sm:$0xff] %v246_v8  ;;  %v209_v59 = vmul.f32 %v533_v1, %v473_v51  ;;  %v196_v61 = vmul.f32 %v533_v1, %v448_v46  ;;  %v456_v62 = vunpack.c.l.bf16 %v500_v50  ;;  %v261_v63 = vadd.f32 %v538_v3, %v193_v48 }
  0x29   :  { %311 = vst [vmem:[%s960_s3 + $0x108] sm:$0xff] %v247_v11  ;;  %v197_v0 = vmul.f32 %v533_v1, %v449_v49  ;;  %v457_v2 = vunpack.c.h.bf16 %v500_v50  ;;  %v262_v6 = vadd.f32 %v538_v3, %v194_v53  ;;  %v198_v7 = vmul.f32 %v533_v1, %v452_v54 }
  0x2a   :  { %312 = vst [vmem:[%s960_s3 + $0x110] sm:$0xff] %v248_v15  ;;  %v277_v5 = vadd.f32 %v538_v3, %v209_v59  ;;  %v460_v8 = vunpack.c.l.bf16 %v501_v58  ;;  %v263_v9 = vadd.f32 %v538_v3, %v195_v56  ;;  %v199_v10 = vmul.f32 %v533_v1, %v453_v57 }
  0x2b   :  { %313 = vst [vmem:[%s960_s3 + $0x118] sm:$0xff] %v249_v18  ;;  %v461_v11 = vunpack.c.h.bf16 %v501_v58  ;;  %v264_v13 = vadd.f32 %v538_v3, %v196_v61  ;;  %v200_v14 = vmul.f32 %v533_v1, %v456_v62  ;;  %v464_v15 = vunpack.c.l.bf16 %v502_v4 }
  0x2c   :  { %314 = vst [vmem:[%s960_s3 + $0x120] sm:$0xff] %v250_v22  ;;  %v265_v16 = vadd.f32 %v538_v3, %v197_v0  ;;  %v201_v17 = vmul.f32 %v533_v1, %v457_v2  ;;  %v465_v18 = vunpack.c.h.bf16 %v502_v4  ;;  %v266_v19 = vadd.f32 %v538_v3, %v198_v7 }
  0x2d   :  { %315 = vst [vmem:[%s960_s3 + $0x128] sm:$0xff] %v251_v25  ;;  %v202_v20 = vmul.f32 %v533_v1, %v460_v8  ;;  %v468_v21 = vunpack.c.l.bf16 %v503_v12  ;;  %v267_v22 = vadd.f32 %v538_v3, %v199_v10  ;;  %v203_v23 = vmul.f32 %v533_v1, %v461_v11 }
  0x2e   :  { %316 = vst [vmem:[%s960_s3 + $0x130] sm:$0xff] %v252_v29  ;;  %v469_v24 = vunpack.c.h.bf16 %v503_v12  ;;  %v268_v25 = vadd.f32 %v538_v3, %v200_v14  ;;  %v204_v26 = vmul.f32 %v533_v1, %v464_v15  ;;  %v472_v27 = vunpack.c.l.bf16 %v815_v39 }
  0x2f   :  { %317 = vst [vmem:[%s960_s3 + $0x138] sm:$0xff] %v253_v32  ;;  %v269_v28 = vadd.f32 %v538_v3, %v201_v17  ;;  %v205_v29 = vmul.f32 %v533_v1, %v465_v18  ;;  %v270_v30 = vadd.f32 %v538_v3, %v202_v20  ;;  %v206_v31 = vmul.f32 %v533_v1, %v468_v21 }
  0x30   :  { %318 = vst [vmem:[%s960_s3 + $0x140] sm:$0xff] %v254_v36  ;;  %v271_v32 = vadd.f32 %v538_v3, %v203_v23  ;;  %v207_v33 = vmul.f32 %v533_v1, %v469_v24  ;;  %v272_v34 = vadd.f32 %v538_v3, %v204_v26  ;;  %v208_v35 = vmul.f32 %v533_v1, %v472_v27 }
  0x31   :  { %319 = vst [vmem:[%s960_s3 + $0x148] sm:$0xff] %v255_v40  ;;  %v273_v36 = vadd.f32 %v538_v3, %v205_v29  ;;  %v274_v37 = vadd.f32 %v538_v3, %v206_v31 }
  0x32   :  { %320 = vst [vmem:[%s960_s3 + $0x150] sm:$0xff] %v256_v44  ;;  %v275_v38 = vadd.f32 %v538_v3, %v207_v33  ;;  %v276_v1 = vadd.f32 %v538_v3, %v208_v35 }
  0x33   :  { %321 = vst [vmem:[%s960_s3 + $0x158] sm:$0xff] %v257_v47 }
  0x34   :  { %322 = vst [vmem:[%s960_s3 + $0x160] sm:$0xff] %v258_v52 }
  0x35   :  { %323 = vst [vmem:[%s960_s3 + $0x168] sm:$0xff] %v259_v55 }
  0x36   :  { %324 = vst [vmem:[%s960_s3 + $0x170] sm:$0xff] %v260_v60 }
  0x37   :  { %325 = vst [vmem:[%s960_s3 + $0x178] sm:$0xff] %v261_v63 }
  0x38   :  { %326 = vst [vmem:[%s960_s3 + $0x180] sm:$0xff] %v262_v6 }
  0x39   :  { %327 = vst [vmem:[%s960_s3 + $0x188] sm:$0xff] %v263_v9 }
  0x3a   :  { %328 = vst [vmem:[%s960_s3 + $0x190] sm:$0xff] %v264_v13 }
  0x3b   :  { %329 = vst [vmem:[%s960_s3 + $0x198] sm:$0xff] %v265_v16 }
  0x3c   :  { %330 = vst [vmem:[%s960_s3 + $0x1a0] sm:$0xff] %v266_v19 }
  0x3d   :  { %331 = vst [vmem:[%s960_s3 + $0x1a8] sm:$0xff] %v267_v22 }
  0x3e   :  { %332 = vst [vmem:[%s960_s3 + $0x1b0] sm:$0xff] %v268_v25 }
  0x3f   :  { %333 = vst [vmem:[%s960_s3 + $0x1b8] sm:$0xff] %v269_v28 }
  0x40   :  { %334 = vst [vmem:[%s960_s3 + $0x1c0] sm:$0xff] %v270_v30 }
  0x41   :  { %335 = vst [vmem:[%s960_s3 + $0x1c8] sm:$0xff] %v271_v32 }
  0x42   :  { %336 = vst [vmem:[%s960_s3 + $0x1d0] sm:$0xff] %v272_v34 }
  0x43   :  { %337 = vst [vmem:[%s960_s3 + $0x1d8] sm:$0xff] %v273_v36 }
  0x44   :  { %338 = vst [vmem:[%s960_s3 + $0x1e0] sm:$0xff] %v274_v37 }
  0x45   :  { %339 = vst [vmem:[%s960_s3 + $0x1e8] sm:$0xff] %v275_v38 }
  0x46   :  { %340 = vst [vmem:[%s960_s3 + $0x1f0] sm:$0xff] %v276_v1 }
  0x47   :  { %341 = vst [vmem:[%s960_s3 + $0x1f8] sm:$0xff] %v277_v5 }

</bundles_post_ra>
